<compile_context>
chip_gen: v5e
topology: v5e:2x2
jax: 0.10.0
libtpu: 0.0.40
codegen_flags: <defaults>
</compile_context>

<pallas_src>
import functools
import math

import jax
import jax.numpy as jnp
from jax.experimental import pallas as pl
from jax.experimental.pallas import tpu as pltpu


def _round_up(x, m):
    return ((x + m - 1) // m) * m


def _cparams(semantics):
    return pltpu.CompilerParams(
        dimension_semantics=semantics,
        vmem_limit_bytes=32 * 1024 * 1024,
    )


# --------------------------- conv matmul kernel ------------------------------

def _conv_mm_kernel(w_ref, a_ref, b_ref, o_ref, acc_ref):
    """acc(Cout, tl) += W(Cout, tk) @ A(tk, tl); bias added at last K step."""
    @pl.when(pl.program_id(2) == 0)
    def _init():
        acc_ref[...] = jnp.zeros_like(acc_ref)

    acc_ref[...] += jnp.dot(w_ref[...], a_ref[0],
                            preferred_element_type=jnp.float32)

    @pl.when(pl.program_id(2) == pl.num_programs(2) - 1)
    def _fin():
        o_ref[0] = acc_ref[...] + b_ref[...]


def conv_matmul(wf, a, bias):
    """out[n] = wf @ a[n] + bias, bf16 operands on the MXU, f32 accumulation.

    wf:   (Cout, K)    bf16
    a:    (N, K, L)    bf16   (L = flattened output spatial, lane axis)
    bias: (Cout, 1)    f32
    returns (N, Cout, L) f32, channels-on-sublane / spatial-on-lane.
    """
    Cout, K = wf.shape
    N, _, L = a.shape

    # Lane (L) tiling: full block when small, else big 128-multiple tiles.
    if L <= 512:
        tl, Lp = L, L
    else:
        tl = next((t for t in (512, 256, 128) if L % t == 0), 128)
        Lp = _round_up(L, tl)
    # K tiling: single block when it fits, else 512-wide accumulation steps.
    if K <= 1024:
        tk, Kp = K, K
    else:
        tk = 512
        Kp = _round_up(K, tk)

    if Lp != L:
        a = jnp.pad(a, ((0, 0), (0, 0), (0, Lp - L)))
    if Kp != K:
        a = jnp.pad(a, ((0, 0), (0, Kp - K), (0, 0)))
        wf = jnp.pad(wf, ((0, 0), (0, Kp - K)))

    out = pl.pallas_call(
        _conv_mm_kernel,
        out_shape=jax.ShapeDtypeStruct((N, Cout, Lp), jnp.float32),
        grid_spec=pltpu.PrefetchScalarGridSpec(
            num_scalar_prefetch=0,
            grid=(N, Lp // tl, Kp // tk),
            in_specs=[
                pl.BlockSpec((Cout, tk), lambda n, l, k: (0, k)),
                pl.BlockSpec((1, tk, tl), lambda n, l, k: (n, k, l)),
                pl.BlockSpec((Cout, 1), lambda n, l, k: (0, 0)),
            ],
            out_specs=pl.BlockSpec((1, Cout, tl), lambda n, l, k: (n, 0, l)),
            scratch_shapes=[pltpu.VMEM((Cout, tl), jnp.float32)],
        ),
        compiler_params=_cparams(("parallel", "parallel", "arbitrary")),
    )(wf, a, bias)

    if Lp != L:
        out = out[:, :, :L]
    return out


# --------------------------- im2col glue (channels-first) --------------------

def _im2col_cf(x, ksize, stride, padding):
    """x: (N, Cin, T, H, W) -> (N, Cin*kt*kh*kw, To*Ho*Wo) bf16 + out shape."""
    N, Cin, T, H, W = x.shape
    kt, kh, kw = ksize
    st, sh, sw = stride
    pt, ph, pw = padding
    To = (T + 2 * pt - kt) // st + 1
    Ho = (H + 2 * ph - kh) // sh + 1
    Wo = (W + 2 * pw - kw) // sw + 1
    xb = x.astype(jnp.bfloat16)
    xp = jnp.pad(xb, ((0, 0), (0, 0), (pt, pt), (ph, ph), (pw, pw)))
    taps = []
    for dt in range(kt):
        for dh in range(kh):
            for dw in range(kw):
                taps.append(
                    xp[:, :, dt:dt + st * To:st,
                       dh:dh + sh * Ho:sh, dw:dw + sw * Wo:sw])
    # K ordered (cin, dt, dh, dw) to match PyTorch w.reshape(Cout, Cin*kt*kh*kw)
    a = jnp.stack(taps, axis=2)                      # (N, Cin, KK, To, Ho, Wo)
    a = a.reshape(N, Cin * kt * kh * kw, To * Ho * Wo)
    return a, (To, Ho, Wo)


def conv3d_cf(x, w, stride, padding, bias=None):
    """x: (N, Cin, T, H, W); w: (Cout, Cin, kt, kh, kw) -> (N, Cout, To, Ho, Wo)."""
    Cout = w.shape[0]
    K = math.prod(w.shape[1:])
    a, (To, Ho, Wo) = _im2col_cf(x, w.shape[2:], stride, padding)
    wf = w.reshape(Cout, K).astype(jnp.bfloat16)
    if bias is None:
        b = jnp.zeros((Cout, 1), jnp.float32)
    else:
        b = bias.reshape(Cout, 1).astype(jnp.float32)
    out = conv_matmul(wf, a, b)
    return out.reshape(x.shape[0], Cout, To, Ho, Wo)


# --------------------------- GroupNorm kernels --------------------------------

def _gn_stats_norm(x, g, b, eps):
    """x, g, b: (G, M) f32; per-group mean/var over the lane axis M = cg*L."""
    m = jnp.mean(x, axis=1, keepdims=True)
    v = jnp.mean(x * x, axis=1, keepdims=True) - m * m
    v = jnp.maximum(v, 0.0)           # guard E[x^2]-E[x]^2 cancellation
    inv = jax.lax.rsqrt(v + eps)
    return (x - m) * inv * g + b


def _gn_kernel(x_ref, g_ref, b_ref, o_ref, *, eps, relu):
    y = _gn_stats_norm(x_ref[0], g_ref[...], b_ref[...], eps)
    if relu:
        y = jnp.maximum(y, 0.0)
    o_ref[0] = y


def _gn_res_kernel(x_ref, r_ref, g_ref, b_ref, o_ref, *, eps, relu):
    y = _gn_stats_norm(x_ref[0], g_ref[...], b_ref[...], eps) + r_ref[0]
    if relu:
        y = jnp.maximum(y, 0.0)
    o_ref[0] = y


def _gn_dual_kernel(x_ref, r_ref, gx_ref, bx_ref, gr_ref, br_ref, o_ref, *, eps):
    y = (_gn_stats_norm(x_ref[0], gx_ref[...], bx_ref[...], eps)
         + _gn_stats_norm(r_ref[0], gr_ref[...], br_ref[...], eps))
    o_ref[0] = jnp.maximum(y, 0.0)


def _gn_reshape(x, G):
    """(N, C, *spatial) -> (N, G, cg*L); pure row-major reshape (free)."""
    N, C = x.shape[:2]
    L = math.prod(x.shape[2:])
    return x.reshape(N, G, (C // G) * L), L


def _gn_affine(gamma, beta, G, L):
    C = gamma.shape[0]
    cg = C // G
    g = jnp.broadcast_to(gamma.astype(jnp.float32).reshape(G, cg, 1), (G, cg, L))
    b = jnp.broadcast_to(beta.astype(jnp.float32).reshape(G, cg, 1), (G, cg, L))
    return g.reshape(G, cg * L), b.reshape(G, cg * L)


def group_norm_cf(x, gamma, beta, G, *, relu, residual=None, eps=1e-5):
    """GroupNorm on channels-first x (+ optional residual add, + optional ReLU)."""
    shape = x.shape
    N = shape[0]
    xr, L = _gn_reshape(x.astype(jnp.float32), G)
    M = xr.shape[-1]
    ge, be = _gn_affine(gamma, beta, G, L)

    big = pl.BlockSpec((1, G, M), lambda n: (n, 0, 0))
    small = pl.BlockSpec((G, M), lambda n: (0, 0))

    if residual is None:
        kernel = functools.partial(_gn_kernel, eps=eps, relu=relu)
        inputs = (xr, ge, be)
        in_specs = [big, small, small]
    else:
        rr, _ = _gn_reshape(residual.astype(jnp.float32), G)
        kernel = functools.partial(_gn_res_kernel, eps=eps, relu=relu)
        inputs = (xr, rr, ge, be)
        in_specs = [big, big, small, small]

    out = pl.pallas_call(
        kernel,
        out_shape=jax.ShapeDtypeStruct(xr.shape, jnp.float32),
        grid_spec=pltpu.PrefetchScalarGridSpec(
            num_scalar_prefetch=0, grid=(N,),
            in_specs=in_specs, out_specs=big),
        compiler_params=_cparams(("parallel",)),
    )(*inputs)
    return out.reshape(shape)


def group_norm_dual(x, gx, bx, residual, gr, br, G, *, eps=1e-5):
    """relu( GN(x; gx,bx) + GN(residual; gr,br) ) -- fuses the downsample GN."""
    shape = x.shape
    N = shape[0]
    xr, L = _gn_reshape(x.astype(jnp.float32), G)
    rr, _ = _gn_reshape(residual.astype(jnp.float32), G)
    M = xr.shape[-1]
    gxe, bxe = _gn_affine(gx, bx, G, L)
    gre, bre = _gn_affine(gr, br, G, L)
    big = pl.BlockSpec((1, G, M), lambda n: (n, 0, 0))
    small = pl.BlockSpec((G, M), lambda n: (0, 0))
    out = pl.pallas_call(
        functools.partial(_gn_dual_kernel, eps=eps),
        out_shape=jax.ShapeDtypeStruct(xr.shape, jnp.float32),
        grid_spec=pltpu.PrefetchScalarGridSpec(
            num_scalar_prefetch=0, grid=(N,),
            in_specs=[big, big, small, small, small, small],
            out_specs=big),
        compiler_params=_cparams(("parallel",)),
    )(xr, rr, gxe, bxe, gre, bre)
    return out.reshape(shape)


# --------------------------- fused VAE head -----------------------------------

def _head_kernel(w_ref, a_ref, b_ref, e_ref, z_ref, mu_ref, lv_ref, *, zdim):
    out = (jnp.dot(w_ref[...], a_ref[0], preferred_element_type=jnp.float32)
           + b_ref[...])                      # (2Z, L)
    mu = out[:zdim]
    lv = out[zdim:]
    mu_ref[0] = mu
    lv_ref[0] = lv
    z_ref[0] = e_ref[0] * jnp.exp(lv * 0.5) + mu


def vae_head(emb, params, eps):
    """conv_mu + conv_var as one concatenated matmul, reparam fused in epilogue.

    emb: (N, C, H, W); eps: (N, Z, H*W).  Returns z, mu, logvar as (N, Z, H, W).
    """
    N, _, H, W = emb.shape
    Z = params['conv_mu_w'].shape[0]
    wcat = jnp.concatenate([params['conv_mu_w'], params['conv_var_w']], axis=0)
    bcat = jnp.concatenate([params['conv_mu_b'], params['conv_var_b']], axis=0)
    a, (_, Ho, Wo) = _im2col_cf(emb[:, :, None], (1, 3, 3), (1, 1, 1), (0, 1, 1))
    K = a.shape[1]
    L = Ho * Wo
    wf = wcat.reshape(2 * Z, K).astype(jnp.bfloat16)
    bf = bcat.reshape(2 * Z, 1).astype(jnp.float32)
    big = pl.BlockSpec((1, Z, L), lambda n: (n, 0, 0))
    z, mu, lv = pl.pallas_call(
        functools.partial(_head_kernel, zdim=Z),
        out_shape=(jax.ShapeDtypeStruct((N, Z, L), jnp.float32),) * 3,
        grid_spec=pltpu.PrefetchScalarGridSpec(
            num_scalar_prefetch=0, grid=(N,),
            in_specs=[
                pl.BlockSpec((2 * Z, K), lambda n: (0, 0)),
                pl.BlockSpec((1, K, L), lambda n: (n, 0, 0)),
                pl.BlockSpec((2 * Z, 1), lambda n: (0, 0)),
                big,
            ],
            out_specs=(big, big, big)),
        compiler_params=_cparams(("parallel",)),
    )(wf, a, bf, eps.reshape(N, Z, L))
    rs = lambda t: t.reshape(N, Z, H, W)
    return rs(z), rs(mu), rs(lv)


# --------------------------- Model ---------------------------------------------

def basic_block(x, p, s3):
    out = conv3d_cf(x, p['conv1_w'], s3, (1, 1, 1))
    out = group_norm_cf(out, p['gn1_g'], p['gn1_b'], 16, relu=True)
    out = conv3d_cf(out, p['conv2_w'], (1, 1, 1), (1, 1, 1))
    if 'ds_w' in p:
        identity = conv3d_cf(x, p['ds_w'], s3, (0, 0, 0))
        out = group_norm_dual(out, p['gn2_g'], p['gn2_b'],
                              identity, p['ds_gn_g'], p['ds_gn_b'], 16)
    else:
        out = group_norm_cf(out, p['gn2_g'], p['gn2_b'], 16,
                            relu=True, residual=x)
    return out


def _kaiming_fan_out(key, shape):
    fan_out = shape[0] * math.prod(shape[2:])
    return math.sqrt(2.0 / fan_out) * jax.random.normal(key, shape, jnp.float32)


def init_encoder(key, dic, layers):
    channels = list(dic['ENC_M_channels'])
    max_frames = dic['max_frames']
    spatial_size = dic['img_size']
    min_ssize = dic.get('min_spatial_size', 8)
    params, cfg = {}, {}
    keys = iter(jax.random.split(key, 256))

    params['conv1_w'] = _kaiming_fan_out(next(keys), (channels[0], 3, 3, 7, 7))
    params['bn1_g'] = jnp.ones((channels[0],), jnp.float32)
    params['bn1_b'] = jnp.zeros((channels[0],), jnp.float32)

    inplanes = channels[0]
    first_block_down = (len(channels) - 1 < int(math.ceil(math.log2(max_frames)))
                        or dic['full_seq'])
    stride1 = (2, 1, 1) if first_block_down else 1

    def make_layer(planes, blocks, stride):
        nonlocal inplanes
        blk_params, blk_strides = [], []
        for b in range(blocks):
            s = stride if b == 0 else 1
            s3 = (s, s, s) if isinstance(s, int) else tuple(s)
            blk = {
                'conv1_w': _kaiming_fan_out(next(keys), (planes, inplanes, 3, 3, 3)),
                'gn1_g': jnp.ones((planes,), jnp.float32),
                'gn1_b': jnp.zeros((planes,), jnp.float32),
                'conv2_w': _kaiming_fan_out(next(keys), (planes, planes, 3, 3, 3)),
                'gn2_g': jnp.ones((planes,), jnp.float32),
                'gn2_b': jnp.zeros((planes,), jnp.float32),
            }
            if s3 != (1, 1, 1) or inplanes != planes:
                blk['ds_w'] = _kaiming_fan_out(next(keys), (planes, inplanes, 1, 1, 1))
                blk['ds_gn_g'] = jnp.ones((planes,), jnp.float32)
                blk['ds_gn_b'] = jnp.zeros((planes,), jnp.float32)
            blk_params.append(blk)
            blk_strides.append(s3)
            inplanes = planes
        return blk_params, blk_strides

    layer_params, layer_strides = [], []
    for planes, nblk, stride in [(channels[1], layers[0], stride1),
                                 (channels[2], layers[1], 2),
                                 (channels[3], layers[2], 2)]:
        p, s = make_layer(planes, nblk, stride)
        layer_params.append(p)
        layer_strides.append(s)
    last_channels = channels[3]

    stride4 = (2, 1, 1) if (dic['full_seq'] and max_frames >= 16) else None
    if spatial_size // 2 ** 3 > min_ssize:
        stride4 = 2
    if stride4 is not None:
        if len(channels) < 5:
            channels.append(channels[-1])
        p, s = make_layer(channels[4], layers[3], stride4)
        layer_params.append(p)
        layer_strides.append(s)
        last_channels = channels[4]
    if spatial_size // 2 ** 4 > min_ssize:
        p, s = make_layer(channels[5], layers[3], 2)
        layer_params.append(p)
        layer_strides.append(s)
        last_channels = channels[5]

    params['layers'] = layer_params
    cfg['layer_strides'] = layer_strides
    cfg['deterministic'] = dic.get('deterministic', False)

    z = dic['z_dim']
    std_head = math.sqrt(1.0 / (last_channels * 9))
    params['conv_mu_w'] = std_head * jax.random.normal(
        next(keys), (z, last_channels, 3, 3), jnp.float32)
    params['conv_mu_b'] = 0.01 * jax.random.normal(next(keys), (z,), jnp.float32)
    params['conv_var_w'] = std_head * jax.random.normal(
        next(keys), (z, last_channels, 3, 3), jnp.float32)
    params['conv_var_b'] = 0.01 * jax.random.normal(next(keys), (z,), jnp.float32)
    return params, cfg


def resnet_motion_encoder_forward(params, cfg, x_ncthw, eps_key):
    x = x_ncthw.astype(jnp.float32)                               # NCTHW
    x = conv3d_cf(x, params['conv1_w'], (2, 2, 2), (1, 3, 3))     # conv1, no bias
    x = group_norm_cf(x, params['bn1_g'], params['bn1_b'], 16, relu=True)
    for layer_p, layer_s in zip(params['layers'], cfg['layer_strides']):
        for blk, s3 in zip(layer_p, layer_s):
            x = basic_block(x, blk, s3)
    # PyTorch x.squeeze(2): temporal dim must be reduced to 1.
    assert x.shape[2] == 1, f"temporal dim not reduced to 1: {x.shape}"
    emb = x[:, :, 0]                                              # (N, C, H, W)
    N, _, H, W = emb.shape
    Z = params['conv_mu_w'].shape[0]
    if cfg['deterministic']:
        eps = jnp.zeros((N, Z, H * W), jnp.float32)
    else:
        eps = jax.random.normal(eps_key, (N, Z, H * W), jnp.float32)
    z, mu, logvar = vae_head(emb, params, eps)                    # already NCHW
    if cfg['deterministic']:
        return mu, mu, mu
    return z, mu, logvar


# --------------------------- Main ----------------------------------------------

if __name__ == "__main__":
    dic = dict(
        ENC_M_channels=[32, 32, 32, 32],   # multiples of 16 (GroupNorm(16))
        img_size=16,
        max_frames=8,
        min_spatial_size=8,
        full_seq=False,
        z_dim=16,
        deterministic=False,
    )
    layers = [1, 1, 1, 1]

    key = jax.random.PRNGKey(0)
    k_param, k_input, k_eps = jax.random.split(key, 3)
    params, cfg = init_encoder(k_param, dic, layers)

    # PyTorch layout input: (N, C=3, T=max_frames, H=img_size, W=img_size)
    x = jax.random.normal(
        k_input, (2, 3, dic['max_frames'], dic['img_size'], dic['img_size']),
        jnp.float32)

    fwd = jax.jit(lambda p, xx, kk: resnet_motion_encoder_forward(p, cfg, xx, kk))
    z, mu, logvar = fwd(params, x, k_eps)
    jax.block_until_ready((z, mu, logvar))

    assert z.shape == (2, dic['z_dim'], 2, 2), z.shape
    assert mu.shape == z.shape and logvar.shape == z.shape
    assert bool(jnp.all(jnp.isfinite(z)))
    assert bool(jnp.all(jnp.isfinite(mu)))
    assert bool(jnp.all(jnp.isfinite(logvar)))
    print("KERNEL_OK")
</pallas_src>

<mosaic_0001>
module attributes {stable_mosaic.version = 11 : i64} {
  func.func @_conv_mm_kernel(%arg0: i32, %arg1: i32, %arg2: i32, %arg3: memref<32x441xbf16, #tpu.memory_space<vmem>>, %arg4: memref<1x441x256xbf16, #tpu.memory_space<vmem>>, %arg5: memref<32x1xf32, #tpu.memory_space<vmem>>, %arg6: memref<1x32x256xf32, #tpu.memory_space<vmem>>, %arg7: memref<32x256xf32, #tpu.memory_space<vmem>>) attributes {dimension_semantics = [#tpu.dimension_semantics<parallel>, #tpu.dimension_semantics<parallel>, #tpu.dimension_semantics<arbitrary>], iteration_bounds = array<i64: 2, 1, 1>, scalar_prefetch = 0 : i64, scratch_operands = 1 : i64, tpu.core_type = #tpu.core_type<tc>, window_params = [{transform_indices = @transform_0, window_bounds = array<i64: 32, 441>}, {transform_indices = @transform_1, window_bounds = array<i64: 1, 441, 256>}, {pipeline_mode = #tpu.pipeline_mode<synchronous>, transform_indices = @transform_2, window_bounds = array<i64: 32, 1>}, {transform_indices = @transform_3, window_bounds = array<i64: 1, 32, 256>}]} {
    %c0_i32 = arith.constant 0 : i32
    %0 = arith.cmpi eq, %arg2, %c0_i32 : i32
    %1 = arith.extui %0 : i1 to i32
    %c0_i32_0 = arith.constant 0 : i32
    %2 = arith.cmpi ne, %1, %c0_i32_0 : i32
    scf.if %2 {
      %cst_11 = arith.constant 0.000000e+00 : f32
      %13 = vector.broadcast %cst_11 : f32 to vector<32x256xf32>
      %c0_12 = arith.constant 0 : index
      %c0_13 = arith.constant 0 : index
      %14 = vector.load %arg7[%c0_12, %c0_13] : memref<32x256xf32, #tpu.memory_space<vmem>>, vector<32x256xf32>
      tpu.vector_store %arg7[%c0_12, %c0_13], %13 {strides = array<i32>} : memref<32x256xf32, #tpu.memory_space<vmem>>, vector<32x256xf32>,
    } else {
    }
    %c0 = arith.constant 0 : index
    %c0_1 = arith.constant 0 : index
    %3 = vector.load %arg7[%c0, %c0_1] : memref<32x256xf32, #tpu.memory_space<vmem>>, vector<32x256xf32>
    %c0_2 = arith.constant 0 : index
    %c0_3 = arith.constant 0 : index
    %4 = vector.load %arg3[%c0_2, %c0_3] : memref<32x441xbf16, #tpu.memory_space<vmem>>, vector<32x441xbf16>
    %c0_4 = arith.constant 0 : index
    %c0_5 = arith.constant 0 : index
    %c0_6 = arith.constant 0 : index
    %5 = vector.load %arg4[%c0_4, %c0_5, %c0_6] : memref<1x441x256xbf16, #tpu.memory_space<vmem>>, vector<1x441x256xbf16>
    %6 = vector.shape_cast %5 : vector<1x441x256xbf16> to vector<441x256xbf16>
    %cst = arith.constant dense<0.000000e+00> : vector<32x256xf32>
    %7 = tpu.matmul %4, %6, %cst {dimension_numbers = #tpu.dot_dimension_numbers<[1], [0], [0], [1], [0, 0, 1, 1], [], []>} : vector<32x441xbf16>, vector<441x256xbf16>, vector<32x256xf32> -> vector<32x256xf32>
    %8 = arith.addf %3, %7 : vector<32x256xf32>
    %c0_7 = arith.constant 0 : index
    %c0_8 = arith.constant 0 : index
    %9 = vector.load %arg7[%c0_7, %c0_8] : memref<32x256xf32, #tpu.memory_space<vmem>>, vector<32x256xf32>
    tpu.vector_store %arg7[%c0_7, %c0_8], %8 {strides = array<i32>} : memref<32x256xf32, #tpu.memory_space<vmem>>, vector<32x256xf32>,
    %c0_i32_9 = arith.constant 0 : i32
    %10 = arith.cmpi eq, %arg2, %c0_i32_9 : i32
    %11 = arith.extui %10 : i1 to i32
    %c0_i32_10 = arith.constant 0 : i32
    %12 = arith.cmpi ne, %11, %c0_i32_10 : i32
    scf.if %12 {
      %c0_11 = arith.constant 0 : index
      %c0_12 = arith.constant 0 : index
      %13 = vector.load %arg7[%c0_11, %c0_12] : memref<32x256xf32, #tpu.memory_space<vmem>>, vector<32x256xf32>
      %c0_13 = arith.constant 0 : index
      %c0_14 = arith.constant 0 : index
      %14 = vector.load %arg5[%c0_13, %c0_14] : memref<32x1xf32, #tpu.memory_space<vmem>>, vector<32x1xf32>
      %15 = vector.broadcast %14 : vector<32x1xf32> to vector<32x256xf32>
      %16 = arith.addf %13, %15 : vector<32x256xf32>
      %c0_15 = arith.constant 0 : index
      %c0_16 = arith.constant 0 : index
      %c0_17 = arith.constant 0 : index
      %17 = vector.load %arg6[%c0_15, %c0_16, %c0_17] : memref<1x32x256xf32, #tpu.memory_space<vmem>>, vector<1x32x256xf32>
      %18 = vector.shape_cast %17 : vector<1x32x256xf32> to vector<32x256xf32>
      %19 = vector.shape_cast %16 : vector<32x256xf32> to vector<1x32x256xf32>
      tpu.vector_store %arg6[%c0_15, %c0_16, %c0_17], %19 {strides = array<i32>} : memref<1x32x256xf32, #tpu.memory_space<vmem>>, vector<1x32x256xf32>,
    } else {
    }
    return
  }
  func.func @transform_0(%arg0: i32, %arg1: i32, %arg2: i32) -> (i32, i32) {
    %c0_i32 = arith.constant 0 : i32
    %c0_i32_0 = arith.constant 0 : i32
    return %c0_i32, %arg2 : i32, i32
  }
  func.func @transform_1(%arg0: i32, %arg1: i32, %arg2: i32) -> (i32, i32, i32) {
    %c0_i32 = arith.constant 0 : i32
    return %arg0, %arg2, %arg1 : i32, i32, i32
  }
  func.func @transform_2(%arg0: i32, %arg1: i32, %arg2: i32) -> (i32, i32) {
    %c0_i32 = arith.constant 0 : i32
    %c0_i32_0 = arith.constant 0 : i32
    %c0_i32_1 = arith.constant 0 : i32
    return %c0_i32, %c0_i32_0 : i32, i32
  }
  func.func @transform_3(%arg0: i32, %arg1: i32, %arg2: i32) -> (i32, i32, i32) {
    %c0_i32 = arith.constant 0 : i32
    %c0_i32_0 = arith.constant 0 : i32
    return %arg0, %c0_i32, %arg1 : i32, i32, i32
  }
}

module attributes {stable_mosaic.version = 11 : i64} {
  func.func @_gn_kernel(%arg0: i32, %arg1: memref<1x16x512xf32, #tpu.memory_space<vmem>>, %arg2: memref<16x512xf32, #tpu.memory_space<vmem>>, %arg3: memref<16x512xf32, #tpu.memory_space<vmem>>, %arg4: memref<1x16x512xf32, #tpu.memory_space<vmem>>) attributes {dimension_semantics = [#tpu.dimension_semantics<parallel>], iteration_bounds = array<i64: 2>, scalar_prefetch = 0 : i64, scratch_operands = 0 : i64, tpu.core_type = #tpu.core_type<tc>, window_params = [{transform_indices = @transform_0, window_bounds = array<i64: 1, 16, 512>}, {pipeline_mode = #tpu.pipeline_mode<synchronous>, transform_indices = @transform_1, window_bounds = array<i64: 16, 512>}, {pipeline_mode = #tpu.pipeline_mode<synchronous>, transform_indices = @transform_2, window_bounds = array<i64: 16, 512>}, {transform_indices = @transform_3, window_bounds = array<i64: 1, 16, 512>}]} {
    %c0 = arith.constant 0 : index
    %c0_0 = arith.constant 0 : index
    %c0_1 = arith.constant 0 : index
    %0 = vector.load %arg1[%c0, %c0_0, %c0_1] : memref<1x16x512xf32, #tpu.memory_space<vmem>>, vector<1x16x512xf32>
    %1 = vector.shape_cast %0 : vector<1x16x512xf32> to vector<16x512xf32>
    %c0_2 = arith.constant 0 : index
    %c0_3 = arith.constant 0 : index
    %2 = vector.load %arg2[%c0_2, %c0_3] : memref<16x512xf32, #tpu.memory_space<vmem>>, vector<16x512xf32>
    %c0_4 = arith.constant 0 : index
    %c0_5 = arith.constant 0 : index
    %3 = vector.load %arg3[%c0_4, %c0_5] : memref<16x512xf32, #tpu.memory_space<vmem>>, vector<16x512xf32>
    %cst = arith.constant dense<0.000000e+00> : vector<16xf32>
    %4 = vector.multi_reduction <add>, %1, %cst [1] : vector<16x512xf32> to vector<16xf32>
    %5 = vector.shape_cast %4 : vector<16xf32> to vector<16x1xf32>
    %cst_6 = arith.constant 5.120000e+02 : f32
    %6 = vector.broadcast %cst_6 : f32 to vector<16x1xf32>
    %7 = arith.divf %5, %6 : vector<16x1xf32>
    %8 = arith.mulf %1, %1 : vector<16x512xf32>
    %cst_7 = arith.constant dense<0.000000e+00> : vector<16xf32>
    %9 = vector.multi_reduction <add>, %8, %cst_7 [1] : vector<16x512xf32> to vector<16xf32>
    %10 = vector.shape_cast %9 : vector<16xf32> to vector<16x1xf32>
    %cst_8 = arith.constant 5.120000e+02 : f32
    %11 = vector.broadcast %cst_8 : f32 to vector<16x1xf32>
    %12 = arith.divf %10, %11 : vector<16x1xf32>
    %13 = arith.mulf %7, %7 : vector<16x1xf32>
    %14 = arith.subf %12, %13 : vector<16x1xf32>
    %cst_9 = arith.constant 0.000000e+00 : f32
    %15 = vector.broadcast %cst_9 : f32 to vector<16x1xf32>
    %16 = arith.maximumf %14, %15 : vector<16x1xf32>
    %cst_10 = arith.constant 9.99999974E-6 : f32
    %17 = vector.broadcast %cst_10 : f32 to vector<16x1xf32>
    %18 = arith.addf %16, %17 : vector<16x1xf32>
    %19 = math.rsqrt %18 : vector<16x1xf32>
    %20 = vector.broadcast %7 : vector<16x1xf32> to vector<16x512xf32>
    %21 = arith.subf %1, %20 : vector<16x512xf32>
    %22 = vector.broadcast %19 : vector<16x1xf32> to vector<16x512xf32>
    %23 = arith.mulf %21, %22 : vector<16x512xf32>
    %24 = arith.mulf %23, %2 : vector<16x512xf32>
    %25 = arith.addf %24, %3 : vector<16x512xf32>
    %cst_11 = arith.constant 0.000000e+00 : f32
    %26 = vector.broadcast %cst_11 : f32 to vector<16x512xf32>
    %27 = arith.maximumf %25, %26 : vector<16x512xf32>
    %c0_12 = arith.constant 0 : index
    %c0_13 = arith.constant 0 : index
    %c0_14 = arith.constant 0 : index
    %28 = vector.load %arg4[%c0_12, %c0_13, %c0_14] : memref<1x16x512xf32, #tpu.memory_space<vmem>>, vector<1x16x512xf32>
    %29 = vector.shape_cast %28 : vector<1x16x512xf32> to vector<16x512xf32>
    %30 = vector.shape_cast %27 : vector<16x512xf32> to vector<1x16x512xf32>
    tpu.vector_store %arg4[%c0_12, %c0_13, %c0_14], %30 {strides = array<i32>} : memref<1x16x512xf32, #tpu.memory_space<vmem>>, vector<1x16x512xf32>,
    return
  }
  func.func @transform_0(%arg0: i32) -> (i32, i32, i32) {
    %c0_i32 = arith.constant 0 : i32
    %c0_i32_0 = arith.constant 0 : i32
    %c0_i32_1 = arith.constant 0 : i32
    return %arg0, %c0_i32, %c0_i32_0 : i32, i32, i32
  }
  func.func @transform_1(%arg0: i32) -> (i32, i32) {
    %c0_i32 = arith.constant 0 : i32
    %c0_i32_0 = arith.constant 0 : i32
    %c0_i32_1 = arith.constant 0 : i32
    return %c0_i32, %c0_i32_0 : i32, i32
  }
  func.func @transform_2(%arg0: i32) -> (i32, i32) {
    %c0_i32 = arith.constant 0 : i32
    %c0_i32_0 = arith.constant 0 : i32
    %c0_i32_1 = arith.constant 0 : i32
    return %c0_i32, %c0_i32_0 : i32, i32
  }
  func.func @transform_3(%arg0: i32) -> (i32, i32, i32) {
    %c0_i32 = arith.constant 0 : i32
    %c0_i32_0 = arith.constant 0 : i32
    %c0_i32_1 = arith.constant 0 : i32
    return %arg0, %c0_i32, %c0_i32_0 : i32, i32, i32
  }
}

module attributes {stable_mosaic.version = 11 : i64} {
  func.func @_conv_mm_kernel(%arg0: i32, %arg1: i32, %arg2: i32, %arg3: memref<32x864xbf16, #tpu.memory_space<vmem>>, %arg4: memref<1x864x256xbf16, #tpu.memory_space<vmem>>, %arg5: memref<32x1xf32, #tpu.memory_space<vmem>>, %arg6: memref<1x32x256xf32, #tpu.memory_space<vmem>>, %arg7: memref<32x256xf32, #tpu.memory_space<vmem>>) attributes {dimension_semantics = [#tpu.dimension_semantics<parallel>, #tpu.dimension_semantics<parallel>, #tpu.dimension_semantics<arbitrary>], iteration_bounds = array<i64: 2, 1, 1>, scalar_prefetch = 0 : i64, scratch_operands = 1 : i64, tpu.core_type = #tpu.core_type<tc>, window_params = [{transform_indices = @transform_0, window_bounds = array<i64: 32, 864>}, {transform_indices = @transform_1, window_bounds = array<i64: 1, 864, 256>}, {pipeline_mode = #tpu.pipeline_mode<synchronous>, transform_indices = @transform_2, window_bounds = array<i64: 32, 1>}, {transform_indices = @transform_3, window_bounds = array<i64: 1, 32, 256>}]} {
    %c0_i32 = arith.constant 0 : i32
    %0 = arith.cmpi eq, %arg2, %c0_i32 : i32
    %1 = arith.extui %0 : i1 to i32
    %c0_i32_0 = arith.constant 0 : i32
    %2 = arith.cmpi ne, %1, %c0_i32_0 : i32
    scf.if %2 {
      %cst_11 = arith.constant 0.000000e+00 : f32
      %13 = vector.broadcast %cst_11 : f32 to vector<32x256xf32>
      %c0_12 = arith.constant 0 : index
      %c0_13 = arith.constant 0 : index
      %14 = vector.load %arg7[%c0_12, %c0_13] : memref<32x256xf32, #tpu.memory_space<vmem>>, vector<32x256xf32>
      tpu.vector_store %arg7[%c0_12, %c0_13], %13 {strides = array<i32>} : memref<32x256xf32, #tpu.memory_space<vmem>>, vector<32x256xf32>,
    } else {
    }
    %c0 = arith.constant 0 : index
    %c0_1 = arith.constant 0 : index
    %3 = vector.load %arg7[%c0, %c0_1] : memref<32x256xf32, #tpu.memory_space<vmem>>, vector<32x256xf32>
    %c0_2 = arith.constant 0 : index
    %c0_3 = arith.constant 0 : index
    %4 = vector.load %arg3[%c0_2, %c0_3] : memref<32x864xbf16, #tpu.memory_space<vmem>>, vector<32x864xbf16>
    %c0_4 = arith.constant 0 : index
    %c0_5 = arith.constant 0 : index
    %c0_6 = arith.constant 0 : index
    %5 = vector.load %arg4[%c0_4, %c0_5, %c0_6] : memref<1x864x256xbf16, #tpu.memory_space<vmem>>, vector<1x864x256xbf16>
    %6 = vector.shape_cast %5 : vector<1x864x256xbf16> to vector<864x256xbf16>
    %cst = arith.constant dense<0.000000e+00> : vector<32x256xf32>
    %7 = tpu.matmul %4, %6, %cst {dimension_numbers = #tpu.dot_dimension_numbers<[1], [0], [0], [1], [0, 0, 1, 1], [], []>} : vector<32x864xbf16>, vector<864x256xbf16>, vector<32x256xf32> -> vector<32x256xf32>
    %8 = arith.addf %3, %7 : vector<32x256xf32>
    %c0_7 = arith.constant 0 : index
    %c0_8 = arith.constant 0 : index
    %9 = vector.load %arg7[%c0_7, %c0_8] : memref<32x256xf32, #tpu.memory_space<vmem>>, vector<32x256xf32>
    tpu.vector_store %arg7[%c0_7, %c0_8], %8 {strides = array<i32>} : memref<32x256xf32, #tpu.memory_space<vmem>>, vector<32x256xf32>,
    %c0_i32_9 = arith.constant 0 : i32
    %10 = arith.cmpi eq, %arg2, %c0_i32_9 : i32
    %11 = arith.extui %10 : i1 to i32
    %c0_i32_10 = arith.constant 0 : i32
    %12 = arith.cmpi ne, %11, %c0_i32_10 : i32
    scf.if %12 {
      %c0_11 = arith.constant 0 : index
      %c0_12 = arith.constant 0 : index
      %13 = vector.load %arg7[%c0_11, %c0_12] : memref<32x256xf32, #tpu.memory_space<vmem>>, vector<32x256xf32>
      %c0_13 = arith.constant 0 : index
      %c0_14 = arith.constant 0 : index
      %14 = vector.load %arg5[%c0_13, %c0_14] : memref<32x1xf32, #tpu.memory_space<vmem>>, vector<32x1xf32>
      %15 = vector.broadcast %14 : vector<32x1xf32> to vector<32x256xf32>
      %16 = arith.addf %13, %15 : vector<32x256xf32>
      %c0_15 = arith.constant 0 : index
      %c0_16 = arith.constant 0 : index
      %c0_17 = arith.constant 0 : index
      %17 = vector.load %arg6[%c0_15, %c0_16, %c0_17] : memref<1x32x256xf32, #tpu.memory_space<vmem>>, vector<1x32x256xf32>
      %18 = vector.shape_cast %17 : vector<1x32x256xf32> to vector<32x256xf32>
      %19 = vector.shape_cast %16 : vector<32x256xf32> to vector<1x32x256xf32>
      tpu.vector_store %arg6[%c0_15, %c0_16, %c0_17], %19 {strides = array<i32>} : memref<1x32x256xf32, #tpu.memory_space<vmem>>, vector<1x32x256xf32>,
    } else {
    }
    return
  }
  func.func @transform_0(%arg0: i32, %arg1: i32, %arg2: i32) -> (i32, i32) {
    %c0_i32 = arith.constant 0 : i32
    %c0_i32_0 = arith.constant 0 : i32
    return %c0_i32, %arg2 : i32, i32
  }
  func.func @transform_1(%arg0: i32, %arg1: i32, %arg2: i32) -> (i32, i32, i32) {
    %c0_i32 = arith.constant 0 : i32
    return %arg0, %arg2, %arg1 : i32, i32, i32
  }
  func.func @transform_2(%arg0: i32, %arg1: i32, %arg2: i32) -> (i32, i32) {
    %c0_i32 = arith.constant 0 : i32
    %c0_i32_0 = arith.constant 0 : i32
    %c0_i32_1 = arith.constant 0 : i32
    return %c0_i32, %c0_i32_0 : i32, i32
  }
  func.func @transform_3(%arg0: i32, %arg1: i32, %arg2: i32) -> (i32, i32, i32) {
    %c0_i32 = arith.constant 0 : i32
    %c0_i32_0 = arith.constant 0 : i32
    return %arg0, %c0_i32, %arg1 : i32, i32, i32
  }
}

module attributes {stable_mosaic.version = 11 : i64} {
  func.func @_gn_res_kernel(%arg0: i32, %arg1: memref<1x16x512xf32, #tpu.memory_space<vmem>>, %arg2: memref<1x16x512xf32, #tpu.memory_space<vmem>>, %arg3: memref<16x512xf32, #tpu.memory_space<vmem>>, %arg4: memref<16x512xf32, #tpu.memory_space<vmem>>, %arg5: memref<1x16x512xf32, #tpu.memory_space<vmem>>) attributes {dimension_semantics = [#tpu.dimension_semantics<parallel>], iteration_bounds = array<i64: 2>, scalar_prefetch = 0 : i64, scratch_operands = 0 : i64, tpu.core_type = #tpu.core_type<tc>, window_params = [{transform_indices = @transform_0, window_bounds = array<i64: 1, 16, 512>}, {transform_indices = @transform_1, window_bounds = array<i64: 1, 16, 512>}, {pipeline_mode = #tpu.pipeline_mode<synchronous>, transform_indices = @transform_2, window_bounds = array<i64: 16, 512>}, {pipeline_mode = #tpu.pipeline_mode<synchronous>, transform_indices = @transform_3, window_bounds = array<i64: 16, 512>}, {transform_indices = @transform_4, window_bounds = array<i64: 1, 16, 512>}]} {
    %c0 = arith.constant 0 : index
    %c0_0 = arith.constant 0 : index
    %c0_1 = arith.constant 0 : index
    %0 = vector.load %arg1[%c0, %c0_0, %c0_1] : memref<1x16x512xf32, #tpu.memory_space<vmem>>, vector<1x16x512xf32>
    %1 = vector.shape_cast %0 : vector<1x16x512xf32> to vector<16x512xf32>
    %c0_2 = arith.constant 0 : index
    %c0_3 = arith.constant 0 : index
    %2 = vector.load %arg3[%c0_2, %c0_3] : memref<16x512xf32, #tpu.memory_space<vmem>>, vector<16x512xf32>
    %c0_4 = arith.constant 0 : index
    %c0_5 = arith.constant 0 : index
    %3 = vector.load %arg4[%c0_4, %c0_5] : memref<16x512xf32, #tpu.memory_space<vmem>>, vector<16x512xf32>
    %cst = arith.constant dense<0.000000e+00> : vector<16xf32>
    %4 = vector.multi_reduction <add>, %1, %cst [1] : vector<16x512xf32> to vector<16xf32>
    %5 = vector.shape_cast %4 : vector<16xf32> to vector<16x1xf32>
    %cst_6 = arith.constant 5.120000e+02 : f32
    %6 = vector.broadcast %cst_6 : f32 to vector<16x1xf32>
    %7 = arith.divf %5, %6 : vector<16x1xf32>
    %8 = arith.mulf %1, %1 : vector<16x512xf32>
    %cst_7 = arith.constant dense<0.000000e+00> : vector<16xf32>
    %9 = vector.multi_reduction <add>, %8, %cst_7 [1] : vector<16x512xf32> to vector<16xf32>
    %10 = vector.shape_cast %9 : vector<16xf32> to vector<16x1xf32>
    %cst_8 = arith.constant 5.120000e+02 : f32
    %11 = vector.broadcast %cst_8 : f32 to vector<16x1xf32>
    %12 = arith.divf %10, %11 : vector<16x1xf32>
    %13 = arith.mulf %7, %7 : vector<16x1xf32>
    %14 = arith.subf %12, %13 : vector<16x1xf32>
    %cst_9 = arith.constant 0.000000e+00 : f32
    %15 = vector.broadcast %cst_9 : f32 to vector<16x1xf32>
    %16 = arith.maximumf %14, %15 : vector<16x1xf32>
    %cst_10 = arith.constant 9.99999974E-6 : f32
    %17 = vector.broadcast %cst_10 : f32 to vector<16x1xf32>
    %18 = arith.addf %16, %17 : vector<16x1xf32>
    %19 = math.rsqrt %18 : vector<16x1xf32>
    %20 = vector.broadcast %7 : vector<16x1xf32> to vector<16x512xf32>
    %21 = arith.subf %1, %20 : vector<16x512xf32>
    %22 = vector.broadcast %19 : vector<16x1xf32> to vector<16x512xf32>
    %23 = arith.mulf %21, %22 : vector<16x512xf32>
    %24 = arith.mulf %23, %2 : vector<16x512xf32>
    %25 = arith.addf %24, %3 : vector<16x512xf32>
    %c0_11 = arith.constant 0 : index
    %c0_12 = arith.constant 0 : index
    %c0_13 = arith.constant 0 : index
    %26 = vector.load %arg2[%c0_11, %c0_12, %c0_13] : memref<1x16x512xf32, #tpu.memory_space<vmem>>, vector<1x16x512xf32>
    %27 = vector.shape_cast %26 : vector<1x16x512xf32> to vector<16x512xf32>
    %28 = arith.addf %25, %27 : vector<16x512xf32>
    %cst_14 = arith.constant 0.000000e+00 : f32
    %29 = vector.broadcast %cst_14 : f32 to vector<16x512xf32>
    %30 = arith.maximumf %28, %29 : vector<16x512xf32>
    %c0_15 = arith.constant 0 : index
    %c0_16 = arith.constant 0 : index
    %c0_17 = arith.constant 0 : index
    %31 = vector.load %arg5[%c0_15, %c0_16, %c0_17] : memref<1x16x512xf32, #tpu.memory_space<vmem>>, vector<1x16x512xf32>
    %32 = vector.shape_cast %31 : vector<1x16x512xf32> to vector<16x512xf32>
    %33 = vector.shape_cast %30 : vector<16x512xf32> to vector<1x16x512xf32>
    tpu.vector_store %arg5[%c0_15, %c0_16, %c0_17], %33 {strides = array<i32>} : memref<1x16x512xf32, #tpu.memory_space<vmem>>, vector<1x16x512xf32>,
    return
  }
  func.func @transform_0(%arg0: i32) -> (i32, i32, i32) {
    %c0_i32 = arith.constant 0 : i32
    %c0_i32_0 = arith.constant 0 : i32
    %c0_i32_1 = arith.constant 0 : i32
    return %arg0, %c0_i32, %c0_i32_0 : i32, i32, i32
  }
  func.func @transform_1(%arg0: i32) -> (i32, i32, i32) {
    %c0_i32 = arith.constant 0 : i32
    %c0_i32_0 = arith.constant 0 : i32
    %c0_i32_1 = arith.constant 0 : i32
    return %arg0, %c0_i32, %c0_i32_0 : i32, i32, i32
  }
  func.func @transform_2(%arg0: i32) -> (i32, i32) {
    %c0_i32 = arith.constant 0 : i32
    %c0_i32_0 = arith.constant 0 : i32
    %c0_i32_1 = arith.constant 0 : i32
    return %c0_i32, %c0_i32_0 : i32, i32
  }
  func.func @transform_3(%arg0: i32) -> (i32, i32) {
    %c0_i32 = arith.constant 0 : i32
    %c0_i32_0 = arith.constant 0 : i32
    %c0_i32_1 = arith.constant 0 : i32
    return %c0_i32, %c0_i32_0 : i32, i32
  }
  func.func @transform_4(%arg0: i32) -> (i32, i32, i32) {
    %c0_i32 = arith.constant 0 : i32
    %c0_i32_0 = arith.constant 0 : i32
    %c0_i32_1 = arith.constant 0 : i32
    return %arg0, %c0_i32, %c0_i32_0 : i32, i32, i32
  }
}

module attributes {stable_mosaic.version = 11 : i64} {
  func.func @_conv_mm_kernel(%arg0: i32, %arg1: i32, %arg2: i32, %arg3: memref<32x864xbf16, #tpu.memory_space<vmem>>, %arg4: memref<1x864x32xbf16, #tpu.memory_space<vmem>>, %arg5: memref<32x1xf32, #tpu.memory_space<vmem>>, %arg6: memref<1x32x32xf32, #tpu.memory_space<vmem>>, %arg7: memref<32x32xf32, #tpu.memory_space<vmem>>) attributes {dimension_semantics = [#tpu.dimension_semantics<parallel>, #tpu.dimension_semantics<parallel>, #tpu.dimension_semantics<arbitrary>], iteration_bounds = array<i64: 2, 1, 1>, scalar_prefetch = 0 : i64, scratch_operands = 1 : i64, tpu.core_type = #tpu.core_type<tc>, window_params = [{transform_indices = @transform_0, window_bounds = array<i64: 32, 864>}, {transform_indices = @transform_1, window_bounds = array<i64: 1, 864, 32>}, {pipeline_mode = #tpu.pipeline_mode<synchronous>, transform_indices = @transform_2, window_bounds = array<i64: 32, 1>}, {transform_indices = @transform_3, window_bounds = array<i64: 1, 32, 32>}]} {
    %c0_i32 = arith.constant 0 : i32
    %0 = arith.cmpi eq, %arg2, %c0_i32 : i32
    %1 = arith.extui %0 : i1 to i32
    %c0_i32_0 = arith.constant 0 : i32
    %2 = arith.cmpi ne, %1, %c0_i32_0 : i32
    scf.if %2 {
      %cst_11 = arith.constant 0.000000e+00 : f32
      %13 = vector.broadcast %cst_11 : f32 to vector<32x32xf32>
      %c0_12 = arith.constant 0 : index
      %c0_13 = arith.constant 0 : index
      %14 = vector.load %arg7[%c0_12, %c0_13] : memref<32x32xf32, #tpu.memory_space<vmem>>, vector<32x32xf32>
      tpu.vector_store %arg7[%c0_12, %c0_13], %13 {strides = array<i32>} : memref<32x32xf32, #tpu.memory_space<vmem>>, vector<32x32xf32>,
    } else {
    }
    %c0 = arith.constant 0 : index
    %c0_1 = arith.constant 0 : index
    %3 = vector.load %arg7[%c0, %c0_1] : memref<32x32xf32, #tpu.memory_space<vmem>>, vector<32x32xf32>
    %c0_2 = arith.constant 0 : index
    %c0_3 = arith.constant 0 : index
    %4 = vector.load %arg3[%c0_2, %c0_3] : memref<32x864xbf16, #tpu.memory_space<vmem>>, vector<32x864xbf16>
    %c0_4 = arith.constant 0 : index
    %c0_5 = arith.constant 0 : index
    %c0_6 = arith.constant 0 : index
    %5 = vector.load %arg4[%c0_4, %c0_5, %c0_6] : memref<1x864x32xbf16, #tpu.memory_space<vmem>>, vector<1x864x32xbf16>
    %6 = vector.shape_cast %5 : vector<1x864x32xbf16> to vector<864x32xbf16>
    %cst = arith.constant dense<0.000000e+00> : vector<32x32xf32>
    %7 = tpu.matmul %4, %6, %cst {dimension_numbers = #tpu.dot_dimension_numbers<[1], [0], [0], [1], [0, 0, 1, 1], [], []>} : vector<32x864xbf16>, vector<864x32xbf16>, vector<32x32xf32> -> vector<32x32xf32>
    %8 = arith.addf %3, %7 : vector<32x32xf32>
    %c0_7 = arith.constant 0 : index
    %c0_8 = arith.constant 0 : index
    %9 = vector.load %arg7[%c0_7, %c0_8] : memref<32x32xf32, #tpu.memory_space<vmem>>, vector<32x32xf32>
    tpu.vector_store %arg7[%c0_7, %c0_8], %8 {strides = array<i32>} : memref<32x32xf32, #tpu.memory_space<vmem>>, vector<32x32xf32>,
    %c0_i32_9 = arith.constant 0 : i32
    %10 = arith.cmpi eq, %arg2, %c0_i32_9 : i32
    %11 = arith.extui %10 : i1 to i32
    %c0_i32_10 = arith.constant 0 : i32
    %12 = arith.cmpi ne, %11, %c0_i32_10 : i32
    scf.if %12 {
      %c0_11 = arith.constant 0 : index
      %c0_12 = arith.constant 0 : index
      %13 = vector.load %arg7[%c0_11, %c0_12] : memref<32x32xf32, #tpu.memory_space<vmem>>, vector<32x32xf32>
      %c0_13 = arith.constant 0 : index
      %c0_14 = arith.constant 0 : index
      %14 = vector.load %arg5[%c0_13, %c0_14] : memref<32x1xf32, #tpu.memory_space<vmem>>, vector<32x1xf32>
      %15 = vector.broadcast %14 : vector<32x1xf32> to vector<32x32xf32>
      %16 = arith.addf %13, %15 : vector<32x32xf32>
      %c0_15 = arith.constant 0 : index
      %c0_16 = arith.constant 0 : index
      %c0_17 = arith.constant 0 : index
      %17 = vector.load %arg6[%c0_15, %c0_16, %c0_17] : memref<1x32x32xf32, #tpu.memory_space<vmem>>, vector<1x32x32xf32>
      %18 = vector.shape_cast %17 : vector<1x32x32xf32> to vector<32x32xf32>
      %19 = vector.shape_cast %16 : vector<32x32xf32> to vector<1x32x32xf32>
      tpu.vector_store %arg6[%c0_15, %c0_16, %c0_17], %19 {strides = array<i32>} : memref<1x32x32xf32, #tpu.memory_space<vmem>>, vector<1x32x32xf32>,
    } else {
    }
    return
  }
  func.func @transform_0(%arg0: i32, %arg1: i32, %arg2: i32) -> (i32, i32) {
    %c0_i32 = arith.constant 0 : i32
    %c0_i32_0 = arith.constant 0 : i32
    return %c0_i32, %arg2 : i32, i32
  }
  func.func @transform_1(%arg0: i32, %arg1: i32, %arg2: i32) -> (i32, i32, i32) {
    %c0_i32 = arith.constant 0 : i32
    return %arg0, %arg2, %arg1 : i32, i32, i32
  }
  func.func @transform_2(%arg0: i32, %arg1: i32, %arg2: i32) -> (i32, i32) {
    %c0_i32 = arith.constant 0 : i32
    %c0_i32_0 = arith.constant 0 : i32
    %c0_i32_1 = arith.constant 0 : i32
    return %c0_i32, %c0_i32_0 : i32, i32
  }
  func.func @transform_3(%arg0: i32, %arg1: i32, %arg2: i32) -> (i32, i32, i32) {
    %c0_i32 = arith.constant 0 : i32
    %c0_i32_0 = arith.constant 0 : i32
    return %arg0, %c0_i32, %arg1 : i32, i32, i32
  }
}

module attributes {stable_mosaic.version = 11 : i64} {
  func.func @_gn_kernel(%arg0: i32, %arg1: memref<1x16x64xf32, #tpu.memory_space<vmem>>, %arg2: memref<16x64xf32, #tpu.memory_space<vmem>>, %arg3: memref<16x64xf32, #tpu.memory_space<vmem>>, %arg4: memref<1x16x64xf32, #tpu.memory_space<vmem>>) attributes {dimension_semantics = [#tpu.dimension_semantics<parallel>], iteration_bounds = array<i64: 2>, scalar_prefetch = 0 : i64, scratch_operands = 0 : i64, tpu.core_type = #tpu.core_type<tc>, window_params = [{transform_indices = @transform_0, window_bounds = array<i64: 1, 16, 64>}, {pipeline_mode = #tpu.pipeline_mode<synchronous>, transform_indices = @transform_1, window_bounds = array<i64: 16, 64>}, {pipeline_mode = #tpu.pipeline_mode<synchronous>, transform_indices = @transform_2, window_bounds = array<i64: 16, 64>}, {transform_indices = @transform_3, window_bounds = array<i64: 1, 16, 64>}]} {
    %c0 = arith.constant 0 : index
    %c0_0 = arith.constant 0 : index
    %c0_1 = arith.constant 0 : index
    %0 = vector.load %arg1[%c0, %c0_0, %c0_1] : memref<1x16x64xf32, #tpu.memory_space<vmem>>, vector<1x16x64xf32>
    %1 = vector.shape_cast %0 : vector<1x16x64xf32> to vector<16x64xf32>
    %c0_2 = arith.constant 0 : index
    %c0_3 = arith.constant 0 : index
    %2 = vector.load %arg2[%c0_2, %c0_3] : memref<16x64xf32, #tpu.memory_space<vmem>>, vector<16x64xf32>
    %c0_4 = arith.constant 0 : index
    %c0_5 = arith.constant 0 : index
    %3 = vector.load %arg3[%c0_4, %c0_5] : memref<16x64xf32, #tpu.memory_space<vmem>>, vector<16x64xf32>
    %cst = arith.constant dense<0.000000e+00> : vector<16xf32>
    %4 = vector.multi_reduction <add>, %1, %cst [1] : vector<16x64xf32> to vector<16xf32>
    %5 = vector.shape_cast %4 : vector<16xf32> to vector<16x1xf32>
    %cst_6 = arith.constant 6.400000e+01 : f32
    %6 = vector.broadcast %cst_6 : f32 to vector<16x1xf32>
    %7 = arith.divf %5, %6 : vector<16x1xf32>
    %8 = arith.mulf %1, %1 : vector<16x64xf32>
    %cst_7 = arith.constant dense<0.000000e+00> : vector<16xf32>
    %9 = vector.multi_reduction <add>, %8, %cst_7 [1] : vector<16x64xf32> to vector<16xf32>
    %10 = vector.shape_cast %9 : vector<16xf32> to vector<16x1xf32>
    %cst_8 = arith.constant 6.400000e+01 : f32
    %11 = vector.broadcast %cst_8 : f32 to vector<16x1xf32>
    %12 = arith.divf %10, %11 : vector<16x1xf32>
    %13 = arith.mulf %7, %7 : vector<16x1xf32>
    %14 = arith.subf %12, %13 : vector<16x1xf32>
    %cst_9 = arith.constant 0.000000e+00 : f32
    %15 = vector.broadcast %cst_9 : f32 to vector<16x1xf32>
    %16 = arith.maximumf %14, %15 : vector<16x1xf32>
    %cst_10 = arith.constant 9.99999974E-6 : f32
    %17 = vector.broadcast %cst_10 : f32 to vector<16x1xf32>
    %18 = arith.addf %16, %17 : vector<16x1xf32>
    %19 = math.rsqrt %18 : vector<16x1xf32>
    %20 = vector.broadcast %7 : vector<16x1xf32> to vector<16x64xf32>
    %21 = arith.subf %1, %20 : vector<16x64xf32>
    %22 = vector.broadcast %19 : vector<16x1xf32> to vector<16x64xf32>
    %23 = arith.mulf %21, %22 : vector<16x64xf32>
    %24 = arith.mulf %23, %2 : vector<16x64xf32>
    %25 = arith.addf %24, %3 : vector<16x64xf32>
    %cst_11 = arith.constant 0.000000e+00 : f32
    %26 = vector.broadcast %cst_11 : f32 to vector<16x64xf32>
    %27 = arith.maximumf %25, %26 : vector<16x64xf32>
    %c0_12 = arith.constant 0 : index
    %c0_13 = arith.constant 0 : index
    %c0_14 = arith.constant 0 : index
    %28 = vector.load %arg4[%c0_12, %c0_13, %c0_14] : memref<1x16x64xf32, #tpu.memory_space<vmem>>, vector<1x16x64xf32>
    %29 = vector.shape_cast %28 : vector<1x16x64xf32> to vector<16x64xf32>
    %30 = vector.shape_cast %27 : vector<16x64xf32> to vector<1x16x64xf32>
    tpu.vector_store %arg4[%c0_12, %c0_13, %c0_14], %30 {strides = array<i32>} : memref<1x16x64xf32, #tpu.memory_space<vmem>>, vector<1x16x64xf32>,
    return
  }
  func.func @transform_0(%arg0: i32) -> (i32, i32, i32) {
    %c0_i32 = arith.constant 0 : i32
    %c0_i32_0 = arith.constant 0 : i32
    %c0_i32_1 = arith.constant 0 : i32
    return %arg0, %c0_i32, %c0_i32_0 : i32, i32, i32
  }
  func.func @transform_1(%arg0: i32) -> (i32, i32) {
    %c0_i32 = arith.constant 0 : i32
    %c0_i32_0 = arith.constant 0 : i32
    %c0_i32_1 = arith.constant 0 : i32
    return %c0_i32, %c0_i32_0 : i32, i32
  }
  func.func @transform_2(%arg0: i32) -> (i32, i32) {
    %c0_i32 = arith.constant 0 : i32
    %c0_i32_0 = arith.constant 0 : i32
    %c0_i32_1 = arith.constant 0 : i32
    return %c0_i32, %c0_i32_0 : i32, i32
  }
  func.func @transform_3(%arg0: i32) -> (i32, i32, i32) {
    %c0_i32 = arith.constant 0 : i32
    %c0_i32_0 = arith.constant 0 : i32
    %c0_i32_1 = arith.constant 0 : i32
    return %arg0, %c0_i32, %c0_i32_0 : i32, i32, i32
  }
}

module attributes {stable_mosaic.version = 11 : i64} {
  func.func @_conv_mm_kernel(%arg0: i32, %arg1: i32, %arg2: i32, %arg3: memref<32x32xbf16, #tpu.memory_space<vmem>>, %arg4: memref<1x32x32xbf16, #tpu.memory_space<vmem>>, %arg5: memref<32x1xf32, #tpu.memory_space<vmem>>, %arg6: memref<1x32x32xf32, #tpu.memory_space<vmem>>, %arg7: memref<32x32xf32, #tpu.memory_space<vmem>>) attributes {dimension_semantics = [#tpu.dimension_semantics<parallel>, #tpu.dimension_semantics<parallel>, #tpu.dimension_semantics<arbitrary>], iteration_bounds = array<i64: 2, 1, 1>, scalar_prefetch = 0 : i64, scratch_operands = 1 : i64, tpu.core_type = #tpu.core_type<tc>, window_params = [{transform_indices = @transform_0, window_bounds = array<i64: 32, 32>}, {transform_indices = @transform_1, window_bounds = array<i64: 1, 32, 32>}, {pipeline_mode = #tpu.pipeline_mode<synchronous>, transform_indices = @transform_2, window_bounds = array<i64: 32, 1>}, {transform_indices = @transform_3, window_bounds = array<i64: 1, 32, 32>}]} {
    %c0_i32 = arith.constant 0 : i32
    %0 = arith.cmpi eq, %arg2, %c0_i32 : i32
    %1 = arith.extui %0 : i1 to i32
    %c0_i32_0 = arith.constant 0 : i32
    %2 = arith.cmpi ne, %1, %c0_i32_0 : i32
    scf.if %2 {
      %cst_11 = arith.constant 0.000000e+00 : f32
      %13 = vector.broadcast %cst_11 : f32 to vector<32x32xf32>
      %c0_12 = arith.constant 0 : index
      %c0_13 = arith.constant 0 : index
      %14 = vector.load %arg7[%c0_12, %c0_13] : memref<32x32xf32, #tpu.memory_space<vmem>>, vector<32x32xf32>
      tpu.vector_store %arg7[%c0_12, %c0_13], %13 {strides = array<i32>} : memref<32x32xf32, #tpu.memory_space<vmem>>, vector<32x32xf32>,
    } else {
    }
    %c0 = arith.constant 0 : index
    %c0_1 = arith.constant 0 : index
    %3 = vector.load %arg7[%c0, %c0_1] : memref<32x32xf32, #tpu.memory_space<vmem>>, vector<32x32xf32>
    %c0_2 = arith.constant 0 : index
    %c0_3 = arith.constant 0 : index
    %4 = vector.load %arg3[%c0_2, %c0_3] : memref<32x32xbf16, #tpu.memory_space<vmem>>, vector<32x32xbf16>
    %c0_4 = arith.constant 0 : index
    %c0_5 = arith.constant 0 : index
    %c0_6 = arith.constant 0 : index
    %5 = vector.load %arg4[%c0_4, %c0_5, %c0_6] : memref<1x32x32xbf16, #tpu.memory_space<vmem>>, vector<1x32x32xbf16>
    %6 = vector.shape_cast %5 : vector<1x32x32xbf16> to vector<32x32xbf16>
    %cst = arith.constant dense<0.000000e+00> : vector<32x32xf32>
    %7 = tpu.matmul %4, %6, %cst {dimension_numbers = #tpu.dot_dimension_numbers<[1], [0], [0], [1], [0, 0, 1, 1], [], []>} : vector<32x32xbf16>, vector<32x32xbf16>, vector<32x32xf32> -> vector<32x32xf32>
    %8 = arith.addf %3, %7 : vector<32x32xf32>
    %c0_7 = arith.constant 0 : index
    %c0_8 = arith.constant 0 : index
    %9 = vector.load %arg7[%c0_7, %c0_8] : memref<32x32xf32, #tpu.memory_space<vmem>>, vector<32x32xf32>
    tpu.vector_store %arg7[%c0_7, %c0_8], %8 {strides = array<i32>} : memref<32x32xf32, #tpu.memory_space<vmem>>, vector<32x32xf32>,
    %c0_i32_9 = arith.constant 0 : i32
    %10 = arith.cmpi eq, %arg2, %c0_i32_9 : i32
    %11 = arith.extui %10 : i1 to i32
    %c0_i32_10 = arith.constant 0 : i32
    %12 = arith.cmpi ne, %11, %c0_i32_10 : i32
    scf.if %12 {
      %c0_11 = arith.constant 0 : index
      %c0_12 = arith.constant 0 : index
      %13 = vector.load %arg7[%c0_11, %c0_12] : memref<32x32xf32, #tpu.memory_space<vmem>>, vector<32x32xf32>
      %c0_13 = arith.constant 0 : index
      %c0_14 = arith.constant 0 : index
      %14 = vector.load %arg5[%c0_13, %c0_14] : memref<32x1xf32, #tpu.memory_space<vmem>>, vector<32x1xf32>
      %15 = vector.broadcast %14 : vector<32x1xf32> to vector<32x32xf32>
      %16 = arith.addf %13, %15 : vector<32x32xf32>
      %c0_15 = arith.constant 0 : index
      %c0_16 = arith.constant 0 : index
      %c0_17 = arith.constant 0 : index
      %17 = vector.load %arg6[%c0_15, %c0_16, %c0_17] : memref<1x32x32xf32, #tpu.memory_space<vmem>>, vector<1x32x32xf32>
      %18 = vector.shape_cast %17 : vector<1x32x32xf32> to vector<32x32xf32>
      %19 = vector.shape_cast %16 : vector<32x32xf32> to vector<1x32x32xf32>
      tpu.vector_store %arg6[%c0_15, %c0_16, %c0_17], %19 {strides = array<i32>} : memref<1x32x32xf32, #tpu.memory_space<vmem>>, vector<1x32x32xf32>,
    } else {
    }
    return
  }
  func.func @transform_0(%arg0: i32, %arg1: i32, %arg2: i32) -> (i32, i32) {
    %c0_i32 = arith.constant 0 : i32
    %c0_i32_0 = arith.constant 0 : i32
    return %c0_i32, %arg2 : i32, i32
  }
  func.func @transform_1(%arg0: i32, %arg1: i32, %arg2: i32) -> (i32, i32, i32) {
    %c0_i32 = arith.constant 0 : i32
    return %arg0, %arg2, %arg1 : i32, i32, i32
  }
  func.func @transform_2(%arg0: i32, %arg1: i32, %arg2: i32) -> (i32, i32) {
    %c0_i32 = arith.constant 0 : i32
    %c0_i32_0 = arith.constant 0 : i32
    %c0_i32_1 = arith.constant 0 : i32
    return %c0_i32, %c0_i32_0 : i32, i32
  }
  func.func @transform_3(%arg0: i32, %arg1: i32, %arg2: i32) -> (i32, i32, i32) {
    %c0_i32 = arith.constant 0 : i32
    %c0_i32_0 = arith.constant 0 : i32
    return %arg0, %c0_i32, %arg1 : i32, i32, i32
  }
}

module attributes {stable_mosaic.version = 11 : i64} {
  func.func @_gn_dual_kernel(%arg0: i32, %arg1: memref<1x16x64xf32, #tpu.memory_space<vmem>>, %arg2: memref<1x16x64xf32, #tpu.memory_space<vmem>>, %arg3: memref<16x64xf32, #tpu.memory_space<vmem>>, %arg4: memref<16x64xf32, #tpu.memory_space<vmem>>, %arg5: memref<16x64xf32, #tpu.memory_space<vmem>>, %arg6: memref<16x64xf32, #tpu.memory_space<vmem>>, %arg7: memref<1x16x64xf32, #tpu.memory_space<vmem>>) attributes {dimension_semantics = [#tpu.dimension_semantics<parallel>], iteration_bounds = array<i64: 2>, scalar_prefetch = 0 : i64, scratch_operands = 0 : i64, tpu.core_type = #tpu.core_type<tc>, window_params = [{transform_indices = @transform_0, window_bounds = array<i64: 1, 16, 64>}, {transform_indices = @transform_1, window_bounds = array<i64: 1, 16, 64>}, {pipeline_mode = #tpu.pipeline_mode<synchronous>, transform_indices = @transform_2, window_bounds = array<i64: 16, 64>}, {pipeline_mode = #tpu.pipeline_mode<synchronous>, transform_indices = @transform_3, window_bounds = array<i64: 16, 64>}, {pipeline_mode = #tpu.pipeline_mode<synchronous>, transform_indices = @transform_4, window_bounds = array<i64: 16, 64>}, {pipeline_mode = #tpu.pipeline_mode<synchronous>, transform_indices = @transform_5, window_bounds = array<i64: 16, 64>}, {transform_indices = @transform_6, window_bounds = array<i64: 1, 16, 64>}]} {
    %c0 = arith.constant 0 : index
    %c0_0 = arith.constant 0 : index
    %c0_1 = arith.constant 0 : index
    %0 = vector.load %arg1[%c0, %c0_0, %c0_1] : memref<1x16x64xf32, #tpu.memory_space<vmem>>, vector<1x16x64xf32>
    %1 = vector.shape_cast %0 : vector<1x16x64xf32> to vector<16x64xf32>
    %c0_2 = arith.constant 0 : index
    %c0_3 = arith.constant 0 : index
    %2 = vector.load %arg3[%c0_2, %c0_3] : memref<16x64xf32, #tpu.memory_space<vmem>>, vector<16x64xf32>
    %c0_4 = arith.constant 0 : index
    %c0_5 = arith.constant 0 : index
    %3 = vector.load %arg4[%c0_4, %c0_5] : memref<16x64xf32, #tpu.memory_space<vmem>>, vector<16x64xf32>
    %cst = arith.constant dense<0.000000e+00> : vector<16xf32>
    %4 = vector.multi_reduction <add>, %1, %cst [1] : vector<16x64xf32> to vector<16xf32>
    %5 = vector.shape_cast %4 : vector<16xf32> to vector<16x1xf32>
    %cst_6 = arith.constant 6.400000e+01 : f32
    %6 = vector.broadcast %cst_6 : f32 to vector<16x1xf32>
    %7 = arith.divf %5, %6 : vector<16x1xf32>
    %8 = arith.mulf %1, %1 : vector<16x64xf32>
    %cst_7 = arith.constant dense<0.000000e+00> : vector<16xf32>
    %9 = vector.multi_reduction <add>, %8, %cst_7 [1] : vector<16x64xf32> to vector<16xf32>
    %10 = vector.shape_cast %9 : vector<16xf32> to vector<16x1xf32>
    %cst_8 = arith.constant 6.400000e+01 : f32
    %11 = vector.broadcast %cst_8 : f32 to vector<16x1xf32>
    %12 = arith.divf %10, %11 : vector<16x1xf32>
    %13 = arith.mulf %7, %7 : vector<16x1xf32>
    %14 = arith.subf %12, %13 : vector<16x1xf32>
    %cst_9 = arith.constant 0.000000e+00 : f32
    %15 = vector.broadcast %cst_9 : f32 to vector<16x1xf32>
    %16 = arith.maximumf %14, %15 : vector<16x1xf32>
    %cst_10 = arith.constant 9.99999974E-6 : f32
    %17 = vector.broadcast %cst_10 : f32 to vector<16x1xf32>
    %18 = arith.addf %16, %17 : vector<16x1xf32>
    %19 = math.rsqrt %18 : vector<16x1xf32>
    %20 = vector.broadcast %7 : vector<16x1xf32> to vector<16x64xf32>
    %21 = arith.subf %1, %20 : vector<16x64xf32>
    %22 = vector.broadcast %19 : vector<16x1xf32> to vector<16x64xf32>
    %23 = arith.mulf %21, %22 : vector<16x64xf32>
    %24 = arith.mulf %23, %2 : vector<16x64xf32>
    %25 = arith.addf %24, %3 : vector<16x64xf32>
    %c0_11 = arith.constant 0 : index
    %c0_12 = arith.constant 0 : index
    %c0_13 = arith.constant 0 : index
    %26 = vector.load %arg2[%c0_11, %c0_12, %c0_13] : memref<1x16x64xf32, #tpu.memory_space<vmem>>, vector<1x16x64xf32>
    %27 = vector.shape_cast %26 : vector<1x16x64xf32> to vector<16x64xf32>
    %c0_14 = arith.constant 0 : index
    %c0_15 = arith.constant 0 : index
    %28 = vector.load %arg5[%c0_14, %c0_15] : memref<16x64xf32, #tpu.memory_space<vmem>>, vector<16x64xf32>
    %c0_16 = arith.constant 0 : index
    %c0_17 = arith.constant 0 : index
    %29 = vector.load %arg6[%c0_16, %c0_17] : memref<16x64xf32, #tpu.memory_space<vmem>>, vector<16x64xf32>
    %cst_18 = arith.constant dense<0.000000e+00> : vector<16xf32>
    %30 = vector.multi_reduction <add>, %27, %cst_18 [1] : vector<16x64xf32> to vector<16xf32>
    %31 = vector.shape_cast %30 : vector<16xf32> to vector<16x1xf32>
    %cst_19 = arith.constant 6.400000e+01 : f32
    %32 = vector.broadcast %cst_19 : f32 to vector<16x1xf32>
    %33 = arith.divf %31, %32 : vector<16x1xf32>
    %34 = arith.mulf %27, %27 : vector<16x64xf32>
    %cst_20 = arith.constant dense<0.000000e+00> : vector<16xf32>
    %35 = vector.multi_reduction <add>, %34, %cst_20 [1] : vector<16x64xf32> to vector<16xf32>
    %36 = vector.shape_cast %35 : vector<16xf32> to vector<16x1xf32>
    %cst_21 = arith.constant 6.400000e+01 : f32
    %37 = vector.broadcast %cst_21 : f32 to vector<16x1xf32>
    %38 = arith.divf %36, %37 : vector<16x1xf32>
    %39 = arith.mulf %33, %33 : vector<16x1xf32>
    %40 = arith.subf %38, %39 : vector<16x1xf32>
    %cst_22 = arith.constant 0.000000e+00 : f32
    %41 = vector.broadcast %cst_22 : f32 to vector<16x1xf32>
    %42 = arith.maximumf %40, %41 : vector<16x1xf32>
    %cst_23 = arith.constant 9.99999974E-6 : f32
    %43 = vector.broadcast %cst_23 : f32 to vector<16x1xf32>
    %44 = arith.addf %42, %43 : vector<16x1xf32>
    %45 = math.rsqrt %44 : vector<16x1xf32>
    %46 = vector.broadcast %33 : vector<16x1xf32> to vector<16x64xf32>
    %47 = arith.subf %27, %46 : vector<16x64xf32>
    %48 = vector.broadcast %45 : vector<16x1xf32> to vector<16x64xf32>
    %49 = arith.mulf %47, %48 : vector<16x64xf32>
    %50 = arith.mulf %49, %28 : vector<16x64xf32>
    %51 = arith.addf %50, %29 : vector<16x64xf32>
    %52 = arith.addf %25, %51 : vector<16x64xf32>
    %cst_24 = arith.constant 0.000000e+00 : f32
    %53 = vector.broadcast %cst_24 : f32 to vector<16x64xf32>
    %54 = arith.maximumf %52, %53 : vector<16x64xf32>
    %c0_25 = arith.constant 0 : index
    %c0_26 = arith.constant 0 : index
    %c0_27 = arith.constant 0 : index
    %55 = vector.load %arg7[%c0_25, %c0_26, %c0_27] : memref<1x16x64xf32, #tpu.memory_space<vmem>>, vector<1x16x64xf32>
    %56 = vector.shape_cast %55 : vector<1x16x64xf32> to vector<16x64xf32>
    %57 = vector.shape_cast %54 : vector<16x64xf32> to vector<1x16x64xf32>
    tpu.vector_store %arg7[%c0_25, %c0_26, %c0_27], %57 {strides = array<i32>} : memref<1x16x64xf32, #tpu.memory_space<vmem>>, vector<1x16x64xf32>,
    return
  }
  func.func @transform_0(%arg0: i32) -> (i32, i32, i32) {
    %c0_i32 = arith.constant 0 : i32
    %c0_i32_0 = arith.constant 0 : i32
    %c0_i32_1 = arith.constant 0 : i32
    return %arg0, %c0_i32, %c0_i32_0 : i32, i32, i32
  }
  func.func @transform_1(%arg0: i32) -> (i32, i32, i32) {
    %c0_i32 = arith.constant 0 : i32
    %c0_i32_0 = arith.constant 0 : i32
    %c0_i32_1 = arith.constant 0 : i32
    return %arg0, %c0_i32, %c0_i32_0 : i32, i32, i32
  }
  func.func @transform_2(%arg0: i32) -> (i32, i32) {
    %c0_i32 = arith.constant 0 : i32
    %c0_i32_0 = arith.constant 0 : i32
    %c0_i32_1 = arith.constant 0 : i32
    return %c0_i32, %c0_i32_0 : i32, i32
  }
  func.func @transform_3(%arg0: i32) -> (i32, i32) {
    %c0_i32 = arith.constant 0 : i32
    %c0_i32_0 = arith.constant 0 : i32
    %c0_i32_1 = arith.constant 0 : i32
    return %c0_i32, %c0_i32_0 : i32, i32
  }
  func.func @transform_4(%arg0: i32) -> (i32, i32) {
    %c0_i32 = arith.constant 0 : i32
    %c0_i32_0 = arith.constant 0 : i32
    %c0_i32_1 = arith.constant 0 : i32
    return %c0_i32, %c0_i32_0 : i32, i32
  }
  func.func @transform_5(%arg0: i32) -> (i32, i32) {
    %c0_i32 = arith.constant 0 : i32
    %c0_i32_0 = arith.constant 0 : i32
    %c0_i32_1 = arith.constant 0 : i32
    return %c0_i32, %c0_i32_0 : i32, i32
  }
  func.func @transform_6(%arg0: i32) -> (i32, i32, i32) {
    %c0_i32 = arith.constant 0 : i32
    %c0_i32_0 = arith.constant 0 : i32
    %c0_i32_1 = arith.constant 0 : i32
    return %arg0, %c0_i32, %c0_i32_0 : i32, i32, i32
  }
}

module attributes {stable_mosaic.version = 11 : i64} {
  func.func @_conv_mm_kernel(%arg0: i32, %arg1: i32, %arg2: i32, %arg3: memref<32x864xbf16, #tpu.memory_space<vmem>>, %arg4: memref<1x864x4xbf16, #tpu.memory_space<vmem>>, %arg5: memref<32x1xf32, #tpu.memory_space<vmem>>, %arg6: memref<1x32x4xf32, #tpu.memory_space<vmem>>, %arg7: memref<32x4xf32, #tpu.memory_space<vmem>>) attributes {dimension_semantics = [#tpu.dimension_semantics<parallel>, #tpu.dimension_semantics<parallel>, #tpu.dimension_semantics<arbitrary>], iteration_bounds = array<i64: 2, 1, 1>, scalar_prefetch = 0 : i64, scratch_operands = 1 : i64, tpu.core_type = #tpu.core_type<tc>, window_params = [{transform_indices = @transform_0, window_bounds = array<i64: 32, 864>}, {transform_indices = @transform_1, window_bounds = array<i64: 1, 864, 4>}, {pipeline_mode = #tpu.pipeline_mode<synchronous>, transform_indices = @transform_2, window_bounds = array<i64: 32, 1>}, {transform_indices = @transform_3, window_bounds = array<i64: 1, 32, 4>}]} {
    %c0_i32 = arith.constant 0 : i32
    %0 = arith.cmpi eq, %arg2, %c0_i32 : i32
    %1 = arith.extui %0 : i1 to i32
    %c0_i32_0 = arith.constant 0 : i32
    %2 = arith.cmpi ne, %1, %c0_i32_0 : i32
    scf.if %2 {
      %cst_11 = arith.constant 0.000000e+00 : f32
      %13 = vector.broadcast %cst_11 : f32 to vector<32x4xf32>
      %c0_12 = arith.constant 0 : index
      %c0_13 = arith.constant 0 : index
      %14 = vector.load %arg7[%c0_12, %c0_13] : memref<32x4xf32, #tpu.memory_space<vmem>>, vector<32x4xf32>
      tpu.vector_store %arg7[%c0_12, %c0_13], %13 {strides = array<i32>} : memref<32x4xf32, #tpu.memory_space<vmem>>, vector<32x4xf32>,
    } else {
    }
    %c0 = arith.constant 0 : index
    %c0_1 = arith.constant 0 : index
    %3 = vector.load %arg7[%c0, %c0_1] : memref<32x4xf32, #tpu.memory_space<vmem>>, vector<32x4xf32>
    %c0_2 = arith.constant 0 : index
    %c0_3 = arith.constant 0 : index
    %4 = vector.load %arg3[%c0_2, %c0_3] : memref<32x864xbf16, #tpu.memory_space<vmem>>, vector<32x864xbf16>
    %c0_4 = arith.constant 0 : index
    %c0_5 = arith.constant 0 : index
    %c0_6 = arith.constant 0 : index
    %5 = vector.load %arg4[%c0_4, %c0_5, %c0_6] : memref<1x864x4xbf16, #tpu.memory_space<vmem>>, vector<1x864x4xbf16>
    %6 = vector.shape_cast %5 : vector<1x864x4xbf16> to vector<864x4xbf16>
    %cst = arith.constant dense<0.000000e+00> : vector<32x4xf32>
    %7 = tpu.matmul %4, %6, %cst {dimension_numbers = #tpu.dot_dimension_numbers<[1], [0], [0], [1], [0, 0, 1, 1], [], []>} : vector<32x864xbf16>, vector<864x4xbf16>, vector<32x4xf32> -> vector<32x4xf32>
    %8 = arith.addf %3, %7 : vector<32x4xf32>
    %c0_7 = arith.constant 0 : index
    %c0_8 = arith.constant 0 : index
    %9 = vector.load %arg7[%c0_7, %c0_8] : memref<32x4xf32, #tpu.memory_space<vmem>>, vector<32x4xf32>
    tpu.vector_store %arg7[%c0_7, %c0_8], %8 {strides = array<i32>} : memref<32x4xf32, #tpu.memory_space<vmem>>, vector<32x4xf32>,
    %c0_i32_9 = arith.constant 0 : i32
    %10 = arith.cmpi eq, %arg2, %c0_i32_9 : i32
    %11 = arith.extui %10 : i1 to i32
    %c0_i32_10 = arith.constant 0 : i32
    %12 = arith.cmpi ne, %11, %c0_i32_10 : i32
    scf.if %12 {
      %c0_11 = arith.constant 0 : index
      %c0_12 = arith.constant 0 : index
      %13 = vector.load %arg7[%c0_11, %c0_12] : memref<32x4xf32, #tpu.memory_space<vmem>>, vector<32x4xf32>
      %c0_13 = arith.constant 0 : index
      %c0_14 = arith.constant 0 : index
      %14 = vector.load %arg5[%c0_13, %c0_14] : memref<32x1xf32, #tpu.memory_space<vmem>>, vector<32x1xf32>
      %15 = vector.broadcast %14 : vector<32x1xf32> to vector<32x4xf32>
      %16 = arith.addf %13, %15 : vector<32x4xf32>
      %c0_15 = arith.constant 0 : index
      %c0_16 = arith.constant 0 : index
      %c0_17 = arith.constant 0 : index
      %17 = vector.load %arg6[%c0_15, %c0_16, %c0_17] : memref<1x32x4xf32, #tpu.memory_space<vmem>>, vector<1x32x4xf32>
      %18 = vector.shape_cast %17 : vector<1x32x4xf32> to vector<32x4xf32>
      %19 = vector.shape_cast %16 : vector<32x4xf32> to vector<1x32x4xf32>
      tpu.vector_store %arg6[%c0_15, %c0_16, %c0_17], %19 {strides = array<i32>} : memref<1x32x4xf32, #tpu.memory_space<vmem>>, vector<1x32x4xf32>,
    } else {
    }
    return
  }
  func.func @transform_0(%arg0: i32, %arg1: i32, %arg2: i32) -> (i32, i32) {
    %c0_i32 = arith.constant 0 : i32
    %c0_i32_0 = arith.constant 0 : i32
    return %c0_i32, %arg2 : i32, i32
  }
  func.func @transform_1(%arg0: i32, %arg1: i32, %arg2: i32) -> (i32, i32, i32) {
    %c0_i32 = arith.constant 0 : i32
    return %arg0, %arg2, %arg1 : i32, i32, i32
  }
  func.func @transform_2(%arg0: i32, %arg1: i32, %arg2: i32) -> (i32, i32) {
    %c0_i32 = arith.constant 0 : i32
    %c0_i32_0 = arith.constant 0 : i32
    %c0_i32_1 = arith.constant 0 : i32
    return %c0_i32, %c0_i32_0 : i32, i32
  }
  func.func @transform_3(%arg0: i32, %arg1: i32, %arg2: i32) -> (i32, i32, i32) {
    %c0_i32 = arith.constant 0 : i32
    %c0_i32_0 = arith.constant 0 : i32
    return %arg0, %c0_i32, %arg1 : i32, i32, i32
  }
}

module attributes {stable_mosaic.version = 11 : i64} {
  func.func @_gn_kernel(%arg0: i32, %arg1: memref<1x16x8xf32, #tpu.memory_space<vmem>>, %arg2: memref<16x8xf32, #tpu.memory_space<vmem>>, %arg3: memref<16x8xf32, #tpu.memory_space<vmem>>, %arg4: memref<1x16x8xf32, #tpu.memory_space<vmem>>) attributes {dimension_semantics = [#tpu.dimension_semantics<parallel>], iteration_bounds = array<i64: 2>, scalar_prefetch = 0 : i64, scratch_operands = 0 : i64, tpu.core_type = #tpu.core_type<tc>, window_params = [{transform_indices = @transform_0, window_bounds = array<i64: 1, 16, 8>}, {pipeline_mode = #tpu.pipeline_mode<synchronous>, transform_indices = @transform_1, window_bounds = array<i64: 16, 8>}, {pipeline_mode = #tpu.pipeline_mode<synchronous>, transform_indices = @transform_2, window_bounds = array<i64: 16, 8>}, {transform_indices = @transform_3, window_bounds = array<i64: 1, 16, 8>}]} {
    %c0 = arith.constant 0 : index
    %c0_0 = arith.constant 0 : index
    %c0_1 = arith.constant 0 : index
    %0 = vector.load %arg1[%c0, %c0_0, %c0_1] : memref<1x16x8xf32, #tpu.memory_space<vmem>>, vector<1x16x8xf32>
    %1 = vector.shape_cast %0 : vector<1x16x8xf32> to vector<16x8xf32>
    %c0_2 = arith.constant 0 : index
    %c0_3 = arith.constant 0 : index
    %2 = vector.load %arg2[%c0_2, %c0_3] : memref<16x8xf32, #tpu.memory_space<vmem>>, vector<16x8xf32>
    %c0_4 = arith.constant 0 : index
    %c0_5 = arith.constant 0 : index
    %3 = vector.load %arg3[%c0_4, %c0_5] : memref<16x8xf32, #tpu.memory_space<vmem>>, vector<16x8xf32>
    %cst = arith.constant dense<0.000000e+00> : vector<16xf32>
    %4 = vector.multi_reduction <add>, %1, %cst [1] : vector<16x8xf32> to vector<16xf32>
    %5 = vector.shape_cast %4 : vector<16xf32> to vector<16x1xf32>
    %cst_6 = arith.constant 8.000000e+00 : f32
    %6 = vector.broadcast %cst_6 : f32 to vector<16x1xf32>
    %7 = arith.divf %5, %6 : vector<16x1xf32>
    %8 = arith.mulf %1, %1 : vector<16x8xf32>
    %cst_7 = arith.constant dense<0.000000e+00> : vector<16xf32>
    %9 = vector.multi_reduction <add>, %8, %cst_7 [1] : vector<16x8xf32> to vector<16xf32>
    %10 = vector.shape_cast %9 : vector<16xf32> to vector<16x1xf32>
    %cst_8 = arith.constant 8.000000e+00 : f32
    %11 = vector.broadcast %cst_8 : f32 to vector<16x1xf32>
    %12 = arith.divf %10, %11 : vector<16x1xf32>
    %13 = arith.mulf %7, %7 : vector<16x1xf32>
    %14 = arith.subf %12, %13 : vector<16x1xf32>
    %cst_9 = arith.constant 0.000000e+00 : f32
    %15 = vector.broadcast %cst_9 : f32 to vector<16x1xf32>
    %16 = arith.maximumf %14, %15 : vector<16x1xf32>
    %cst_10 = arith.constant 9.99999974E-6 : f32
    %17 = vector.broadcast %cst_10 : f32 to vector<16x1xf32>
    %18 = arith.addf %16, %17 : vector<16x1xf32>
    %19 = math.rsqrt %18 : vector<16x1xf32>
    %20 = vector.broadcast %7 : vector<16x1xf32> to vector<16x8xf32>
    %21 = arith.subf %1, %20 : vector<16x8xf32>
    %22 = vector.broadcast %19 : vector<16x1xf32> to vector<16x8xf32>
    %23 = arith.mulf %21, %22 : vector<16x8xf32>
    %24 = arith.mulf %23, %2 : vector<16x8xf32>
    %25 = arith.addf %24, %3 : vector<16x8xf32>
    %cst_11 = arith.constant 0.000000e+00 : f32
    %26 = vector.broadcast %cst_11 : f32 to vector<16x8xf32>
    %27 = arith.maximumf %25, %26 : vector<16x8xf32>
    %c0_12 = arith.constant 0 : index
    %c0_13 = arith.constant 0 : index
    %c0_14 = arith.constant 0 : index
    %28 = vector.load %arg4[%c0_12, %c0_13, %c0_14] : memref<1x16x8xf32, #tpu.memory_space<vmem>>, vector<1x16x8xf32>
    %29 = vector.shape_cast %28 : vector<1x16x8xf32> to vector<16x8xf32>
    %30 = vector.shape_cast %27 : vector<16x8xf32> to vector<1x16x8xf32>
    tpu.vector_store %arg4[%c0_12, %c0_13, %c0_14], %30 {strides = array<i32>} : memref<1x16x8xf32, #tpu.memory_space<vmem>>, vector<1x16x8xf32>,
    return
  }
  func.func @transform_0(%arg0: i32) -> (i32, i32, i32) {
    %c0_i32 = arith.constant 0 : i32
    %c0_i32_0 = arith.constant 0 : i32
    %c0_i32_1 = arith.constant 0 : i32
    return %arg0, %c0_i32, %c0_i32_0 : i32, i32, i32
  }
  func.func @transform_1(%arg0: i32) -> (i32, i32) {
    %c0_i32 = arith.constant 0 : i32
    %c0_i32_0 = arith.constant 0 : i32
    %c0_i32_1 = arith.constant 0 : i32
    return %c0_i32, %c0_i32_0 : i32, i32
  }
  func.func @transform_2(%arg0: i32) -> (i32, i32) {
    %c0_i32 = arith.constant 0 : i32
    %c0_i32_0 = arith.constant 0 : i32
    %c0_i32_1 = arith.constant 0 : i32
    return %c0_i32, %c0_i32_0 : i32, i32
  }
  func.func @transform_3(%arg0: i32) -> (i32, i32, i32) {
    %c0_i32 = arith.constant 0 : i32
    %c0_i32_0 = arith.constant 0 : i32
    %c0_i32_1 = arith.constant 0 : i32
    return %arg0, %c0_i32, %c0_i32_0 : i32, i32, i32
  }
}

module attributes {stable_mosaic.version = 11 : i64} {
  func.func @_gn_dual_kernel(%arg0: i32, %arg1: memref<1x16x8xf32, #tpu.memory_space<vmem>>, %arg2: memref<1x16x8xf32, #tpu.memory_space<vmem>>, %arg3: memref<16x8xf32, #tpu.memory_space<vmem>>, %arg4: memref<16x8xf32, #tpu.memory_space<vmem>>, %arg5: memref<16x8xf32, #tpu.memory_space<vmem>>, %arg6: memref<16x8xf32, #tpu.memory_space<vmem>>, %arg7: memref<1x16x8xf32, #tpu.memory_space<vmem>>) attributes {dimension_semantics = [#tpu.dimension_semantics<parallel>], iteration_bounds = array<i64: 2>, scalar_prefetch = 0 : i64, scratch_operands = 0 : i64, tpu.core_type = #tpu.core_type<tc>, window_params = [{transform_indices = @transform_0, window_bounds = array<i64: 1, 16, 8>}, {transform_indices = @transform_1, window_bounds = array<i64: 1, 16, 8>}, {pipeline_mode = #tpu.pipeline_mode<synchronous>, transform_indices = @transform_2, window_bounds = array<i64: 16, 8>}, {pipeline_mode = #tpu.pipeline_mode<synchronous>, transform_indices = @transform_3, window_bounds = array<i64: 16, 8>}, {pipeline_mode = #tpu.pipeline_mode<synchronous>, transform_indices = @transform_4, window_bounds = array<i64: 16, 8>}, {pipeline_mode = #tpu.pipeline_mode<synchronous>, transform_indices = @transform_5, window_bounds = array<i64: 16, 8>}, {transform_indices = @transform_6, window_bounds = array<i64: 1, 16, 8>}]} {
    %c0 = arith.constant 0 : index
    %c0_0 = arith.constant 0 : index
    %c0_1 = arith.constant 0 : index
    %0 = vector.load %arg1[%c0, %c0_0, %c0_1] : memref<1x16x8xf32, #tpu.memory_space<vmem>>, vector<1x16x8xf32>
    %1 = vector.shape_cast %0 : vector<1x16x8xf32> to vector<16x8xf32>
    %c0_2 = arith.constant 0 : index
    %c0_3 = arith.constant 0 : index
    %2 = vector.load %arg3[%c0_2, %c0_3] : memref<16x8xf32, #tpu.memory_space<vmem>>, vector<16x8xf32>
    %c0_4 = arith.constant 0 : index
    %c0_5 = arith.constant 0 : index
    %3 = vector.load %arg4[%c0_4, %c0_5] : memref<16x8xf32, #tpu.memory_space<vmem>>, vector<16x8xf32>
    %cst = arith.constant dense<0.000000e+00> : vector<16xf32>
    %4 = vector.multi_reduction <add>, %1, %cst [1] : vector<16x8xf32> to vector<16xf32>
    %5 = vector.shape_cast %4 : vector<16xf32> to vector<16x1xf32>
    %cst_6 = arith.constant 8.000000e+00 : f32
    %6 = vector.broadcast %cst_6 : f32 to vector<16x1xf32>
    %7 = arith.divf %5, %6 : vector<16x1xf32>
    %8 = arith.mulf %1, %1 : vector<16x8xf32>
    %cst_7 = arith.constant dense<0.000000e+00> : vector<16xf32>
    %9 = vector.multi_reduction <add>, %8, %cst_7 [1] : vector<16x8xf32> to vector<16xf32>
    %10 = vector.shape_cast %9 : vector<16xf32> to vector<16x1xf32>
    %cst_8 = arith.constant 8.000000e+00 : f32
    %11 = vector.broadcast %cst_8 : f32 to vector<16x1xf32>
    %12 = arith.divf %10, %11 : vector<16x1xf32>
    %13 = arith.mulf %7, %7 : vector<16x1xf32>
    %14 = arith.subf %12, %13 : vector<16x1xf32>
    %cst_9 = arith.constant 0.000000e+00 : f32
    %15 = vector.broadcast %cst_9 : f32 to vector<16x1xf32>
    %16 = arith.maximumf %14, %15 : vector<16x1xf32>
    %cst_10 = arith.constant 9.99999974E-6 : f32
    %17 = vector.broadcast %cst_10 : f32 to vector<16x1xf32>
    %18 = arith.addf %16, %17 : vector<16x1xf32>
    %19 = math.rsqrt %18 : vector<16x1xf32>
    %20 = vector.broadcast %7 : vector<16x1xf32> to vector<16x8xf32>
    %21 = arith.subf %1, %20 : vector<16x8xf32>
    %22 = vector.broadcast %19 : vector<16x1xf32> to vector<16x8xf32>
    %23 = arith.mulf %21, %22 : vector<16x8xf32>
    %24 = arith.mulf %23, %2 : vector<16x8xf32>
    %25 = arith.addf %24, %3 : vector<16x8xf32>
    %c0_11 = arith.constant 0 : index
    %c0_12 = arith.constant 0 : index
    %c0_13 = arith.constant 0 : index
    %26 = vector.load %arg2[%c0_11, %c0_12, %c0_13] : memref<1x16x8xf32, #tpu.memory_space<vmem>>, vector<1x16x8xf32>
    %27 = vector.shape_cast %26 : vector<1x16x8xf32> to vector<16x8xf32>
    %c0_14 = arith.constant 0 : index
    %c0_15 = arith.constant 0 : index
    %28 = vector.load %arg5[%c0_14, %c0_15] : memref<16x8xf32, #tpu.memory_space<vmem>>, vector<16x8xf32>
    %c0_16 = arith.constant 0 : index
    %c0_17 = arith.constant 0 : index
    %29 = vector.load %arg6[%c0_16, %c0_17] : memref<16x8xf32, #tpu.memory_space<vmem>>, vector<16x8xf32>
    %cst_18 = arith.constant dense<0.000000e+00> : vector<16xf32>
    %30 = vector.multi_reduction <add>, %27, %cst_18 [1] : vector<16x8xf32> to vector<16xf32>
    %31 = vector.shape_cast %30 : vector<16xf32> to vector<16x1xf32>
    %cst_19 = arith.constant 8.000000e+00 : f32
    %32 = vector.broadcast %cst_19 : f32 to vector<16x1xf32>
    %33 = arith.divf %31, %32 : vector<16x1xf32>
    %34 = arith.mulf %27, %27 : vector<16x8xf32>
    %cst_20 = arith.constant dense<0.000000e+00> : vector<16xf32>
    %35 = vector.multi_reduction <add>, %34, %cst_20 [1] : vector<16x8xf32> to vector<16xf32>
    %36 = vector.shape_cast %35 : vector<16xf32> to vector<16x1xf32>
    %cst_21 = arith.constant 8.000000e+00 : f32
    %37 = vector.broadcast %cst_21 : f32 to vector<16x1xf32>
    %38 = arith.divf %36, %37 : vector<16x1xf32>
    %39 = arith.mulf %33, %33 : vector<16x1xf32>
    %40 = arith.subf %38, %39 : vector<16x1xf32>
    %cst_22 = arith.constant 0.000000e+00 : f32
    %41 = vector.broadcast %cst_22 : f32 to vector<16x1xf32>
    %42 = arith.maximumf %40, %41 : vector<16x1xf32>
    %cst_23 = arith.constant 9.99999974E-6 : f32
    %43 = vector.broadcast %cst_23 : f32 to vector<16x1xf32>
    %44 = arith.addf %42, %43 : vector<16x1xf32>
    %45 = math.rsqrt %44 : vector<16x1xf32>
    %46 = vector.broadcast %33 : vector<16x1xf32> to vector<16x8xf32>
    %47 = arith.subf %27, %46 : vector<16x8xf32>
    %48 = vector.broadcast %45 : vector<16x1xf32> to vector<16x8xf32>
    %49 = arith.mulf %47, %48 : vector<16x8xf32>
    %50 = arith.mulf %49, %28 : vector<16x8xf32>
    %51 = arith.addf %50, %29 : vector<16x8xf32>
    %52 = arith.addf %25, %51 : vector<16x8xf32>
    %cst_24 = arith.constant 0.000000e+00 : f32
    %53 = vector.broadcast %cst_24 : f32 to vector<16x8xf32>
    %54 = arith.maximumf %52, %53 : vector<16x8xf32>
    %c0_25 = arith.constant 0 : index
    %c0_26 = arith.constant 0 : index
    %c0_27 = arith.constant 0 : index
    %55 = vector.load %arg7[%c0_25, %c0_26, %c0_27] : memref<1x16x8xf32, #tpu.memory_space<vmem>>, vector<1x16x8xf32>
    %56 = vector.shape_cast %55 : vector<1x16x8xf32> to vector<16x8xf32>
    %57 = vector.shape_cast %54 : vector<16x8xf32> to vector<1x16x8xf32>
    tpu.vector_store %arg7[%c0_25, %c0_26, %c0_27], %57 {strides = array<i32>} : memref<1x16x8xf32, #tpu.memory_space<vmem>>, vector<1x16x8xf32>,
    return
  }
  func.func @transform_0(%arg0: i32) -> (i32, i32, i32) {
    %c0_i32 = arith.constant 0 : i32
    %c0_i32_0 = arith.constant 0 : i32
    %c0_i32_1 = arith.constant 0 : i32
    return %arg0, %c0_i32, %c0_i32_0 : i32, i32, i32
  }
  func.func @transform_1(%arg0: i32) -> (i32, i32, i32) {
    %c0_i32 = arith.constant 0 : i32
    %c0_i32_0 = arith.constant 0 : i32
    %c0_i32_1 = arith.constant 0 : i32
    return %arg0, %c0_i32, %c0_i32_0 : i32, i32, i32
  }
  func.func @transform_2(%arg0: i32) -> (i32, i32) {
    %c0_i32 = arith.constant 0 : i32
    %c0_i32_0 = arith.constant 0 : i32
    %c0_i32_1 = arith.constant 0 : i32
    return %c0_i32, %c0_i32_0 : i32, i32
  }
  func.func @transform_3(%arg0: i32) -> (i32, i32) {
    %c0_i32 = arith.constant 0 : i32
    %c0_i32_0 = arith.constant 0 : i32
    %c0_i32_1 = arith.constant 0 : i32
    return %c0_i32, %c0_i32_0 : i32, i32
  }
  func.func @transform_4(%arg0: i32) -> (i32, i32) {
    %c0_i32 = arith.constant 0 : i32
    %c0_i32_0 = arith.constant 0 : i32
    %c0_i32_1 = arith.constant 0 : i32
    return %c0_i32, %c0_i32_0 : i32, i32
  }
  func.func @transform_5(%arg0: i32) -> (i32, i32) {
    %c0_i32 = arith.constant 0 : i32
    %c0_i32_0 = arith.constant 0 : i32
    %c0_i32_1 = arith.constant 0 : i32
    return %c0_i32, %c0_i32_0 : i32, i32
  }
  func.func @transform_6(%arg0: i32) -> (i32, i32, i32) {
    %c0_i32 = arith.constant 0 : i32
    %c0_i32_0 = arith.constant 0 : i32
    %c0_i32_1 = arith.constant 0 : i32
    return %arg0, %c0_i32, %c0_i32_0 : i32, i32, i32
  }
}

module attributes {stable_mosaic.version = 11 : i64} {
  func.func @_conv_mm_kernel(%arg0: i32, %arg1: i32, %arg2: i32, %arg3: memref<32x32xbf16, #tpu.memory_space<vmem>>, %arg4: memref<1x32x4xbf16, #tpu.memory_space<vmem>>, %arg5: memref<32x1xf32, #tpu.memory_space<vmem>>, %arg6: memref<1x32x4xf32, #tpu.memory_space<vmem>>, %arg7: memref<32x4xf32, #tpu.memory_space<vmem>>) attributes {dimension_semantics = [#tpu.dimension_semantics<parallel>, #tpu.dimension_semantics<parallel>, #tpu.dimension_semantics<arbitrary>], iteration_bounds = array<i64: 2, 1, 1>, scalar_prefetch = 0 : i64, scratch_operands = 1 : i64, tpu.core_type = #tpu.core_type<tc>, window_params = [{transform_indices = @transform_0, window_bounds = array<i64: 32, 32>}, {transform_indices = @transform_1, window_bounds = array<i64: 1, 32, 4>}, {pipeline_mode = #tpu.pipeline_mode<synchronous>, transform_indices = @transform_2, window_bounds = array<i64: 32, 1>}, {transform_indices = @transform_3, window_bounds = array<i64: 1, 32, 4>}]} {
    %c0_i32 = arith.constant 0 : i32
    %0 = arith.cmpi eq, %arg2, %c0_i32 : i32
    %1 = arith.extui %0 : i1 to i32
    %c0_i32_0 = arith.constant 0 : i32
    %2 = arith.cmpi ne, %1, %c0_i32_0 : i32
    scf.if %2 {
      %cst_11 = arith.constant 0.000000e+00 : f32
      %13 = vector.broadcast %cst_11 : f32 to vector<32x4xf32>
      %c0_12 = arith.constant 0 : index
      %c0_13 = arith.constant 0 : index
      %14 = vector.load %arg7[%c0_12, %c0_13] : memref<32x4xf32, #tpu.memory_space<vmem>>, vector<32x4xf32>
      tpu.vector_store %arg7[%c0_12, %c0_13], %13 {strides = array<i32>} : memref<32x4xf32, #tpu.memory_space<vmem>>, vector<32x4xf32>,
    } else {
    }
    %c0 = arith.constant 0 : index
    %c0_1 = arith.constant 0 : index
    %3 = vector.load %arg7[%c0, %c0_1] : memref<32x4xf32, #tpu.memory_space<vmem>>, vector<32x4xf32>
    %c0_2 = arith.constant 0 : index
    %c0_3 = arith.constant 0 : index
    %4 = vector.load %arg3[%c0_2, %c0_3] : memref<32x32xbf16, #tpu.memory_space<vmem>>, vector<32x32xbf16>
    %c0_4 = arith.constant 0 : index
    %c0_5 = arith.constant 0 : index
    %c0_6 = arith.constant 0 : index
    %5 = vector.load %arg4[%c0_4, %c0_5, %c0_6] : memref<1x32x4xbf16, #tpu.memory_space<vmem>>, vector<1x32x4xbf16>
    %6 = vector.shape_cast %5 : vector<1x32x4xbf16> to vector<32x4xbf16>
    %cst = arith.constant dense<0.000000e+00> : vector<32x4xf32>
    %7 = tpu.matmul %4, %6, %cst {dimension_numbers = #tpu.dot_dimension_numbers<[1], [0], [0], [1], [0, 0, 1, 1], [], []>} : vector<32x32xbf16>, vector<32x4xbf16>, vector<32x4xf32> -> vector<32x4xf32>
    %8 = arith.addf %3, %7 : vector<32x4xf32>
    %c0_7 = arith.constant 0 : index
    %c0_8 = arith.constant 0 : index
    %9 = vector.load %arg7[%c0_7, %c0_8] : memref<32x4xf32, #tpu.memory_space<vmem>>, vector<32x4xf32>
    tpu.vector_store %arg7[%c0_7, %c0_8], %8 {strides = array<i32>} : memref<32x4xf32, #tpu.memory_space<vmem>>, vector<32x4xf32>,
    %c0_i32_9 = arith.constant 0 : i32
    %10 = arith.cmpi eq, %arg2, %c0_i32_9 : i32
    %11 = arith.extui %10 : i1 to i32
    %c0_i32_10 = arith.constant 0 : i32
    %12 = arith.cmpi ne, %11, %c0_i32_10 : i32
    scf.if %12 {
      %c0_11 = arith.constant 0 : index
      %c0_12 = arith.constant 0 : index
      %13 = vector.load %arg7[%c0_11, %c0_12] : memref<32x4xf32, #tpu.memory_space<vmem>>, vector<32x4xf32>
      %c0_13 = arith.constant 0 : index
      %c0_14 = arith.constant 0 : index
      %14 = vector.load %arg5[%c0_13, %c0_14] : memref<32x1xf32, #tpu.memory_space<vmem>>, vector<32x1xf32>
      %15 = vector.broadcast %14 : vector<32x1xf32> to vector<32x4xf32>
      %16 = arith.addf %13, %15 : vector<32x4xf32>
      %c0_15 = arith.constant 0 : index
      %c0_16 = arith.constant 0 : index
      %c0_17 = arith.constant 0 : index
      %17 = vector.load %arg6[%c0_15, %c0_16, %c0_17] : memref<1x32x4xf32, #tpu.memory_space<vmem>>, vector<1x32x4xf32>
      %18 = vector.shape_cast %17 : vector<1x32x4xf32> to vector<32x4xf32>
      %19 = vector.shape_cast %16 : vector<32x4xf32> to vector<1x32x4xf32>
      tpu.vector_store %arg6[%c0_15, %c0_16, %c0_17], %19 {strides = array<i32>} : memref<1x32x4xf32, #tpu.memory_space<vmem>>, vector<1x32x4xf32>,
    } else {
    }
    return
  }
  func.func @transform_0(%arg0: i32, %arg1: i32, %arg2: i32) -> (i32, i32) {
    %c0_i32 = arith.constant 0 : i32
    %c0_i32_0 = arith.constant 0 : i32
    return %c0_i32, %arg2 : i32, i32
  }
  func.func @transform_1(%arg0: i32, %arg1: i32, %arg2: i32) -> (i32, i32, i32) {
    %c0_i32 = arith.constant 0 : i32
    return %arg0, %arg2, %arg1 : i32, i32, i32
  }
  func.func @transform_2(%arg0: i32, %arg1: i32, %arg2: i32) -> (i32, i32) {
    %c0_i32 = arith.constant 0 : i32
    %c0_i32_0 = arith.constant 0 : i32
    %c0_i32_1 = arith.constant 0 : i32
    return %c0_i32, %c0_i32_0 : i32, i32
  }
  func.func @transform_3(%arg0: i32, %arg1: i32, %arg2: i32) -> (i32, i32, i32) {
    %c0_i32 = arith.constant 0 : i32
    %c0_i32_0 = arith.constant 0 : i32
    return %arg0, %c0_i32, %arg1 : i32, i32, i32
  }
}

module attributes {stable_mosaic.version = 11 : i64} {
  func.func @_head_kernel(%arg0: i32, %arg1: memref<32x288xbf16, #tpu.memory_space<vmem>>, %arg2: memref<1x288x4xbf16, #tpu.memory_space<vmem>>, %arg3: memref<32x1xf32, #tpu.memory_space<vmem>>, %arg4: memref<1x16x4xf32, #tpu.memory_space<vmem>>, %arg5: memref<1x16x4xf32, #tpu.memory_space<vmem>>, %arg6: memref<1x16x4xf32, #tpu.memory_space<vmem>>, %arg7: memref<1x16x4xf32, #tpu.memory_space<vmem>>) attributes {dimension_semantics = [#tpu.dimension_semantics<parallel>], iteration_bounds = array<i64: 2>, scalar_prefetch = 0 : i64, scratch_operands = 0 : i64, tpu.core_type = #tpu.core_type<tc>, window_params = [{pipeline_mode = #tpu.pipeline_mode<synchronous>, transform_indices = @transform_0, window_bounds = array<i64: 32, 288>}, {transform_indices = @transform_1, window_bounds = array<i64: 1, 288, 4>}, {pipeline_mode = #tpu.pipeline_mode<synchronous>, transform_indices = @transform_2, window_bounds = array<i64: 32, 1>}, {transform_indices = @transform_3, window_bounds = array<i64: 1, 16, 4>}, {transform_indices = @transform_4, window_bounds = array<i64: 1, 16, 4>}, {transform_indices = @transform_5, window_bounds = array<i64: 1, 16, 4>}, {transform_indices = @transform_6, window_bounds = array<i64: 1, 16, 4>}]} {
    %c0 = arith.constant 0 : index
    %c0_0 = arith.constant 0 : index
    %0 = vector.load %arg1[%c0, %c0_0] : memref<32x288xbf16, #tpu.memory_space<vmem>>, vector<32x288xbf16>
    %c0_1 = arith.constant 0 : index
    %c0_2 = arith.constant 0 : index
    %c0_3 = arith.constant 0 : index
    %1 = vector.load %arg2[%c0_1, %c0_2, %c0_3] : memref<1x288x4xbf16, #tpu.memory_space<vmem>>, vector<1x288x4xbf16>
    %2 = vector.shape_cast %1 : vector<1x288x4xbf16> to vector<288x4xbf16>
    %cst = arith.constant dense<0.000000e+00> : vector<32x4xf32>
    %3 = tpu.matmul %0, %2, %cst {dimension_numbers = #tpu.dot_dimension_numbers<[1], [0], [0], [1], [0, 0, 1, 1], [], []>} : vector<32x288xbf16>, vector<288x4xbf16>, vector<32x4xf32> -> vector<32x4xf32>
    %c0_4 = arith.constant 0 : index
    %c0_5 = arith.constant 0 : index
    %4 = vector.load %arg3[%c0_4, %c0_5] : memref<32x1xf32, #tpu.memory_space<vmem>>, vector<32x1xf32>
    %5 = vector.broadcast %4 : vector<32x1xf32> to vector<32x4xf32>
    %6 = arith.addf %3, %5 : vector<32x4xf32>
    %7 = vector.extract_strided_slice %6 {offsets = [0, 0], sizes = [16, 4], strides = [1, 1]} : vector<32x4xf32> to vector<16x4xf32>
    %8 = vector.extract_strided_slice %6 {offsets = [16, 0], sizes = [16, 4], strides = [1, 1]} : vector<32x4xf32> to vector<16x4xf32>
    %c0_6 = arith.constant 0 : index
    %c0_7 = arith.constant 0 : index
    %c0_8 = arith.constant 0 : index
    %9 = vector.load %arg6[%c0_6, %c0_7, %c0_8] : memref<1x16x4xf32, #tpu.memory_space<vmem>>, vector<1x16x4xf32>
    %10 = vector.shape_cast %9 : vector<1x16x4xf32> to vector<16x4xf32>
    %11 = vector.shape_cast %7 : vector<16x4xf32> to vector<1x16x4xf32>
    tpu.vector_store %arg6[%c0_6, %c0_7, %c0_8], %11 {strides = array<i32>} : memref<1x16x4xf32, #tpu.memory_space<vmem>>, vector<1x16x4xf32>,
    %c0_9 = arith.constant 0 : index
    %c0_10 = arith.constant 0 : index
    %c0_11 = arith.constant 0 : index
    %12 = vector.load %arg7[%c0_9, %c0_10, %c0_11] : memref<1x16x4xf32, #tpu.memory_space<vmem>>, vector<1x16x4xf32>
    %13 = vector.shape_cast %12 : vector<1x16x4xf32> to vector<16x4xf32>
    %14 = vector.shape_cast %8 : vector<16x4xf32> to vector<1x16x4xf32>
    tpu.vector_store %arg7[%c0_9, %c0_10, %c0_11], %14 {strides = array<i32>} : memref<1x16x4xf32, #tpu.memory_space<vmem>>, vector<1x16x4xf32>,
    %c0_12 = arith.constant 0 : index
    %c0_13 = arith.constant 0 : index
    %c0_14 = arith.constant 0 : index
    %15 = vector.load %arg4[%c0_12, %c0_13, %c0_14] : memref<1x16x4xf32, #tpu.memory_space<vmem>>, vector<1x16x4xf32>
    %16 = vector.shape_cast %15 : vector<1x16x4xf32> to vector<16x4xf32>
    %cst_15 = arith.constant 5.000000e-01 : f32
    %17 = vector.broadcast %cst_15 : f32 to vector<16x4xf32>
    %18 = arith.mulf %8, %17 : vector<16x4xf32>
    %19 = math.exp %18 : vector<16x4xf32>
    %20 = arith.mulf %16, %19 : vector<16x4xf32>
    %21 = arith.addf %20, %7 : vector<16x4xf32>
    %c0_16 = arith.constant 0 : index
    %c0_17 = arith.constant 0 : index
    %c0_18 = arith.constant 0 : index
    %22 = vector.load %arg5[%c0_16, %c0_17, %c0_18] : memref<1x16x4xf32, #tpu.memory_space<vmem>>, vector<1x16x4xf32>
    %23 = vector.shape_cast %22 : vector<1x16x4xf32> to vector<16x4xf32>
    %24 = vector.shape_cast %21 : vector<16x4xf32> to vector<1x16x4xf32>
    tpu.vector_store %arg5[%c0_16, %c0_17, %c0_18], %24 {strides = array<i32>} : memref<1x16x4xf32, #tpu.memory_space<vmem>>, vector<1x16x4xf32>,
    return
  }
  func.func @transform_0(%arg0: i32) -> (i32, i32) {
    %c0_i32 = arith.constant 0 : i32
    %c0_i32_0 = arith.constant 0 : i32
    %c0_i32_1 = arith.constant 0 : i32
    return %c0_i32, %c0_i32_0 : i32, i32
  }
  func.func @transform_1(%arg0: i32) -> (i32, i32, i32) {
    %c0_i32 = arith.constant 0 : i32
    %c0_i32_0 = arith.constant 0 : i32
    %c0_i32_1 = arith.constant 0 : i32
    return %arg0, %c0_i32, %c0_i32_0 : i32, i32, i32
  }
  func.func @transform_2(%arg0: i32) -> (i32, i32) {
    %c0_i32 = arith.constant 0 : i32
    %c0_i32_0 = arith.constant 0 : i32
    %c0_i32_1 = arith.constant 0 : i32
    return %c0_i32, %c0_i32_0 : i32, i32
  }
  func.func @transform_3(%arg0: i32) -> (i32, i32, i32) {
    %c0_i32 = arith.constant 0 : i32
    %c0_i32_0 = arith.constant 0 : i32
    %c0_i32_1 = arith.constant 0 : i32
    return %arg0, %c0_i32, %c0_i32_0 : i32, i32, i32
  }
  func.func @transform_4(%arg0: i32) -> (i32, i32, i32) {
    %c0_i32 = arith.constant 0 : i32
    %c0_i32_0 = arith.constant 0 : i32
    %c0_i32_1 = arith.constant 0 : i32
    return %arg0, %c0_i32, %c0_i32_0 : i32, i32, i32
  }
  func.func @transform_5(%arg0: i32) -> (i32, i32, i32) {
    %c0_i32 = arith.constant 0 : i32
    %c0_i32_0 = arith.constant 0 : i32
    %c0_i32_1 = arith.constant 0 : i32
    return %arg0, %c0_i32, %c0_i32_0 : i32, i32, i32
  }
  func.func @transform_6(%arg0: i32) -> (i32, i32, i32) {
    %c0_i32 = arith.constant 0 : i32
    %c0_i32_0 = arith.constant 0 : i32
    %c0_i32_1 = arith.constant 0 : i32
    return %arg0, %c0_i32, %c0_i32_0 : i32, i32, i32
  }
}

</mosaic_0001>

<bundles_post_ra>
// kernel: _lambda_.18
= control target key start
LH: loop header
LB: loop body
LE: loop exit
PB: predicated region body
PF: predicated region fallthrough
CT: control target
= control target key end

     0   :  { %s422_s12 = smov 0   ;;  %s561_s0 = inlined_call_operand.vmem [shape: f32[2,16,512], index: 0, kind: input, shape index: {}]   ;;  %s562_s1 = inlined_call_operand.vmem [shape: f32[16,512], index: 1, kind: input, shape index: {}]   ;;  %s563_s2 = inlined_call_operand.vmem [shape: f32[16,512], index: 2, kind: input, shape index: {}]   ;;  %s564_s3 = inlined_call_operand.vmem [shape: f32[2,16,512], index: 3, kind: output, shape index: {}]  }
   0x1 LB: > { %s365_s13 = sadd.s32 4294967295, %s399_s12   ;;  %p369_p0 = scmp.ge.s32.totalorder %s399_s12, 1  ;;  %s399_s12 = sphi %s422_s12, %s13_s12  }
   0x2   : > { %p137_p1 = scmp.lt.s32.totalorder %s399_s12, 3 }
   0x4   : > { %p138_p2 = pnand %p369_p0, %p137_p1 }
   0x5   : > { %p161_p3 = scmp.lt.s32.totalorder (!%p138_p2), %s365_s13, 1 }
   0x6   : > { %141 = sbr.rel (%p138_p2) target bundleno = 185 (0xb9), region = 32 }
   0xb   : > { %s566_s13 = smov (!%p161_p3, %s365_s13), 1  ;;  %v401_v28 = vmov 512.0   ;;  %v179_v63 = vld [vmem:[%s562_s1] sm:$0xff] }
   0xc   : > { %s376_s14 = sshll.u32 %s566_s13, 6  ;;  %387 = vrcp.f32 %v401_v28 }
   0xd   : > { %s165_s17 = scalar_lea.vmem %s561_s0, %s376_s14  ;;  %s517_s9 = scalar_lea.vmem %s564_s3, %s376_s14 }
   0xe   : > { %v438_v0 = vld [vmem:[%s165_s17] sm:$0xff]  ;;  %v440_v1 = vld [vmem:[%s165_s17 + $0x8] sm:$0xff]  ;;  %v442_v2 = vld [vmem:[%s165_s17 + $0x10] sm:$0xff] }
   0xf   : > { %v444_v3 = vld [vmem:[%s165_s17 + $0x18] sm:$0xff]  ;;  %v195_v4 = vadd.f32 %v440_v1, %v438_v0  ;;  %v214_v5 = vmul.f32 %v438_v0, %v438_v0  ;;  %v215_v6 = vmul.f32 %v440_v1, %v440_v1  ;;  %v216_v7 = vmul.f32 %v442_v2, %v442_v2  ;;  %v454_v8 = vld [vmem:[%s165_s17 + $0x20] sm:$0xff]  ;;  %v456_v9 = vld [vmem:[%s165_s17 + $0x28] sm:$0xff] }
  0x10   : > { %v458_v10 = vld [vmem:[%s165_s17 + $0x30] sm:$0xff]  ;;  %v218_v11 = vmul.f32 %v454_v8, %v454_v8  ;;  %v219_v12 = vmul.f32 %v456_v9, %v456_v9  ;;  %v217_v14 = vmul.f32 %v444_v3, %v444_v3  ;;  %v200_v16 = vadd.f32 %v456_v9, %v454_v8  ;;  %v472_v21 = vld [vmem:[%s165_s17 + $0x38] sm:$0xff] }
  0x11   : > { %v196_v13 = vadd.f32 %v195_v4, %v442_v2  ;;  %v222_v15 = vadd.f32 %v215_v6, %v214_v5  ;;  %v220_v19 = vmul.f32 %v458_v10, %v458_v10  ;;  %v221_v24 = vmul.f32 %v472_v21, %v472_v21  ;;  %v180_v4 = vld [vmem:[%s562_s1 + $0x8] sm:$0xff]  ;;  %v181_v5 = vld [vmem:[%s562_s1 + $0x10] sm:$0xff] }
  0x12   : > { %v227_v20 = vadd.f32 %v219_v12, %v218_v11  ;;  %v201_v23 = vadd.f32 %v200_v16, %v458_v10  ;;  %v388_v29 = vpop.eup %387 }
  0x13   : > { %v197_v17 = vadd.f32 %v196_v13, %v444_v3  ;;  %v223_v18 = vadd.f32 %v222_v15, %v216_v7  ;;  %v206_v30 = vmul.f32 512.0, %v388_v29  ;;  %vm210_vm0 = vweird.f32 %v388_v29  ;;  %v188_v13 = vld [vmem:[%s563_s2 + $0x8] sm:$0xff]  ;;  %v190_v15 = vld [vmem:[%s563_s2 + $0x18] sm:$0xff] }
  0x14   : > { %v228_v25 = vadd.f32 %v227_v20, %v220_v19  ;;  %v202_v26 = vadd.f32 %v201_v23, %v472_v21 }
  0x15   : > { %198 = vadd.xlane.f32.xlu0 %v197_v17  ;;  %v224_v22 = vadd.f32 %v223_v18, %v217_v14  ;;  %v207_v31 = vsub.f32 1.0, %v206_v30  ;;  %v189_v14 = vld [vmem:[%s563_s2 + $0x10] sm:$0xff] }
  0x16   : > { %v229_v27 = vadd.f32 %v228_v25, %v221_v24 }
  0x17   : > { %225 = vadd.xlane.f32.xlu1 %v224_v22  ;;  %v208_v32 = vmul.f32 %v388_v29, %v207_v31 }
  0x19   : > { %v209_v33 = vadd.f32 %v388_v29, %v208_v32 }
  0x1b   : > { %v211_v34 = vsel %vm210_vm0, %v388_v29, %v209_v33 }
  0x1d   : > { %203 = vadd.xlane.f32.xlu0 %v202_v26 }
  0x1f   : > { %230 = vadd.xlane.f32.xlu1 %v229_v27 }
  0x88   : > { %v199_v35 = vpop.xlane.xlu0 %198 }
  0x89   : > { %v212_v36 = vmul.f32 %v211_v34, %v199_v35  ;;  %v185_v35 = vld [vmem:[%s562_s1 + $0x30] sm:$0xff] }
  0x8a   : > { %v226_v37 = vpop.xlane.xlu1 %225 }
  0x8b   : > { %v232_v38 = vmul.f32 %v226_v37, %v211_v34  ;;  %v234_v39 = vmul.f32 %v212_v36, %v212_v36  ;;  %v262_v59 = vsub.f32 %v438_v0, %v212_v36  ;;  %v263_v60 = vsub.f32 %v440_v1, %v212_v36  ;;  %v182_v0 = vld [vmem:[%s562_s1 + $0x18] sm:$0xff]  ;;  %v191_v37 = vld [vmem:[%s563_s2 + $0x20] sm:$0xff] }
  0x8c   : > { %v264_v61 = vsub.f32 %v442_v2, %v212_v36  ;;  %v265_v62 = vsub.f32 %v444_v3, %v212_v36  ;;  %v187_v3 = vld [vmem:[%s563_s2] sm:$0xff] }
  0x8d   : > { %v236_v40 = vsub.f32 %v232_v38, %v234_v39 }
  0x8f   : > { %v238_v41 = vmax.f32 %v236_v40, 0.0 }
  0x90   : > { %v204_v42 = vpop.xlane.xlu0 %203 }
  0x91   : > { %v478_v43 = vmul.f32 %v211_v34, %v204_v42  ;;  %v240_v44 = vadd.f32 1e-05, %v238_v41  ;;  %v192_v42 = vld [vmem:[%s563_s2 + $0x28] sm:$0xff] }
  0x92   : > { %v231_v45 = vpop.xlane.xlu1 %230 }
  0x93   : > { %389 = vrsqrt.f32 %v240_v44  ;;  %v233_v46 = vmul.f32 %v231_v45, %v211_v34  ;;  %v235_v47 = vmul.f32 %v478_v43, %v478_v43  ;;  %vm248_vm2 = vweird.f32 %v240_v44  ;;  %v183_v34 = vld [vmem:[%s562_s1 + $0x20] sm:$0xff] }
  0x94   : > { %v266_v22 = vsub.f32 %v454_v8, %v478_v43  ;;  %v267_v28 = vsub.f32 %v456_v9, %v478_v43  ;;  %v268_v29 = vsub.f32 %v458_v10, %v478_v43  ;;  %v269_v33 = vsub.f32 %v472_v21, %v478_v43  ;;  %v184_v10 = vld [vmem:[%s562_s1 + $0x28] sm:$0xff]  ;;  %v186_v21 = vld [vmem:[%s562_s1 + $0x38] sm:$0xff]  ;;  %v193_v43 = vld [vmem:[%s563_s2 + $0x30] sm:$0xff] }
  0x95   : > { %v237_v48 = vsub.f32 %v233_v46, %v235_v47 }
  0x97   : > { %v239_v49 = vmax.f32 %v237_v48, 0.0 }
  0x99   : > { %v390_v50 = vpop.eup %389  ;;  %v241_v51 = vadd.f32 1e-05, %v239_v49 }
  0x9a   : > { %v243_v52 = vmul.f32 %v390_v50, %v240_v44  ;;  %vm249_vm1 = vweird.f32 %v390_v50  ;;  %v194_v44 = vld [vmem:[%s563_s2 + $0x38] sm:$0xff] }
  0x9b   : > { %391 = vrsqrt.f32 %v241_v51  ;;  %vm250_vm3 = vmor %vm248_vm2, %vm249_vm1  ;;  %vm258_vm5 = vweird.f32 %v241_v51 }
  0x9c   : > { %v244_v53 = vmul.f32 %v390_v50, %v243_v52 }
  0x9e   : > { %v245_v54 = vmul.f32 0.5, %v244_v53 }
  0xa0   : > { %v246_v55 = vsub.f32 1.5, %v245_v54 }
  0xa1   : > { %v392_v56 = vpop.eup %391 }
  0xa2   : > { %v247_v57 = vmul.f32 %v390_v50, %v246_v55  ;;  %v253_v58 = vmul.f32 %v392_v56, %v241_v51  ;;  %vm259_vm4 = vweird.f32 %v392_v56 }
  0xa3   : > { %vm260_vm6 = vmor %vm258_vm5, %vm259_vm4 }
  0xa4   : > { %v251_v1 = vsel %vm250_vm3, %v390_v50, %v247_v57  ;;  %v254_v2 = vmul.f32 %v392_v56, %v253_v58 }
  0xa5   : > { %v270_v6 = vmul.f32 %v262_v59, %v251_v1  ;;  %v271_v7 = vmul.f32 %v263_v60, %v251_v1  ;;  %v272_v11 = vmul.f32 %v264_v61, %v251_v1  ;;  %v273_v12 = vmul.f32 %v265_v62, %v251_v1 }
  0xa6   : > { %v255_v16 = vmul.f32 0.5, %v254_v2 }
  0xa7   : > { %v278_v17 = vmul.f32 %v270_v6, %v179_v63  ;;  %v279_v18 = vmul.f32 %v271_v7, %v180_v4  ;;  %v280_v19 = vmul.f32 %v272_v11, %v181_v5  ;;  %v281_v20 = vmul.f32 %v273_v12, %v182_v0 }
  0xa8   : > { %v256_v23 = vsub.f32 1.5, %v255_v16 }
  0xa9   : > { %v286_v24 = vadd.f32 %v278_v17, %v187_v3  ;;  %v287_v25 = vadd.f32 %v279_v18, %v188_v13  ;;  %v288_v26 = vadd.f32 %v280_v19, %v189_v14  ;;  %v289_v27 = vadd.f32 %v281_v20, %v190_v15 }
  0xaa   : > { %v257_v8 = vmul.f32 %v392_v56, %v256_v23 }
  0xab   : > { %v294_v30 = vmax.f32 %v286_v24, 0.0  ;;  %v295_v31 = vmax.f32 %v287_v25, 0.0  ;;  %v296_v32 = vmax.f32 %v288_v26, 0.0  ;;  %v297_v9 = vmax.f32 %v289_v27, 0.0 }
  0xac   : > { %v261_v36 = vsel %vm260_vm6, %v392_v56, %v257_v8 }
  0xad   : > { %302 = vst [vmem:[%s517_s9] sm:$0xff] %v294_v30  ;;  %v274_v38 = vmul.f32 %v266_v22, %v261_v36  ;;  %v275_v39 = vmul.f32 %v267_v28, %v261_v36  ;;  %v276_v40 = vmul.f32 %v268_v29, %v261_v36  ;;  %v277_v41 = vmul.f32 %v269_v33, %v261_v36 }
  0xae   : > { %303 = vst [vmem:[%s517_s9 + $0x8] sm:$0xff] %v295_v31 }
  0xaf   : > { %304 = vst [vmem:[%s517_s9 + $0x10] sm:$0xff] %v296_v32  ;;  %v282_v45 = vmul.f32 %v274_v38, %v183_v34  ;;  %v283_v46 = vmul.f32 %v275_v39, %v184_v10  ;;  %v284_v47 = vmul.f32 %v276_v40, %v185_v35  ;;  %v285_v48 = vmul.f32 %v277_v41, %v186_v21 }
  0xb0   : > { %305 = vst [vmem:[%s517_s9 + $0x18] sm:$0xff] %v297_v9 }
  0xb1   : > { %v290_v49 = vadd.f32 %v282_v45, %v191_v37  ;;  %v291_v50 = vadd.f32 %v283_v46, %v192_v42  ;;  %v292_v51 = vadd.f32 %v284_v47, %v193_v43  ;;  %v293_v52 = vadd.f32 %v285_v48, %v194_v44 }
  0xb3   : > { %v298_v53 = vmax.f32 %v290_v49, 0.0  ;;  %v299_v54 = vmax.f32 %v291_v50, 0.0  ;;  %v300_v55 = vmax.f32 %v292_v51, 0.0  ;;  %v301_v56 = vmax.f32 %v293_v52, 0.0 }
  0xb5   : > { %306 = vst [vmem:[%s517_s9 + $0x20] sm:$0xff] %v298_v53 }
  0xb6   : > { %307 = vst [vmem:[%s517_s9 + $0x28] sm:$0xff] %v299_v54 }
  0xb7   : > { %308 = vst [vmem:[%s517_s9 + $0x30] sm:$0xff] %v300_v55 }
  0xb8   : > { %309 = vst [vmem:[%s517_s9 + $0x38] sm:$0xff] %v301_v56 }
  0xb9 PF: > { %s13_s12 = sadd.s32 1, %s399_s12  }
  0xba   : > { %p10_p4 = scmp.ge.s32.totalorder %s13_s12, 4  }
  0xbc   :  { %12 = sbr.rel (!%p10_p4) target bundleno = 1 (0x1), region = 62 }

// kernel: _lambda_.17
= control target key start
LH: loop header
LB: loop body
LE: loop exit
PB: predicated region body
PF: predicated region fallthrough
CT: control target
= control target key end

     0   :  { %s1417_s12 = smov 0   ;;  %s1419_s13 = smov 0   ;;  %s1666_s0 = inlined_call_operand.vmem [shape: bf16[32,441], index: 0, kind: input, shape index: {}]   ;;  %s1667_s1 = inlined_call_operand.vmem [shape: bf16[2,441,256], index: 1, kind: input, shape index: {}]   ;;  %s1668_s2 = inlined_call_operand.vmem [shape: f32[32,1], index: 2, kind: input, shape index: {}]   ;;  %s1669_s3 = inlined_call_operand.vmem [shape: f32[2,32,256], index: 3, kind: output, shape index: {}]  }
   0x1   :  { %s1421_s14 = smov 0  }
   0x2 LB: > { %s32_s15 = sadd.s32 1, %s1389_s13  ;;  %p1011_p0 = scmp.ge.s32.totalorder %s1393_s14, 1  ;;  %s1393_s14 = sphi %s1421_s14, %s13_s14   ;;  %s1389_s13 = sphi %s1419_s13, %s1671_s13   ;;  %s1385_s12 = sphi %s1417_s12, %s1670_s12  }
   0x3   : > { %p34_p1 = scmp.ge.s32.totalorder %s32_s15, 2  ;;  %p184_p2 = scmp.lt.s32.totalorder %s1393_s14, 3 }
   0x5   : > { %s1673_s15 = smov (%p34_p1, %s32_s15), 0  ;;  %p185_p3 = pnand %p1011_p0, %p184_p2 }
   0x6   : > { %p234_p4 = scmp.lt.s32.totalorder (!%p185_p3), %s1385_s12, 1 }
   0x7   : > { %188 = sbr.rel (%p185_p3) target bundleno = 245 (0xf5), region = 32 }
   0xc   : > { %vm666_vm0 = vcmask 1043456   ;;  %s1675_s12 = smov (!%p234_p4, %s1385_s12), 1  ;;  %vm667_vm1 = vcmask 1044480   ;;  %v1395_v0 = vmov 65535   ;;  %v1279_v62 = vld [vmem:[%s1666_s0 + $0xc] sm:$0xf] }
   0xd   : > { %v668_v1 = vsel %vm666_vm0, 4294967295, %v1395_v0  ;;  %s1342_s16 = smul.u32 448, %s1675_s12  ;;  %vm659_vm2 = vcmask 465920  }
   0xe   : > { %v1443_v2 = vsel %vm667_vm1, %v668_v1, 0 }
   0xf   : > { %s1441_s19 = scalar_lea.vmem %s1667_s1, %s1342_s16 }
  0x10   : > { %v1105_v3 = vld [vmem:[%s1441_s19 + $0x70] sm:$0xf]  ;;  %v1301_v4 = vld [vmem:[%s1441_s19 + $0x74] sm:$0xf0]  ;;  %v1097_v12 = vld [vmem:[%s1441_s19 + $0x60] sm:$0xf] }
  0x11   : > { %v1169_v5 = vld [vmem:[%s1441_s19 + $0xf0] sm:$0xf]  ;;  %v1106_v6 = vor.u32 %v1301_v4, %v1105_v3  ;;  %v1317_v7 = vld [vmem:[%s1441_s19 + $0xf4] sm:$0xf0]  ;;  %v1299_v13 = vld [vmem:[%s1441_s19 + $0x64] sm:$0xf0] }
  0x12   : > { %v1233_v8 = vld [vmem:[%s1441_s19 + $0x170] sm:$0xf]  ;;  %v1333_v9 = vld [vmem:[%s1441_s19 + $0x174] sm:$0xf0]  ;;  %v1170_v10 = vor.u32 %v1317_v7, %v1169_v5  ;;  %v1161_v14 = vld [vmem:[%s1441_s19 + $0xe0] sm:$0xf]  ;;  %v1098_v15 = vor.u32 %v1299_v13, %v1097_v12 }
  0x13   : > { %v1234_v11 = vor.u32 %v1333_v9, %v1233_v8  ;;  %676 = vmatpush.bf16.msra.mxu0 %v1106_v6  ;;  %v1315_v16 = vld [vmem:[%s1441_s19 + $0xe4] sm:$0xf0]  ;;  %v1225_v17 = vld [vmem:[%s1441_s19 + $0x160] sm:$0xf]  ;;  %v1265_v21 = vld [vmem:[%s1441_s19 + $0x1b0] sm:$0xf] }
  0x14   : > { %v1331_v18 = vld [vmem:[%s1441_s19 + $0x164] sm:$0xf0]  ;;  %695 = vmatpush.bf16.msra.mxu1 %v1170_v10  ;;  %v1162_v19 = vor.u32 %v1315_v16, %v1161_v14  ;;  %v1341_v22 = vld [vmem:[%s1441_s19 + $0x1b4] sm:$0x10]  ;;  %v1089_v23 = vld [vmem:[%s1441_s19 + $0x50] sm:$0xf] }
  0x15   : > { %714 = vmatpush.bf16.msra.mxu2 %v1234_v11  ;;  %v1226_v20 = vor.u32 %v1331_v18, %v1225_v17  ;;  %v1266_v24 = vor.u32 %v1341_v22, %v1265_v21  ;;  %v1297_v25 = vld [vmem:[%s1441_s19 + $0x54] sm:$0xf0]  ;;  %v1153_v26 = vld [vmem:[%s1441_s19 + $0xd0] sm:$0xf]  ;;  %v1257_v30 = vld [vmem:[%s1441_s19 + $0x1a0] sm:$0xf] }
  0x16   : > { %v1313_v27 = vld [vmem:[%s1441_s19 + $0xd4] sm:$0xf0]  ;;  %v1217_v28 = vld [vmem:[%s1441_s19 + $0x150] sm:$0xf]  ;;  %v1090_v32 = vor.u32 %v1297_v25, %v1089_v23  ;;  %v1339_v33 = vld [vmem:[%s1441_s19 + $0x1a4] sm:$0xf0] }
  0x17   : > { %v1329_v29 = vld [vmem:[%s1441_s19 + $0x154] sm:$0xf0]  ;;  %677 = vmatpush.bf16.msra.mxu0 %v1098_v15  ;;  %v671_v31 = vand.u32 %v1266_v24, %v1443_v2  ;;  %v1154_v34 = vor.u32 %v1313_v27, %v1153_v26  ;;  %v1081_v36 = vld [vmem:[%s1441_s19 + $0x40] sm:$0xf]  ;;  %v1295_v37 = vld [vmem:[%s1441_s19 + $0x44] sm:$0xf0]  ;;  %v1258_v39 = vor.u32 %v1339_v33, %v1257_v30 }
  0x18   : > { %696 = vmatpush.bf16.msra.mxu1 %v1162_v19  ;;  %v1218_v35 = vor.u32 %v1329_v29, %v1217_v28  ;;  %v1145_v38 = vld [vmem:[%s1441_s19 + $0xc0] sm:$0xf]  ;;  %v1311_v40 = vld [vmem:[%s1441_s19 + $0xc4] sm:$0xf0]  ;;  %v1249_v43 = vld [vmem:[%s1441_s19 + $0x190] sm:$0xf]  ;;  %v1082_v45 = vor.u32 %v1295_v37, %v1081_v36 }
  0x19   : > { %715 = vmatpush.bf16.msra.mxu2 %v1226_v20  ;;  %737 = vmatpush.bf16.msra.mxu3 %v671_v31  ;;  %v1209_v41 = vld [vmem:[%s1441_s19 + $0x140] sm:$0xf]  ;;  %v1327_v42 = vld [vmem:[%s1441_s19 + $0x144] sm:$0xf0]  ;;  %v1337_v44 = vld [vmem:[%s1441_s19 + $0x194] sm:$0xf0]  ;;  %v1146_v46 = vor.u32 %v1311_v40, %v1145_v38 }
  0x1a   : > { %v1210_v47 = vor.u32 %v1327_v42, %v1209_v41  ;;  %v1073_v48 = vld [vmem:[%s1441_s19 + $0x30] sm:$0xf]  ;;  %v1293_v49 = vld [vmem:[%s1441_s19 + $0x34] sm:$0xf0]  ;;  %v1250_v51 = vor.u32 %v1337_v44, %v1249_v43  ;;  %v1241_v55 = vld [vmem:[%s1441_s19 + $0x180] sm:$0xf] }
  0x1b   : > { %678 = vmatpush.bf16.msra.mxu0 %v1090_v32  ;;  %v1137_v50 = vld [vmem:[%s1441_s19 + $0xb0] sm:$0xf]  ;;  %v1309_v52 = vld [vmem:[%s1441_s19 + $0xb4] sm:$0xf0]  ;;  %v1335_v56 = vld [vmem:[%s1441_s19 + $0x184] sm:$0xf0]  ;;  %v1074_v57 = vor.u32 %v1293_v49, %v1073_v48 }
  0x1c   : > { %697 = vmatpush.bf16.msra.mxu1 %v1154_v34  ;;  %v1201_v53 = vld [vmem:[%s1441_s19 + $0x130] sm:$0xf]  ;;  %v1325_v54 = vld [vmem:[%s1441_s19 + $0x134] sm:$0xf0]  ;;  %v1300_v58 = vld [vmem:[%s1441_s19 + $0x74] sm:$0xf]  ;;  %v1138_v60 = vor.u32 %v1309_v52, %v1137_v50  ;;  %v1242_v1 = vor.u32 %v1335_v56, %v1241_v55 }
  0x1d   : > { %716 = vmatpush.bf16.msra.mxu2 %v1218_v35  ;;  %738 = vmatpush.bf16.msra.mxu3 %v1258_v39  ;;  %v1107_v59 = vld [vmem:[%s1441_s19 + $0x78] sm:$0xf0]  ;;  %v1202_v61 = vor.u32 %v1325_v54, %v1201_v53  ;;  %v1065_v63 = vld [vmem:[%s1441_s19 + $0x20] sm:$0xf]  ;;  %v1291_v0 = vld [vmem:[%s1441_s19 + $0x24] sm:$0xf0] }
  0x1e   : > { %v1027_v3 = vld [vmem:[%s1666_s0 + $0x18] sm:$0xf0]  ;;  %v1129_v4 = vld [vmem:[%s1441_s19 + $0xa0] sm:$0xf]  ;;  %v1307_v5 = vld [vmem:[%s1441_s19 + $0xa4] sm:$0xf0]  ;;  %v1110_v8 = vor.u32 %v1300_v58, %v1107_v59  ;;  %v1066_v9 = vor.u32 %v1291_v0, %v1065_v63 }
  0x1f   : > { %679 = vmatpush.bf16.msra.mxu0 %v1082_v45  ;;  %v1193_v6 = vld [vmem:[%s1441_s19 + $0x120] sm:$0xf]  ;;  %v1323_v7 = vld [vmem:[%s1441_s19 + $0x124] sm:$0xf0]  ;;  %v1298_v10 = vld [vmem:[%s1441_s19 + $0x64] sm:$0xf]  ;;  %v1500_v12 = vor.u32 %v1279_v62, %v1027_v3  ;;  %v1130_v13 = vor.u32 %v1307_v5, %v1129_v4 }
  0x20   : > { %698 = vmatpush.bf16.msra.mxu1 %v1146_v46  ;;  %v1099_v11 = vld [vmem:[%s1441_s19 + $0x68] sm:$0xf0]  ;;  %v1057_v14 = vld [vmem:[%s1441_s19 + $0x10] sm:$0xf]  ;;  %v1289_v15 = vld [vmem:[%s1441_s19 + $0x14] sm:$0xf0]  ;;  %v1194_v17 = vor.u32 %v1323_v7, %v1193_v6 }
  0x21   : > { %717 = vmatpush.bf16.msra.mxu2 %v1210_v47  ;;  %739 = vmatpush.bf16.msra.mxu3 %v1250_v51  ;;  %v1121_v16 = vld [vmem:[%s1441_s19 + $0x90] sm:$0xf]  ;;  %v1305_v18 = vld [vmem:[%s1441_s19 + $0x94] sm:$0xf0]  ;;  %v1102_v21 = vor.u32 %v1298_v10, %v1099_v11  ;;  %v1049_v22 = vld [vmem:[%s1441_s19] sm:$0xf]  ;;  %v1058_v25 = vor.u32 %v1289_v15, %v1057_v14 }
  0x22   : > { %v1185_v19 = vld [vmem:[%s1441_s19 + $0x110] sm:$0xf]  ;;  %v1321_v20 = vld [vmem:[%s1441_s19 + $0x114] sm:$0xf0]  ;;  %v1287_v23 = vld [vmem:[%s1441_s19 + $0x4] sm:$0xf0]  ;;  %v1122_v29 = vor.u32 %v1305_v18, %v1121_v16 }
  0x23   : > { %680 = vmatpush.bf16.msra.mxu0 %v1074_v57  ;;  %v1296_v24 = vld [vmem:[%s1441_s19 + $0x54] sm:$0xf]  ;;  %v1091_v26 = vld [vmem:[%s1441_s19 + $0x58] sm:$0xf0]  ;;  %v1113_v30 = vld [vmem:[%s1441_s19 + $0x80] sm:$0xf]  ;;  %v1186_v33 = vor.u32 %v1321_v20, %v1185_v19  ;;  %v1050_v42 = vor.u32 %v1287_v23, %v1049_v22 }
  0x24   : > { %699 = vmatpush.bf16.msra.mxu1 %v1138_v60  ;;  %v1340_v27 = vld [vmem:[%s1441_s19 + $0x1b4] sm:$0xf]  ;;  %v1267_v28 = vld [vmem:[%s1441_s19 + $0x1b8] sm:$0x10]  ;;  %v1303_v31 = vld [vmem:[%s1441_s19 + $0x84] sm:$0xf0]  ;;  %v1094_v37 = vor.u32 %v1296_v24, %v1091_v26 }
  0x25   : > { %718 = vmatpush.bf16.msra.mxu2 %v1202_v61  ;;  %740 = vmatpush.bf16.msra.mxu3 %v1242_v1  ;;  %v1177_v32 = vld [vmem:[%s1441_s19 + $0x100] sm:$0xf]  ;;  %v1319_v34 = vld [vmem:[%s1441_s19 + $0x104] sm:$0xf0]  ;;  %v1316_v35 = vld [vmem:[%s1441_s19 + $0xf4] sm:$0xf]  ;;  %v1270_v39 = vor.u32 %v1340_v27, %v1267_v28  ;;  %v1114_v46 = vor.u32 %v1303_v31, %v1113_v30 }
  0x26   : > { %v1171_v36 = vld [vmem:[%s1441_s19 + $0xf8] sm:$0xf0]  ;;  %v1017_v38 = vld [vmem:[%s1666_s0] sm:$0xf]  ;;  %v1332_v40 = vld [vmem:[%s1441_s19 + $0x174] sm:$0xf]  ;;  %v1178_v51 = vor.u32 %v1319_v34, %v1177_v32 }
  0x27   : > { %681 = vmatpush.bf16.msra.mxu0 %v1066_v9  ;;  %v1235_v41 = vld [vmem:[%s1441_s19 + $0x178] sm:$0xf0]  ;;  %v1280_v43 = vld [vmem:[%s1666_s0 + $0xc] sm:$0xf0]  ;;  %v1278_v44 = vld [vmem:[%s1666_s0 + $0x4] sm:$0xf]  ;;  %v1174_v50 = vor.u32 %v1316_v35, %v1171_v36  ;;  %v674_v57 = vand.u32 %v1270_v39, %v1443_v2 }
  0x28   : > { %1271 = vmatmul.msk.bf16.vlgmr.msra.gmra.mxu3 %vm659_vm2, %v1500_v12  ;;  %700 = vmatpush.bf16.msra.mxu1 %v1130_v13  ;;  %v1019_v45 = vld [vmem:[%s1666_s0 + $0x10] sm:$0xf0]  ;;  %v1025_v47 = vld [vmem:[%s1666_s0 + $0x8] sm:$0xf]  ;;  %v1294_v48 = vld [vmem:[%s1441_s19 + $0x44] sm:$0xf]  ;;  %v1238_v53 = vor.u32 %v1332_v40, %v1235_v41  ;;  %v1546_v56 = vor.u32 %v1280_v43, %v1017_v38 }
  0x29   : > { %752 = vmatpush.bf16.msrb.mxu3 %v1110_v8  ;;  %719 = vmatpush.bf16.msra.mxu2 %v1194_v17  ;;  %v1083_v49 = vld [vmem:[%s1441_s19 + $0x48] sm:$0xf0]  ;;  %v1281_v52 = vld [vmem:[%s1666_s0 + $0x14] sm:$0xf0]  ;;  %v1314_v54 = vld [vmem:[%s1441_s19 + $0xe4] sm:$0xf]  ;;  %v1551_v60 = vor.u32 %v1278_v44, %v1019_v45 }
  0x2a   : > { %v1163_v55 = vld [vmem:[%s1441_s19 + $0xe8] sm:$0xf0]  ;;  %v1330_v58 = vld [vmem:[%s1441_s19 + $0x164] sm:$0xf]  ;;  %v1086_v61 = vor.u32 %v1294_v48, %v1083_v49  ;;  %v1555_v0 = vor.u32 %v1281_v52, %v1025_v47  ;;  %v1292_v1 = vld [vmem:[%s1441_s19 + $0x34] sm:$0xf] }
  0x2b   : > { %682 = vmatpush.bf16.msra.mxu0 %v1058_v25  ;;  %v1227_v59 = vld [vmem:[%s1441_s19 + $0x168] sm:$0xf0]  ;;  %v1338_v62 = vld [vmem:[%s1441_s19 + $0x1a4] sm:$0xf]  ;;  %v1075_v3 = vld [vmem:[%s1441_s19 + $0x38] sm:$0xf0]  ;;  %v1166_v4 = vor.u32 %v1314_v54, %v1163_v55 }
  0x2c   : > { %701 = vmatpush.bf16.msra.mxu1 %v1122_v29  ;;  %v1259_v63 = vld [vmem:[%s1441_s19 + $0x1a8] sm:$0xf0]  ;;  %v1043_v5 = vld [vmem:[%s1666_s0 + $0x38] sm:$0xf0]  ;;  %v1230_v6 = vor.u32 %v1330_v58, %v1227_v59  ;;  %v1312_v7 = vld [vmem:[%s1441_s19 + $0xd4] sm:$0xf]  ;;  %v1078_v13 = vor.u32 %v1292_v1, %v1075_v3 }
  0x2d   : > { %753 = vmatpush.bf16.msrb.mxu3 %v1102_v21  ;;  %720 = vmatpush.bf16.msra.mxu2 %v1186_v33  ;;  %v1283_v2 = vld [vmem:[%s1666_s0 + $0x2c] sm:$0xf]  ;;  %v1155_v8 = vld [vmem:[%s1441_s19 + $0xd8] sm:$0xf0]  ;;  %v1262_v9 = vor.u32 %v1338_v62, %v1259_v63  ;;  %v1328_v10 = vld [vmem:[%s1441_s19 + $0x154] sm:$0xf] }
  0x2e   : > { %v1219_v11 = vld [vmem:[%s1441_s19 + $0x158] sm:$0xf0]  ;;  %v1336_v14 = vld [vmem:[%s1441_s19 + $0x194] sm:$0xf]  ;;  %v1574_v16 = vor.u32 %v1283_v2, %v1043_v5  ;;  %v1290_v17 = vld [vmem:[%s1441_s19 + $0x24] sm:$0xf]  ;;  %v1158_v19 = vor.u32 %v1312_v7, %v1155_v8 }
  0x2f   : > { %683 = vmatpush.bf16.msra.mxu0 %v1050_v42  ;;  %v1251_v15 = vld [vmem:[%s1441_s19 + $0x198] sm:$0xf0]  ;;  %v1067_v18 = vld [vmem:[%s1441_s19 + $0x28] sm:$0xf0]  ;;  %v1222_v20 = vor.u32 %v1328_v10, %v1219_v11  ;;  %v1310_v21 = vld [vmem:[%s1441_s19 + $0xc4] sm:$0xf] }
  0x30   : > { %702 = vmatpush.bf16.msra.mxu1 %v1114_v46  ;;  %v1147_v22 = vld [vmem:[%s1441_s19 + $0xc8] sm:$0xf0]  ;;  %v855_v23 = vld [vmem:[%s1668_s2] sm:$0xff]  ;;  %v1254_v26 = vor.u32 %v1336_v14, %v1251_v15  ;;  %v1396_v27 = vmov 0   ;;  %v1070_v28 = vor.u32 %v1290_v17, %v1067_v18  ;;  %v1288_v31 = vld [vmem:[%s1441_s19 + $0x14] sm:$0xf] }
  0x31   : > { %754 = vmatpush.bf16.msrb.mxu3 %v1094_v37  ;;  %721 = vmatpush.bf16.msra.mxu2 %v1178_v51  ;;  %v1326_v24 = vld [vmem:[%s1441_s19 + $0x144] sm:$0xf]  ;;  %v1211_v25 = vld [vmem:[%s1441_s19 + $0x148] sm:$0xf0]  ;;  %v1059_v32 = vld [vmem:[%s1441_s19 + $0x18] sm:$0xf0]  ;;  %v1150_v33 = vor.u32 %v1310_v21, %v1147_v22 }
  0x32   : > { %684 = vmatmul.bf16.vlgmr.msra.gmra.mxu0 %v1546_v56  ;;  %1369 = vset.pattern.permute.xlu0 %v1396_v27  ;;  %v1334_v29 = vld [vmem:[%s1441_s19 + $0x184] sm:$0xf]  ;;  %v1243_v30 = vld [vmem:[%s1441_s19 + $0x188] sm:$0xf0]  ;;  %v1214_v34 = vor.u32 %v1326_v24, %v1211_v25  ;;  %v1033_v35 = vld [vmem:[%s1666_s0 + $0x20] sm:$0xf]  ;;  %v1062_v43 = vor.u32 %v1288_v31, %v1059_v32 }
  0x33   : > { %771 = vmatpush.bf16.msrb.mxu0 %v1174_v50  ;;  %703 = vmatmul.bf16.vlgmr.msra.gmra.mxu1 %v1551_v60  ;;  %v1284_v36 = vld [vmem:[%s1666_s0 + $0x2c] sm:$0xf0]  ;;  %v1308_v37 = vld [vmem:[%s1441_s19 + $0xb4] sm:$0xf]  ;;  %v1139_v38 = vld [vmem:[%s1441_s19 + $0xb8] sm:$0xf0]  ;;  %v1246_v41 = vor.u32 %v1334_v29, %v1243_v30 }
  0x34   : > { %790 = vmatpush.bf16.msrb.mxu1 %v1238_v53  ;;  %722 = vmatmul.bf16.vlgmr.msra.gmra.mxu2 %v1555_v0  ;;  %v1324_v39 = vld [vmem:[%s1441_s19 + $0x134] sm:$0xf]  ;;  %v1203_v40 = vld [vmem:[%s1441_s19 + $0x138] sm:$0xf0]  ;;  %v1282_v44 = vld [vmem:[%s1666_s0 + $0x24] sm:$0xf]  ;;  %v1142_v49 = vor.u32 %v1308_v37, %v1139_v38  ;;  %v1034_v55 = vor.u32 %v1284_v36, %v1033_v35 }
  0x35   : > { %813 = vmatpush.bf16.msrb.mxu2 %v674_v57  ;;  %755 = vmatpush.bf16.msrb.mxu3 %v1086_v61  ;;  %v857_v42 = vld [vmem:[%s1668_s2 + $0x10] sm:$0xff]  ;;  %v1041_v46 = vld [vmem:[%s1666_s0 + $0x28] sm:$0xf]  ;;  %v1286_v47 = vld [vmem:[%s1441_s19 + $0x4] sm:$0xf]  ;;  %v1206_v52 = vor.u32 %v1324_v39, %v1203_v40 }
  0x36   : > { %861 = vperm.xlu0 %1369, %v855_v23   ;;  %1370 = vset.pattern.permute.xlu1 %v1396_v27  ;;  %v1035_v45 = vld [vmem:[%s1666_s0 + $0x30] sm:$0xf0]  ;;  %v1051_v48 = vld [vmem:[%s1441_s19 + $0x8] sm:$0xf0]  ;;  %v1285_v51 = vld [vmem:[%s1666_s0 + $0x34] sm:$0xf0] }
  0x37   : > { %772 = vmatpush.bf16.msrb.mxu0 %v1166_v4  ;;  %871 = vperm.xlu1 %1370, %v857_v42   ;;  %v856_v50 = vld [vmem:[%s1668_s2 + $0x8] sm:$0xff]  ;;  %v1306_v53 = vld [vmem:[%s1441_s19 + $0xa4] sm:$0xf]  ;;  %v1038_v59 = vor.u32 %v1282_v44, %v1035_v45  ;;  %v1054_v61 = vor.u32 %v1286_v47, %v1051_v48  ;;  %v1042_v62 = vor.u32 %v1285_v51, %v1041_v46  ;;  %v1304_v1 = vld [vmem:[%s1441_s19 + $0x94] sm:$0xf] }
  0x38   : > { %791 = vmatpush.bf16.msrb.mxu1 %v1230_v6  ;;  %1272 = vmatmul.msk.bf16.gmra.mxu3 %vm659_vm2, %v1574_v16  ;;  %v1131_v54 = vld [vmem:[%s1441_s19 + $0xa8] sm:$0xf0]  ;;  %v1322_v57 = vld [vmem:[%s1441_s19 + $0x124] sm:$0xf]  ;;  %v1123_v3 = vld [vmem:[%s1441_s19 + $0x98] sm:$0xf0] }
  0x39   : > { %814 = vmatpush.bf16.msrb.mxu2 %v1262_v9  ;;  %756 = vmatpush.bf16.msrb.mxu3 %v1078_v13  ;;  %v1195_v58 = vld [vmem:[%s1441_s19 + $0x128] sm:$0xf0]  ;;  %v1134_v63 = vor.u32 %v1306_v53, %v1131_v54  ;;  %v1320_v4 = vld [vmem:[%s1441_s19 + $0x114] sm:$0xf]  ;;  %v1187_v5 = vld [vmem:[%s1441_s19 + $0x118] sm:$0xf0]  ;;  %v1126_v7 = vor.u32 %v1304_v1, %v1123_v3 }
  0x3a   : > { %v1198_v2 = vor.u32 %v1322_v57, %v1195_v58  ;;  %v858_v6 = vld [vmem:[%s1668_s2 + $0x18] sm:$0xff]  ;;  %v1190_v8 = vor.u32 %v1320_v4, %v1187_v5  ;;  %v1302_v9 = vld [vmem:[%s1441_s19 + $0x84] sm:$0xf]  ;;  %v1115_v10 = vld [vmem:[%s1441_s19 + $0x88] sm:$0xf0] }
  0x3b   : > { %773 = vmatpush.bf16.msrb.mxu0 %v1158_v19  ;;  %v1318_v11 = vld [vmem:[%s1441_s19 + $0x104] sm:$0xf]  ;;  %v1179_v13 = vld [vmem:[%s1441_s19 + $0x108] sm:$0xf0]  ;;  %v1118_v14 = vor.u32 %v1302_v9, %v1115_v10  ;;  %s1277_s19 = sshll.u32 %s1675_s12, 6 }
  0x3c   : > { %792 = vmatpush.bf16.msrb.mxu1 %v1222_v20  ;;  %v1182_v15 = vor.u32 %v1318_v11, %v1179_v13  ;;  %s1647_s17 = scalar_lea.vmem %s1669_s3, %s1277_s19 }
  0x3d   : > { %815 = vmatpush.bf16.msrb.mxu2 %v1254_v26  ;;  %757 = vmatpush.bf16.msrb.mxu3 %v1070_v28 }
  0x3e   : > { %866 = vperm.xlu0 %1369, %v856_v50  }
  0x3f   : > { %774 = vmatpush.bf16.msrb.mxu0 %v1150_v33  ;;  %876 = vperm.xlu1 %1370, %v858_v6  }
  0x40   : > { %793 = vmatpush.bf16.msrb.mxu1 %v1214_v34 }
  0x41   : > { %816 = vmatpush.bf16.msrb.mxu2 %v1246_v41  ;;  %758 = vmatpush.bf16.msrb.mxu3 %v1062_v43 }
  0x42   : > { %689 = vmatmul.bf16.gmra.mxu0 %v1034_v55 }
  0x43   : > { %775 = vmatpush.bf16.msrb.mxu0 %v1142_v49  ;;  %708 = vmatmul.bf16.gmra.mxu1 %v1038_v59 }
  0x44   : > { %794 = vmatpush.bf16.msrb.mxu1 %v1206_v52  ;;  %727 = vmatmul.bf16.gmra.mxu2 %v1042_v62 }
  0x45   : > { %759 = vmatpush.bf16.msrb.mxu3 %v1054_v61 }
  0x47   : > { %776 = vmatpush.bf16.msrb.mxu0 %v1134_v63 }
  0x48   : > { %795 = vmatpush.bf16.msrb.mxu1 %v1198_v2  ;;  %760 = vmatmul.bf16.vlgmr.msrb.gmra.mxu3 %v1546_v56 }
  0x4b   : > { %777 = vmatpush.bf16.msrb.mxu0 %v1126_v7 }
  0x4c   : > { %796 = vmatpush.bf16.msrb.mxu1 %v1190_v8 }
  0x4f   : > { %778 = vmatpush.bf16.msrb.mxu0 %v1118_v14 }
  0x50   : > { %797 = vmatpush.bf16.msrb.mxu1 %v1182_v15 }
  0x52   : > { %779 = vmatmul.bf16.vlgmr.msrb.gmra.mxu0 %v1551_v60 }
  0x53   : > { %798 = vmatmul.bf16.vlgmr.msrb.gmra.mxu1 %v1555_v0 }
  0x54   : > { %1273 = vmatmul.msk.bf16.vlgmr.msrb.gmra.mxu2 %vm659_vm2, %v1500_v12 }
  0x58   : > { %765 = vmatmul.bf16.gmra.mxu3 %v1034_v55 }
  0x62   : > { %784 = vmatmul.bf16.gmra.mxu0 %v1038_v59 }
  0x63   : > { %803 = vmatmul.bf16.gmra.mxu1 %v1042_v62 }
  0x64   : > { %1274 = vmatmul.msk.bf16.gmra.mxu2 %vm659_vm2, %v1574_v16 }
  0xa8   : > { %v862_v21 = vpop.permute.xlu0 %861 }
  0xa9   : > { %v872_v35 = vpop.permute.xlu1 %871 }
  0xab   : > { %v742_v56 = vpop.f32.mrf.mxu3 }
  0xaf   : > { %v685_v17 = vpop.f32.mrf.mxu0 }
  0xb0   : > { %v704_v18 = vpop.f32.mrf.mxu1  ;;  %v867_v30 = vpop.permute.xlu0 %866 }
  0xb1   : > { %v705_v20 = vadd.f32 %v704_v18, %v685_v17  ;;  %v877_v49 = vpop.permute.xlu1 %876 }
  0xb3   : > { %v744_v19 = vpop.f32.mrf.mxu3 }
  0xb7   : > { %v723_v22 = vpop.f32.mrf.mxu2  ;;  %v687_v60 = vpop.f32.mrf.mxu0 }
  0xb8   : > { %v724_v23 = vadd.f32 %v723_v22, %v705_v20  ;;  %v706_v0 = vpop.f32.mrf.mxu1 }
  0xb9   : > { %v707_v25 = vadd.f32 %v706_v0, %v687_v60 }
  0xba   : > { %v743_v24 = vadd.f32 %v742_v56, %v724_v23 }
  0xbb   : > { %v747_v12 = vpop.f32.mrf.mxu3 }
  0xbc   : > { %v879_v16 = vadd.f32 %v862_v21, %v743_v24 }
  0xbe   : > { %887 = vst [vmem:[%s1647_s17] sm:$0xff] %v879_v16 }
  0xbf   : > { %v725_v26 = vpop.f32.mrf.mxu2  ;;  %v690_v27 = vpop.f32.mrf.mxu0 }
  0xc0   : > { %v726_v28 = vadd.f32 %v725_v26, %v707_v25  ;;  %v709_v29 = vpop.f32.mrf.mxu1 }
  0xc1   : > { %v710_v34 = vadd.f32 %v709_v29, %v690_v27 }
  0xc2   : > { %v745_v31 = vadd.f32 %v744_v19, %v726_v28 }
  0xc3   : > { %v749_v32 = vpop.f32.mrf.mxu3 }
  0xc4   : > { %v881_v33 = vadd.f32 %v867_v30, %v745_v31 }
  0xc6   : > { %889 = vst [vmem:[%s1647_s17 + $0x10] sm:$0xff] %v881_v33 }
  0xc7   : > { %v728_v36 = vpop.f32.mrf.mxu2  ;;  %v692_v37 = vpop.f32.mrf.mxu0 }
  0xc8   : > { %v729_v38 = vadd.f32 %v728_v36, %v710_v34  ;;  %v711_v39 = vpop.f32.mrf.mxu1 }
  0xc9   : > { %v712_v43 = vadd.f32 %v711_v39, %v692_v37 }
  0xca   : > { %v748_v40 = vadd.f32 %v747_v12, %v729_v38 }
  0xcb   : > { %v761_v41 = vpop.f32.mrf.mxu3 }
  0xcc   : > { %v883_v42 = vadd.f32 %v872_v35, %v748_v40 }
  0xce   : > { %891 = vst [vmem:[%s1647_s17 + $0x20] sm:$0xff] %v883_v42 }
  0xcf   : > { %v730_v44 = vpop.f32.mrf.mxu2  ;;  %v780_v45 = vpop.f32.mrf.mxu0 }
  0xd0   : > { %v731_v46 = vadd.f32 %v730_v44, %v712_v43  ;;  %v781_v47 = vadd.f32 %v780_v45, %v761_v41  ;;  %v799_v48 = vpop.f32.mrf.mxu1 }
  0xd2   : > { %v750_v50 = vadd.f32 %v749_v32, %v731_v46  ;;  %v800_v51 = vadd.f32 %v799_v48, %v781_v47 }
  0xd3   : > { %v763_v53 = vpop.f32.mrf.mxu3 }
  0xd4   : > { %v885_v52 = vadd.f32 %v877_v49, %v750_v50 }
  0xd6   : > { %893 = vst [vmem:[%s1647_s17 + $0x30] sm:$0xff] %v885_v52 }
  0xd7   : > { %v818_v54 = vpop.f32.mrf.mxu2  ;;  %v782_v55 = vpop.f32.mrf.mxu0 }
  0xd8   : > { %v819_v57 = vadd.f32 %v818_v54, %v800_v51  ;;  %v801_v58 = vpop.f32.mrf.mxu1  ;;  %v783_v61 = vadd.f32 %v782_v55, %v763_v53 }
  0xda   : > { %v880_v59 = vadd.f32 %v862_v21, %v819_v57  ;;  %v802_v62 = vadd.f32 %v801_v58, %v783_v61 }
  0xdb   : > { %v766_v63 = vpop.f32.mrf.mxu3 }
  0xdc   : > { %888 = vst [vmem:[%s1647_s17 + $0x8] sm:$0xff] %v880_v59 }
  0xdf   : > { %v820_v2 = vpop.f32.mrf.mxu2  ;;  %v785_v1 = vpop.f32.mrf.mxu0 }
  0xe0   : > { %v821_v3 = vadd.f32 %v820_v2, %v802_v62  ;;  %v786_v4 = vadd.f32 %v785_v1, %v766_v63  ;;  %v804_v6 = vpop.f32.mrf.mxu1 }
  0xe2   : > { %v882_v5 = vadd.f32 %v867_v30, %v821_v3  ;;  %v805_v7 = vadd.f32 %v804_v6, %v786_v4 }
  0xe3   : > { %v768_v11 = vpop.f32.mrf.mxu3 }
  0xe4   : > { %890 = vst [vmem:[%s1647_s17 + $0x18] sm:$0xff] %v882_v5 }
  0xe7   : > { %v823_v8 = vpop.f32.mrf.mxu2  ;;  %v787_v9 = vpop.f32.mrf.mxu0 }
  0xe8   : > { %v824_v10 = vadd.f32 %v823_v8, %v805_v7  ;;  %v788_v14 = vadd.f32 %v787_v9, %v768_v11  ;;  %v806_v15 = vpop.f32.mrf.mxu1 }
  0xea   : > { %v884_v13 = vadd.f32 %v872_v35, %v824_v10  ;;  %v807_v56 = vadd.f32 %v806_v15, %v788_v14 }
  0xec   : > { %892 = vst [vmem:[%s1647_s17 + $0x28] sm:$0xff] %v884_v13 }
  0xef   : > { %v825_v17 = vpop.f32.mrf.mxu2 }
  0xf0   : > { %v826_v18 = vadd.f32 %v825_v17, %v807_v56 }
  0xf2   : > { %v886_v19 = vadd.f32 %v877_v49, %v826_v18 }
  0xf4   : > { %894 = vst [vmem:[%s1647_s17 + $0x38] sm:$0xff] %v886_v19 }
  0xf5 PF: > { %s13_s14 = sadd.s32 1, %s1393_s14   ;;  %s1670_s12 = smov %s1389_s13 }
  0xf6   : > { %p10_p5 = scmp.ge.s32.totalorder %s13_s14, 4   ;;  %s1671_s13 = smov %s1673_s15 }
  0xf8   :  { %12 = sbr.rel (!%p10_p5) target bundleno = 2 (0x2), region = 73 }

// kernel: _lambda_.22
= control target key start
LH: loop header
LB: loop body
LE: loop exit
PB: predicated region body
PF: predicated region fallthrough
CT: control target
= control target key end

     0   :  { %s505_s15 = smov 0   ;;  %s654_s0 = inlined_call_operand.vmem [shape: f32[2,16,512], index: 0, kind: input, shape index: {}]   ;;  %s655_s1 = inlined_call_operand.vmem [shape: f32[2,16,512], index: 1, kind: input, shape index: {}]   ;;  %s656_s2 = inlined_call_operand.vmem [shape: f32[16,512], index: 2, kind: input, shape index: {}]   ;;  %s657_s3 = inlined_call_operand.vmem [shape: f32[16,512], index: 3, kind: input, shape index: {}]   ;;  %s658_s4 = inlined_call_operand.vmem [shape: f32[2,16,512], index: 4, kind: output, shape index: {}]  }
   0x1 LB: > { %s440_s16 = sadd.s32 4294967295, %s477_s15   ;;  %p444_p0 = scmp.ge.s32.totalorder %s477_s15, 1  ;;  %s477_s15 = sphi %s505_s15, %s14_s15  }
   0x2   : > { %p172_p1 = scmp.lt.s32.totalorder %s477_s15, 3 }
   0x4   : > { %p173_p2 = pnand %p444_p0, %p172_p1 }
   0x5   : > { %p203_p3 = scmp.lt.s32.totalorder (!%p173_p2), %s440_s16, 1 }
   0x6   : > { %176 = sbr.rel (%p173_p2) target bundleno = 188 (0xbc), region = 36 }
   0xb   : > { %s660_s16 = smov (!%p203_p3, %s440_s16), 1  ;;  %v479_v28 = vmov 512.0   ;;  %v226_v63 = vld [vmem:[%s656_s2] sm:$0xff] }
   0xc   : > { %s513_s17 = sshll.u32 %s660_s16, 6  ;;  %465 = vrcp.f32 %v479_v28 }
   0xd   : > { %s207_s20 = scalar_lea.vmem %s654_s0, %s513_s17  ;;  %s574_s25 = scalar_lea.vmem %s655_s1, %s513_s17 }
   0xe   : > { %v519_v0 = vld [vmem:[%s207_s20] sm:$0xff]  ;;  %v521_v1 = vld [vmem:[%s207_s20 + $0x8] sm:$0xff]  ;;  %v523_v2 = vld [vmem:[%s207_s20 + $0x10] sm:$0xff]  ;;  %s607_s18 = scalar_lea.vmem %s658_s4, %s513_s17 }
   0xf   : > { %v525_v3 = vld [vmem:[%s207_s20 + $0x18] sm:$0xff]  ;;  %v242_v4 = vadd.f32 %v521_v1, %v519_v0  ;;  %v261_v5 = vmul.f32 %v519_v0, %v519_v0  ;;  %v262_v6 = vmul.f32 %v521_v1, %v521_v1  ;;  %v263_v7 = vmul.f32 %v523_v2, %v523_v2  ;;  %v535_v8 = vld [vmem:[%s207_s20 + $0x20] sm:$0xff]  ;;  %v537_v9 = vld [vmem:[%s207_s20 + $0x28] sm:$0xff] }
  0x10   : > { %v539_v10 = vld [vmem:[%s207_s20 + $0x30] sm:$0xff]  ;;  %v265_v11 = vmul.f32 %v535_v8, %v535_v8  ;;  %v266_v12 = vmul.f32 %v537_v9, %v537_v9  ;;  %v264_v14 = vmul.f32 %v525_v3, %v525_v3  ;;  %v247_v16 = vadd.f32 %v537_v9, %v535_v8  ;;  %v553_v21 = vld [vmem:[%s207_s20 + $0x38] sm:$0xff] }
  0x11   : > { %v243_v13 = vadd.f32 %v242_v4, %v523_v2  ;;  %v269_v15 = vadd.f32 %v262_v6, %v261_v5  ;;  %v267_v19 = vmul.f32 %v539_v10, %v539_v10  ;;  %v268_v24 = vmul.f32 %v553_v21, %v553_v21  ;;  %v234_v5 = vld [vmem:[%s657_s3] sm:$0xff] }
  0x12   : > { %v274_v20 = vadd.f32 %v266_v12, %v265_v11  ;;  %v248_v23 = vadd.f32 %v247_v16, %v539_v10  ;;  %v466_v29 = vpop.eup %465 }
  0x13   : > { %v244_v17 = vadd.f32 %v243_v13, %v525_v3  ;;  %v270_v18 = vadd.f32 %v269_v15, %v263_v7  ;;  %v253_v30 = vmul.f32 512.0, %v466_v29  ;;  %vm257_vm0 = vweird.f32 %v466_v29  ;;  %v235_v13 = vld [vmem:[%s657_s3 + $0x8] sm:$0xff]  ;;  %v237_v15 = vld [vmem:[%s657_s3 + $0x18] sm:$0xff] }
  0x14   : > { %v275_v25 = vadd.f32 %v274_v20, %v267_v19  ;;  %v249_v26 = vadd.f32 %v248_v23, %v553_v21  ;;  %v342_v23 = vld [vmem:[%s574_s25 + $0x8] sm:$0xff] }
  0x15   : > { %245 = vadd.xlane.f32.xlu0 %v244_v17  ;;  %v271_v22 = vadd.f32 %v270_v18, %v264_v14  ;;  %v254_v31 = vsub.f32 1.0, %v253_v30  ;;  %v236_v14 = vld [vmem:[%s657_s3 + $0x10] sm:$0xff]  ;;  %v341_v17 = vld [vmem:[%s574_s25] sm:$0xff] }
  0x16   : > { %v276_v27 = vadd.f32 %v275_v25, %v268_v24  ;;  %v343_v24 = vld [vmem:[%s574_s25 + $0x10] sm:$0xff]  ;;  %v344_v25 = vld [vmem:[%s574_s25 + $0x18] sm:$0xff] }
  0x17   : > { %272 = vadd.xlane.f32.xlu1 %v271_v22  ;;  %v255_v32 = vmul.f32 %v466_v29, %v254_v31 }
  0x19   : > { %v256_v33 = vadd.f32 %v466_v29, %v255_v32 }
  0x1b   : > { %v258_v34 = vsel %vm257_vm0, %v466_v29, %v256_v33 }
  0x1d   : > { %250 = vadd.xlane.f32.xlu0 %v249_v26 }
  0x1f   : > { %277 = vadd.xlane.f32.xlu1 %v276_v27 }
  0x88   : > { %v246_v35 = vpop.xlane.xlu0 %245 }
  0x89   : > { %v259_v36 = vmul.f32 %v258_v34, %v246_v35 }
  0x8a   : > { %v273_v37 = vpop.xlane.xlu1 %272 }
  0x8b   : > { %v279_v38 = vmul.f32 %v273_v37, %v258_v34  ;;  %v281_v39 = vmul.f32 %v259_v36, %v259_v36  ;;  %v309_v59 = vsub.f32 %v519_v0, %v259_v36  ;;  %v310_v60 = vsub.f32 %v521_v1, %v259_v36  ;;  %v227_v0 = vld [vmem:[%s656_s2 + $0x8] sm:$0xff]  ;;  %v228_v1 = vld [vmem:[%s656_s2 + $0x10] sm:$0xff] }
  0x8c   : > { %v311_v61 = vsub.f32 %v523_v2, %v259_v36  ;;  %v312_v62 = vsub.f32 %v525_v3, %v259_v36  ;;  %v229_v2 = vld [vmem:[%s656_s2 + $0x18] sm:$0xff] }
  0x8d   : > { %v283_v40 = vsub.f32 %v279_v38, %v281_v39  ;;  %v230_v39 = vld [vmem:[%s656_s2 + $0x20] sm:$0xff] }
  0x8f   : > { %v285_v41 = vmax.f32 %v283_v40, 0.0  ;;  %v231_v40 = vld [vmem:[%s656_s2 + $0x28] sm:$0xff] }
  0x90   : > { %v251_v42 = vpop.xlane.xlu0 %250 }
  0x91   : > { %v559_v43 = vmul.f32 %v258_v34, %v251_v42  ;;  %v287_v44 = vadd.f32 1e-05, %v285_v41 }
  0x92   : > { %v278_v45 = vpop.xlane.xlu1 %277 }
  0x93   : > { %467 = vrsqrt.f32 %v287_v44  ;;  %v280_v46 = vmul.f32 %v278_v45, %v258_v34  ;;  %v282_v47 = vmul.f32 %v559_v43, %v559_v43  ;;  %vm295_vm2 = vweird.f32 %v287_v44 }
  0x94   : > { %v313_v31 = vsub.f32 %v535_v8, %v559_v43  ;;  %v314_v37 = vsub.f32 %v537_v9, %v559_v43  ;;  %v315_v38 = vsub.f32 %v539_v10, %v559_v43  ;;  %v316_v8 = vsub.f32 %v553_v21, %v559_v43  ;;  %v232_v10 = vld [vmem:[%s656_s2 + $0x30] sm:$0xff]  ;;  %v233_v21 = vld [vmem:[%s656_s2 + $0x38] sm:$0xff]  ;;  %v238_v43 = vld [vmem:[%s657_s3 + $0x20] sm:$0xff] }
  0x95   : > { %v284_v48 = vsub.f32 %v280_v46, %v282_v47 }
  0x97   : > { %v286_v49 = vmax.f32 %v284_v48, 0.0 }
  0x99   : > { %v468_v50 = vpop.eup %467  ;;  %v288_v51 = vadd.f32 1e-05, %v286_v49 }
  0x9a   : > { %v290_v52 = vmul.f32 %v468_v50, %v287_v44  ;;  %vm296_vm1 = vweird.f32 %v468_v50 }
  0x9b   : > { %469 = vrsqrt.f32 %v288_v51  ;;  %vm297_vm3 = vmor %vm295_vm2, %vm296_vm1  ;;  %vm305_vm5 = vweird.f32 %v288_v51 }
  0x9c   : > { %v291_v53 = vmul.f32 %v468_v50, %v290_v52  ;;  %v241_v52 = vld [vmem:[%s657_s3 + $0x38] sm:$0xff] }
  0x9e   : > { %v292_v54 = vmul.f32 0.5, %v291_v53  ;;  %v345_v53 = vld [vmem:[%s574_s25 + $0x20] sm:$0xff] }
  0xa0   : > { %v293_v55 = vsub.f32 1.5, %v292_v54 }
  0xa1   : > { %v470_v56 = vpop.eup %469 }
  0xa2   : > { %v294_v57 = vmul.f32 %v468_v50, %v293_v55  ;;  %v300_v58 = vmul.f32 %v470_v56, %v288_v51  ;;  %vm306_vm4 = vweird.f32 %v470_v56  ;;  %v240_v51 = vld [vmem:[%s657_s3 + $0x30] sm:$0xff] }
  0xa3   : > { %vm307_vm6 = vmor %vm305_vm5, %vm306_vm4 }
  0xa4   : > { %v298_v3 = vsel %vm297_vm3, %v468_v50, %v294_v57  ;;  %v301_v4 = vmul.f32 %v470_v56, %v300_v58  ;;  %v239_v50 = vld [vmem:[%s657_s3 + $0x28] sm:$0xff] }
  0xa5   : > { %v317_v6 = vmul.f32 %v309_v59, %v298_v3  ;;  %v318_v7 = vmul.f32 %v310_v60, %v298_v3  ;;  %v319_v11 = vmul.f32 %v311_v61, %v298_v3  ;;  %v320_v12 = vmul.f32 %v312_v62, %v298_v3  ;;  %v346_v58 = vld [vmem:[%s574_s25 + $0x28] sm:$0xff]  ;;  %v347_v59 = vld [vmem:[%s574_s25 + $0x30] sm:$0xff]  ;;  %v348_v60 = vld [vmem:[%s574_s25 + $0x38] sm:$0xff] }
  0xa6   : > { %v302_v16 = vmul.f32 0.5, %v301_v4 }
  0xa7   : > { %v325_v18 = vmul.f32 %v317_v6, %v226_v63  ;;  %v326_v19 = vmul.f32 %v318_v7, %v227_v0  ;;  %v327_v20 = vmul.f32 %v319_v11, %v228_v1  ;;  %v328_v22 = vmul.f32 %v320_v12, %v229_v2 }
  0xa8   : > { %v303_v26 = vsub.f32 1.5, %v302_v16 }
  0xa9   : > { %v333_v27 = vadd.f32 %v325_v18, %v234_v5  ;;  %v334_v28 = vadd.f32 %v326_v19, %v235_v13  ;;  %v335_v29 = vadd.f32 %v327_v20, %v236_v14  ;;  %v336_v30 = vadd.f32 %v328_v22, %v237_v15 }
  0xaa   : > { %v304_v32 = vmul.f32 %v470_v56, %v303_v26 }
  0xab   : > { %v349_v33 = vadd.f32 %v341_v17, %v333_v27  ;;  %v350_v34 = vadd.f32 %v342_v23, %v334_v28  ;;  %v351_v35 = vadd.f32 %v343_v24, %v335_v29  ;;  %v352_v36 = vadd.f32 %v344_v25, %v336_v30 }
  0xac   : > { %v308_v41 = vsel %vm307_vm6, %v470_v56, %v304_v32 }
  0xad   : > { %v357_v42 = vmax.f32 %v349_v33, 0.0  ;;  %v358_v9 = vmax.f32 %v350_v34, 0.0  ;;  %v359_v44 = vmax.f32 %v351_v35, 0.0  ;;  %v360_v45 = vmax.f32 %v352_v36, 0.0 }
  0xae   : > { %v321_v46 = vmul.f32 %v313_v31, %v308_v41  ;;  %v322_v47 = vmul.f32 %v314_v37, %v308_v41  ;;  %v323_v48 = vmul.f32 %v315_v38, %v308_v41  ;;  %v324_v49 = vmul.f32 %v316_v8, %v308_v41 }
  0xaf   : > { %365 = vst [vmem:[%s607_s18] sm:$0xff] %v357_v42 }
  0xb0   : > { %366 = vst [vmem:[%s607_s18 + $0x8] sm:$0xff] %v358_v9  ;;  %v329_v54 = vmul.f32 %v321_v46, %v230_v39  ;;  %v330_v55 = vmul.f32 %v322_v47, %v231_v40  ;;  %v331_v56 = vmul.f32 %v323_v48, %v232_v10  ;;  %v332_v57 = vmul.f32 %v324_v49, %v233_v21 }
  0xb1   : > { %367 = vst [vmem:[%s607_s18 + $0x10] sm:$0xff] %v359_v44 }
  0xb2   : > { %368 = vst [vmem:[%s607_s18 + $0x18] sm:$0xff] %v360_v45  ;;  %v337_v61 = vadd.f32 %v329_v54, %v238_v43  ;;  %v338_v62 = vadd.f32 %v330_v55, %v239_v50  ;;  %v339_v63 = vadd.f32 %v331_v56, %v240_v51  ;;  %v340_v0 = vadd.f32 %v332_v57, %v241_v52 }
  0xb4   : > { %v353_v1 = vadd.f32 %v345_v53, %v337_v61  ;;  %v354_v2 = vadd.f32 %v346_v58, %v338_v62  ;;  %v355_v3 = vadd.f32 %v347_v59, %v339_v63  ;;  %v356_v4 = vadd.f32 %v348_v60, %v340_v0 }
  0xb6   : > { %v361_v5 = vmax.f32 %v353_v1, 0.0  ;;  %v362_v6 = vmax.f32 %v354_v2, 0.0  ;;  %v363_v7 = vmax.f32 %v355_v3, 0.0  ;;  %v364_v11 = vmax.f32 %v356_v4, 0.0 }
  0xb8   : > { %369 = vst [vmem:[%s607_s18 + $0x20] sm:$0xff] %v361_v5 }
  0xb9   : > { %370 = vst [vmem:[%s607_s18 + $0x28] sm:$0xff] %v362_v6 }
  0xba   : > { %371 = vst [vmem:[%s607_s18 + $0x30] sm:$0xff] %v363_v7 }
  0xbb   : > { %372 = vst [vmem:[%s607_s18 + $0x38] sm:$0xff] %v364_v11 }
  0xbc PF: > { %s14_s15 = sadd.s32 1, %s477_s15  }
  0xbd   : > { %p11_p4 = scmp.ge.s32.totalorder %s14_s15, 4  }
  0xbf   :  { %13 = sbr.rel (!%p11_p4) target bundleno = 1 (0x1), region = 69 }

// kernel: _lambda_.19
= control target key start
LH: loop header
LB: loop body
LE: loop exit
PB: predicated region body
PF: predicated region fallthrough
CT: control target
= control target key end

     0   :  { %s2177_s12 = smov 0   ;;  %s2179_s13 = smov 0   ;;  %s2610_s0 = inlined_call_operand.vmem [shape: bf16[32,864], index: 0, kind: input, shape index: {}]   ;;  %s2611_s1 = inlined_call_operand.vmem [shape: bf16[2,864,256], index: 1, kind: input, shape index: {}]   ;;  %s2612_s2 = inlined_call_operand.vmem [shape: f32[32,1], index: 2, kind: input, shape index: {}]   ;;  %s2613_s3 = inlined_call_operand.vmem [shape: f32[2,32,256], index: 3, kind: output, shape index: {}]  }
   0x1   :  { %s2181_s14 = smov 0  }
   0x2 LB: > { %s32_s15 = sadd.s32 1, %s2150_s13  ;;  %p1469_p0 = scmp.ge.s32.totalorder %s2154_s14, 1  ;;  %s2154_s14 = sphi %s2181_s14, %s13_s14   ;;  %s2150_s13 = sphi %s2179_s13, %s2615_s13   ;;  %s2146_s12 = sphi %s2177_s12, %s2614_s12  }
   0x3   : > { %p34_p1 = scmp.ge.s32.totalorder %s32_s15, 2  ;;  %p184_p2 = scmp.lt.s32.totalorder %s2154_s14, 3 }
   0x5   : > { %s2617_s15 = smov (%p34_p1, %s32_s15), 0  ;;  %p185_p3 = pnand %p1469_p0, %p184_p2 }
   0x6   : > { %p234_p4 = scmp.lt.s32.totalorder (!%p185_p3), %s2146_s12, 1 }
   0x7   : > { %188 = sbr.rel (%p185_p3) target bundleno = 295 (0x127), region = 32 }
   0xc   : > { %s2619_s12 = smov (!%p234_p4, %s2146_s12), 1  ;;  %vm1013_vm0 = vcmask 785408  }
   0xd   : > { %s2104_s16 = smul.u32 864, %s2619_s12 }
   0xf   : > { %s2201_s19 = scalar_lea.vmem %s2611_s1, %s2104_s16 }
  0x10   : > { %v1587_v0 = vld [vmem:[%s2201_s19 + $0x70] sm:$0xf]  ;;  %v1997_v1 = vld [vmem:[%s2201_s19 + $0x74] sm:$0xf0]  ;;  %v1579_v11 = vld [vmem:[%s2201_s19 + $0x60] sm:$0xf] }
  0x11   : > { %v1651_v2 = vld [vmem:[%s2201_s19 + $0xf0] sm:$0xf]  ;;  %v1588_v3 = vor.u32 %v1997_v1, %v1587_v0  ;;  %v2013_v4 = vld [vmem:[%s2201_s19 + $0xf4] sm:$0xf0]  ;;  %v1995_v13 = vld [vmem:[%s2201_s19 + $0x64] sm:$0xf0] }
  0x12   : > { %v1715_v5 = vld [vmem:[%s2201_s19 + $0x170] sm:$0xf]  ;;  %v2029_v6 = vld [vmem:[%s2201_s19 + $0x174] sm:$0xf0]  ;;  %v1652_v7 = vor.u32 %v2013_v4, %v1651_v2  ;;  %v1643_v14 = vld [vmem:[%s2201_s19 + $0xe0] sm:$0xf]  ;;  %v1580_v16 = vor.u32 %v1995_v13, %v1579_v11 }
  0x13   : > { %v1716_v8 = vor.u32 %v2029_v6, %v1715_v5  ;;  %v1779_v9 = vld [vmem:[%s2201_s19 + $0x1f0] sm:$0xf]  ;;  %v2045_v10 = vld [vmem:[%s2201_s19 + $0x1f4] sm:$0xf0]  ;;  %1020 = vmatpush.bf16.msra.mxu0 %v1588_v3  ;;  %v2011_v15 = vld [vmem:[%s2201_s19 + $0xe4] sm:$0xf0] }
  0x14   : > { %v1780_v12 = vor.u32 %v2045_v10, %v1779_v9  ;;  %1039 = vmatpush.bf16.msra.mxu1 %v1652_v7  ;;  %v1644_v17 = vor.u32 %v2011_v15, %v1643_v14  ;;  %v1707_v18 = vld [vmem:[%s2201_s19 + $0x160] sm:$0xf]  ;;  %v2027_v19 = vld [vmem:[%s2201_s19 + $0x164] sm:$0xf0]  ;;  %v1571_v23 = vld [vmem:[%s2201_s19 + $0x50] sm:$0xf] }
  0x15   : > { %1058 = vmatpush.bf16.msra.mxu2 %v1716_v8  ;;  %v1771_v20 = vld [vmem:[%s2201_s19 + $0x1e0] sm:$0xf]  ;;  %v1708_v21 = vor.u32 %v2027_v19, %v1707_v18  ;;  %v2043_v22 = vld [vmem:[%s2201_s19 + $0x1e4] sm:$0xf0]  ;;  %v1993_v24 = vld [vmem:[%s2201_s19 + $0x54] sm:$0xf0] }
  0x16   : > { %1077 = vmatpush.bf16.msra.mxu3 %v1780_v12  ;;  %v1772_v25 = vor.u32 %v2043_v22, %v1771_v20  ;;  %v1635_v26 = vld [vmem:[%s2201_s19 + $0xd0] sm:$0xf]  ;;  %v2009_v27 = vld [vmem:[%s2201_s19 + $0xd4] sm:$0xf0]  ;;  %v1572_v29 = vor.u32 %v1993_v24, %v1571_v23  ;;  %v1563_v35 = vld [vmem:[%s2201_s19 + $0x40] sm:$0xf] }
  0x17   : > { %v1699_v28 = vld [vmem:[%s2201_s19 + $0x150] sm:$0xf]  ;;  %1021 = vmatpush.bf16.msra.mxu0 %v1580_v16  ;;  %v2025_v30 = vld [vmem:[%s2201_s19 + $0x154] sm:$0xf0]  ;;  %v1636_v33 = vor.u32 %v2009_v27, %v1635_v26  ;;  %v1991_v36 = vld [vmem:[%s2201_s19 + $0x44] sm:$0xf0] }
  0x18   : > { %v1763_v31 = vld [vmem:[%s2201_s19 + $0x1d0] sm:$0xf]  ;;  %v2041_v32 = vld [vmem:[%s2201_s19 + $0x1d4] sm:$0xf0]  ;;  %1040 = vmatpush.bf16.msra.mxu1 %v1644_v17  ;;  %v1700_v34 = vor.u32 %v2025_v30, %v1699_v28  ;;  %v1627_v37 = vld [vmem:[%s2201_s19 + $0xc0] sm:$0xf]  ;;  %v1564_v44 = vor.u32 %v1991_v36, %v1563_v35 }
  0x19   : > { %1059 = vmatpush.bf16.msra.mxu2 %v1708_v21  ;;  %v1764_v38 = vor.u32 %v2041_v32, %v1763_v31  ;;  %v2007_v39 = vld [vmem:[%s2201_s19 + $0xc4] sm:$0xf0]  ;;  %v1691_v40 = vld [vmem:[%s2201_s19 + $0x140] sm:$0xf]  ;;  %v1555_v47 = vld [vmem:[%s2201_s19 + $0x30] sm:$0xf] }
  0x1a   : > { %1078 = vmatpush.bf16.msra.mxu3 %v1772_v25  ;;  %v2023_v41 = vld [vmem:[%s2201_s19 + $0x144] sm:$0xf0]  ;;  %v1755_v42 = vld [vmem:[%s2201_s19 + $0x1c0] sm:$0xf]  ;;  %v1628_v45 = vor.u32 %v2007_v39, %v1627_v37  ;;  %v1989_v48 = vld [vmem:[%s2201_s19 + $0x34] sm:$0xf0] }
  0x1b   : > { %v2039_v43 = vld [vmem:[%s2201_s19 + $0x1c4] sm:$0xf0]  ;;  %1022 = vmatpush.bf16.msra.mxu0 %v1572_v29  ;;  %v1692_v46 = vor.u32 %v2023_v41, %v1691_v40  ;;  %v1619_v49 = vld [vmem:[%s2201_s19 + $0xb0] sm:$0xf]  ;;  %v2005_v51 = vld [vmem:[%s2201_s19 + $0xb4] sm:$0xf0]  ;;  %v1556_v56 = vor.u32 %v1989_v48, %v1555_v47 }
  0x1c   : > { %1041 = vmatpush.bf16.msra.mxu1 %v1636_v33  ;;  %v1756_v50 = vor.u32 %v2039_v43, %v1755_v42  ;;  %v1683_v52 = vld [vmem:[%s2201_s19 + $0x130] sm:$0xf]  ;;  %v2021_v53 = vld [vmem:[%s2201_s19 + $0x134] sm:$0xf0]  ;;  %v1620_v57 = vor.u32 %v2005_v51, %v1619_v49  ;;  %v1547_v59 = vld [vmem:[%s2201_s19 + $0x20] sm:$0xf] }
  0x1d   : > { %1060 = vmatpush.bf16.msra.mxu2 %v1700_v34  ;;  %v1747_v54 = vld [vmem:[%s2201_s19 + $0x1b0] sm:$0xf]  ;;  %v2037_v55 = vld [vmem:[%s2201_s19 + $0x1b4] sm:$0xf0]  ;;  %v1684_v58 = vor.u32 %v2021_v53, %v1683_v52  ;;  %v1987_v60 = vld [vmem:[%s2201_s19 + $0x24] sm:$0xf0] }
  0x1e   : > { %1079 = vmatpush.bf16.msra.mxu3 %v1764_v38  ;;  %v1611_v61 = vld [vmem:[%s2201_s19 + $0xa0] sm:$0xf]  ;;  %v1748_v62 = vor.u32 %v2037_v55, %v1747_v54  ;;  %v2003_v63 = vld [vmem:[%s2201_s19 + $0xa4] sm:$0xf0]  ;;  %v1548_v4 = vor.u32 %v1987_v60, %v1547_v59  ;;  %v1539_v7 = vld [vmem:[%s2201_s19 + $0x10] sm:$0xf] }
  0x1f   : > { %1023 = vmatpush.bf16.msra.mxu0 %v1564_v44  ;;  %v1675_v0 = vld [vmem:[%s2201_s19 + $0x120] sm:$0xf]  ;;  %v2019_v1 = vld [vmem:[%s2201_s19 + $0x124] sm:$0xf0]  ;;  %v1612_v5 = vor.u32 %v2003_v63, %v1611_v61  ;;  %v1985_v8 = vld [vmem:[%s2201_s19 + $0x14] sm:$0xf0] }
  0x20   : > { %1042 = vmatpush.bf16.msra.mxu1 %v1628_v45  ;;  %v1739_v2 = vld [vmem:[%s2201_s19 + $0x1a0] sm:$0xf]  ;;  %v2035_v3 = vld [vmem:[%s2201_s19 + $0x1a4] sm:$0xf0]  ;;  %v1676_v6 = vor.u32 %v2019_v1, %v1675_v0  ;;  %v1603_v9 = vld [vmem:[%s2201_s19 + $0x90] sm:$0xf]  ;;  %v1540_v17 = vor.u32 %v1985_v8, %v1539_v7 }
  0x21   : > { %1061 = vmatpush.bf16.msra.mxu2 %v1692_v46  ;;  %v1740_v10 = vor.u32 %v2035_v3, %v1739_v2  ;;  %v2001_v11 = vld [vmem:[%s2201_s19 + $0x94] sm:$0xf0]  ;;  %v1667_v12 = vld [vmem:[%s2201_s19 + $0x110] sm:$0xf]  ;;  %v1531_v16 = vld [vmem:[%s2201_s19] sm:$0xf] }
  0x22   : > { %1080 = vmatpush.bf16.msra.mxu3 %v1756_v50  ;;  %v2017_v13 = vld [vmem:[%s2201_s19 + $0x114] sm:$0xf0]  ;;  %v1731_v14 = vld [vmem:[%s2201_s19 + $0x190] sm:$0xf]  ;;  %v1983_v18 = vld [vmem:[%s2201_s19 + $0x4] sm:$0xf0]  ;;  %v1604_v21 = vor.u32 %v2001_v11, %v1603_v9 }
  0x23   : > { %1024 = vmatpush.bf16.msra.mxu0 %v1556_v56  ;;  %v2033_v15 = vld [vmem:[%s2201_s19 + $0x194] sm:$0xf0]  ;;  %v1595_v19 = vld [vmem:[%s2201_s19 + $0x80] sm:$0xf]  ;;  %v1999_v20 = vld [vmem:[%s2201_s19 + $0x84] sm:$0xf0]  ;;  %v1668_v22 = vor.u32 %v2017_v13, %v1667_v12  ;;  %v1532_v34 = vor.u32 %v1983_v18, %v1531_v16 }
  0x24   : > { %1043 = vmatpush.bf16.msra.mxu1 %v1620_v57  ;;  %v1659_v23 = vld [vmem:[%s2201_s19 + $0x100] sm:$0xf]  ;;  %v2015_v24 = vld [vmem:[%s2201_s19 + $0x104] sm:$0xf0]  ;;  %v1732_v26 = vor.u32 %v2033_v15, %v1731_v14  ;;  %v1971_v29 = vld [vmem:[%s2610_s0 + $0x18] sm:$0xf0]  ;;  %v1596_v38 = vor.u32 %v1999_v20, %v1595_v19 }
  0x25   : > { %1062 = vmatpush.bf16.msra.mxu2 %v1684_v58  ;;  %v1723_v25 = vld [vmem:[%s2201_s19 + $0x180] sm:$0xf]  ;;  %v2031_v27 = vld [vmem:[%s2201_s19 + $0x184] sm:$0xf0]  ;;  %v1968_v30 = vld [vmem:[%s2610_s0 + $0x4] sm:$0xf]  ;;  %v1660_v39 = vor.u32 %v2015_v24, %v1659_v23 }
  0x26   : > { %1081 = vmatpush.bf16.msra.mxu3 %v1748_v62  ;;  %v1475_v28 = vld [vmem:[%s2610_s0] sm:$0xf]  ;;  %v1955_v32 = vld [vmem:[%s2201_s19 + $0x350] sm:$0xf]  ;;  %v2089_v33 = vld [vmem:[%s2201_s19 + $0x354] sm:$0xf0]  ;;  %v1724_v43 = vor.u32 %v2031_v27, %v1723_v25 }
  0x27   : > { %1025 = vmatpush.bf16.msra.mxu0 %v1548_v4  ;;  %v1477_v31 = vld [vmem:[%s2610_s0 + $0x1c] sm:$0xf0]  ;;  %v1483_v35 = vld [vmem:[%s2610_s0 + $0x8] sm:$0xf]  ;;  %v1907_v36 = vld [vmem:[%s2201_s19 + $0x2f0] sm:$0xf]  ;;  %v1956_v44 = vor.u32 %v2089_v33, %v1955_v32  ;;  %v2298_v48 = vor.u32 %v1971_v29, %v1475_v28 }
  0x28   : > { %1044 = vmatpush.bf16.msra.mxu1 %v1612_v5  ;;  %v2077_v37 = vld [vmem:[%s2201_s19 + $0x2f4] sm:$0xf0]  ;;  %v1972_v40 = vld [vmem:[%s2610_s0 + $0x20] sm:$0xf0]  ;;  %v1969_v41 = vld [vmem:[%s2610_s0 + $0xc] sm:$0xf]  ;;  %v2303_v53 = vor.u32 %v1968_v30, %v1477_v31 }
  0x29   : > { %1063 = vmatpush.bf16.msra.mxu2 %v1676_v6  ;;  %v1485_v42 = vld [vmem:[%s2610_s0 + $0x24] sm:$0xf0]  ;;  %v1843_v45 = vld [vmem:[%s2201_s19 + $0x270] sm:$0xf]  ;;  %v2061_v46 = vld [vmem:[%s2201_s19 + $0x274] sm:$0xf0]  ;;  %v1908_v49 = vor.u32 %v2077_v37, %v1907_v36  ;;  %v2305_v54 = vor.u32 %v1972_v40, %v1483_v35 }
  0x2a   : > { %1082 = vmatpush.bf16.msra.mxu3 %v1740_v10  ;;  %v1996_v47 = vld [vmem:[%s2201_s19 + $0x74] sm:$0xf]  ;;  %v1589_v50 = vld [vmem:[%s2201_s19 + $0x78] sm:$0xf0]  ;;  %v1947_v51 = vld [vmem:[%s2201_s19 + $0x340] sm:$0xf]  ;;  %v2309_v57 = vor.u32 %v1969_v41, %v1485_v42  ;;  %v1844_v58 = vor.u32 %v2061_v46, %v1843_v45 }
  0x2b   : > { %1026 = vmatpush.bf16.msra.mxu0 %v1540_v17  ;;  %v2087_v52 = vld [vmem:[%s2201_s19 + $0x344] sm:$0xf0]  ;;  %v1899_v55 = vld [vmem:[%s2201_s19 + $0x2e0] sm:$0xf]  ;;  %v1592_v59 = vor.u32 %v1996_v47, %v1589_v50  ;;  %v1994_v62 = vld [vmem:[%s2201_s19 + $0x64] sm:$0xf] }
  0x2c   : > { %1045 = vmatpush.bf16.msra.mxu1 %v1604_v21  ;;  %v2075_v56 = vld [vmem:[%s2201_s19 + $0x2e4] sm:$0xf0]  ;;  %v1835_v60 = vld [vmem:[%s2201_s19 + $0x260] sm:$0xf]  ;;  %v1948_v63 = vor.u32 %v2087_v52, %v1947_v51  ;;  %v1581_v1 = vld [vmem:[%s2201_s19 + $0x68] sm:$0xf0] }
  0x2d   : > { %1064 = vmatpush.bf16.msra.mxu2 %v1668_v22  ;;  %v2059_v61 = vld [vmem:[%s2201_s19 + $0x264] sm:$0xf0]  ;;  %v1900_v0 = vor.u32 %v2075_v56, %v1899_v55  ;;  %v1939_v2 = vld [vmem:[%s2201_s19 + $0x330] sm:$0xf]  ;;  %v2085_v3 = vld [vmem:[%s2201_s19 + $0x334] sm:$0xf0]  ;;  %v1584_v7 = vor.u32 %v1994_v62, %v1581_v1 }
  0x2e   : > { %1083 = vmatpush.bf16.msra.mxu3 %v1732_v26  ;;  %v1891_v4 = vld [vmem:[%s2201_s19 + $0x2d0] sm:$0xf]  ;;  %v2073_v5 = vld [vmem:[%s2201_s19 + $0x2d4] sm:$0xf0]  ;;  %v1836_v6 = vor.u32 %v2059_v61, %v1835_v60  ;;  %v1992_v10 = vld [vmem:[%s2201_s19 + $0x54] sm:$0xf]  ;;  %v1940_v11 = vor.u32 %v2085_v3, %v1939_v2 }
  0x2f   : > { %1027 = vmatpush.bf16.msra.mxu0 %v1532_v34  ;;  %v1827_v8 = vld [vmem:[%s2201_s19 + $0x250] sm:$0xf]  ;;  %v2057_v9 = vld [vmem:[%s2201_s19 + $0x254] sm:$0xf0]  ;;  %v1892_v12 = vor.u32 %v2073_v5, %v1891_v4  ;;  %v1573_v13 = vld [vmem:[%s2201_s19 + $0x58] sm:$0xf0] }
  0x30   : > { %1046 = vmatpush.bf16.msra.mxu1 %v1596_v38  ;;  %v1931_v14 = vld [vmem:[%s2201_s19 + $0x320] sm:$0xf]  ;;  %v2083_v15 = vld [vmem:[%s2201_s19 + $0x324] sm:$0xf0]  ;;  %v1828_v18 = vor.u32 %v2057_v9, %v1827_v8  ;;  %v1990_v21 = vld [vmem:[%s2201_s19 + $0x44] sm:$0xf]  ;;  %v1576_v22 = vor.u32 %v1992_v10, %v1573_v13 }
  0x31   : > { %1065 = vmatpush.bf16.msra.mxu2 %v1660_v39  ;;  %v1883_v16 = vld [vmem:[%s2201_s19 + $0x2c0] sm:$0xf]  ;;  %v2071_v17 = vld [vmem:[%s2201_s19 + $0x2c4] sm:$0xf0]  ;;  %v1565_v23 = vld [vmem:[%s2201_s19 + $0x48] sm:$0xf0]  ;;  %v1932_v26 = vor.u32 %v2083_v15, %v1931_v14 }
  0x32   : > { %1084 = vmatpush.bf16.msra.mxu3 %v1724_v43  ;;  %1028 = vmatmul.bf16.vlgmr.msra.gmra.mxu0 %v2298_v48  ;;  %v1819_v19 = vld [vmem:[%s2201_s19 + $0x240] sm:$0xf]  ;;  %v2055_v20 = vld [vmem:[%s2201_s19 + $0x244] sm:$0xf0]  ;;  %v1503_v24 = vld [vmem:[%s2610_s0 + $0x38] sm:$0xf]  ;;  %v1884_v27 = vor.u32 %v2071_v17, %v1883_v16  ;;  %v1568_v39 = vor.u32 %v1990_v21, %v1565_v23 }
  0x33   : > { %1047 = vmatmul.bf16.vlgmr.msra.gmra.mxu1 %v2303_v53  ;;  %1096 = vmatpush.bf16.msrb.mxu0 %v1844_v58  ;;  %v1978_v25 = vld [vmem:[%s2610_s0 + $0x50] sm:$0xf0]  ;;  %v1975_v28 = vld [vmem:[%s2610_s0 + $0x3c] sm:$0xf]  ;;  %v1505_v29 = vld [vmem:[%s2610_s0 + $0x54] sm:$0xf0]  ;;  %v1820_v35 = vor.u32 %v2055_v20, %v1819_v19 }
  0x34   : > { %1115 = vmatpush.bf16.msrb.mxu1 %v1908_v49  ;;  %1066 = vmatmul.bf16.vlgmr.msra.gmra.mxu2 %v2305_v54  ;;  %v1923_v30 = vld [vmem:[%s2201_s19 + $0x310] sm:$0xf]  ;;  %v2081_v31 = vld [vmem:[%s2201_s19 + $0x314] sm:$0xf0]  ;;  %v1511_v32 = vld [vmem:[%s2610_s0 + $0x40] sm:$0xf]  ;;  %v2371_v50 = vor.u32 %v1975_v28, %v1505_v29 }
  0x35   : > { %1136 = vmatpush.bf16.msrb.mxu2 %v1956_v44  ;;  %1085 = vmatmul.bf16.vlgmr.msra.gmra.mxu3 %v2309_v57  ;;  %v1875_v33 = vld [vmem:[%s2201_s19 + $0x2b0] sm:$0xf]  ;;  %v2069_v34 = vld [vmem:[%s2201_s19 + $0x2b4] sm:$0xf0]  ;;  %v1979_v36 = vld [vmem:[%s2610_s0 + $0x58] sm:$0xf0]  ;;  %v1924_v43 = vor.u32 %v2081_v31, %v1923_v30  ;;  %v2366_v44 = vor.u32 %v1978_v25, %v1503_v24 }
  0x36   : > { %1153 = vmatpush.bf16.msrb.mxu3 %v1592_v59  ;;  %v1976_v37 = vld [vmem:[%s2610_s0 + $0x44] sm:$0xf]  ;;  %v1513_v38 = vld [vmem:[%s2610_s0 + $0x5c] sm:$0xf0]  ;;  %v1811_v40 = vld [vmem:[%s2201_s19 + $0x230] sm:$0xf]  ;;  %v1876_v45 = vor.u32 %v2069_v34, %v1875_v33  ;;  %v2373_v51 = vor.u32 %v1979_v36, %v1511_v32 }
  0x37   : > { %1097 = vmatpush.bf16.msrb.mxu0 %v1836_v6  ;;  %v2053_v41 = vld [vmem:[%s2201_s19 + $0x234] sm:$0xf0]  ;;  %v1988_v42 = vld [vmem:[%s2201_s19 + $0x34] sm:$0xf]  ;;  %v1557_v46 = vld [vmem:[%s2201_s19 + $0x38] sm:$0xf0]  ;;  %v2377_v56 = vor.u32 %v1976_v37, %v1513_v38 }
  0x38   : > { %1116 = vmatpush.bf16.msrb.mxu1 %v1900_v0  ;;  %v1915_v47 = vld [vmem:[%s2201_s19 + $0x300] sm:$0xf]  ;;  %v2079_v49 = vld [vmem:[%s2201_s19 + $0x304] sm:$0xf0]  ;;  %v1812_v58 = vor.u32 %v2053_v41, %v1811_v40  ;;  %v1560_v60 = vor.u32 %v1988_v42, %v1557_v46  ;;  %v1781_v0 = vld [vmem:[%s2201_s19 + $0x1f8] sm:$0xf0] }
  0x39   : > { %1137 = vmatpush.bf16.msrb.mxu2 %v1948_v63  ;;  %v1867_v52 = vld [vmem:[%s2201_s19 + $0x2a0] sm:$0xf]  ;;  %v2067_v55 = vld [vmem:[%s2201_s19 + $0x2a4] sm:$0xf0]  ;;  %v1916_v62 = vor.u32 %v2079_v49, %v1915_v47  ;;  %v2044_v63 = vld [vmem:[%s2201_s19 + $0x1f4] sm:$0xf] }
  0x3a   : > { %1154 = vmatpush.bf16.msrb.mxu3 %v1584_v7  ;;  %v1803_v59 = vld [vmem:[%s2201_s19 + $0x220] sm:$0xf]  ;;  %v2051_v61 = vld [vmem:[%s2201_s19 + $0x224] sm:$0xf0]  ;;  %v1868_v1 = vor.u32 %v2067_v55, %v1867_v52  ;;  %v1986_v2 = vld [vmem:[%s2201_s19 + $0x24] sm:$0xf]  ;;  %v1784_v4 = vor.u32 %v2044_v63, %v1781_v0 }
  0x3b   : > { %1098 = vmatpush.bf16.msrb.mxu0 %v1828_v18  ;;  %v1549_v3 = vld [vmem:[%s2201_s19 + $0x28] sm:$0xf0]  ;;  %v1859_v5 = vld [vmem:[%s2201_s19 + $0x290] sm:$0xf]  ;;  %v2065_v6 = vld [vmem:[%s2201_s19 + $0x294] sm:$0xf0]  ;;  %v1804_v8 = vor.u32 %v2051_v61, %v1803_v59 }
  0x3c   : > { %1117 = vmatpush.bf16.msrb.mxu1 %v1892_v12  ;;  %v2042_v7 = vld [vmem:[%s2201_s19 + $0x1e4] sm:$0xf]  ;;  %v1773_v9 = vld [vmem:[%s2201_s19 + $0x1e8] sm:$0xf0]  ;;  %v1552_v10 = vor.u32 %v1986_v2, %v1549_v3  ;;  %v2049_v12 = vld [vmem:[%s2201_s19 + $0x214] sm:$0xf0]  ;;  %v1860_v13 = vor.u32 %v2065_v6, %v1859_v5 }
  0x3d   : > { %1138 = vmatpush.bf16.msrb.mxu2 %v1940_v11  ;;  %v1795_v11 = vld [vmem:[%s2201_s19 + $0x210] sm:$0xf]  ;;  %v1984_v14 = vld [vmem:[%s2201_s19 + $0x14] sm:$0xf]  ;;  %v1541_v15 = vld [vmem:[%s2201_s19 + $0x18] sm:$0xf0]  ;;  %v1776_v17 = vor.u32 %v2042_v7, %v1773_v9 }
  0x3e   : > { %1155 = vmatpush.bf16.msrb.mxu3 %v1576_v22  ;;  %v1851_v16 = vld [vmem:[%s2201_s19 + $0x280] sm:$0xf]  ;;  %v2063_v18 = vld [vmem:[%s2201_s19 + $0x284] sm:$0xf0]  ;;  %v2040_v19 = vld [vmem:[%s2201_s19 + $0x1d4] sm:$0xf]  ;;  %v1796_v21 = vor.u32 %v2049_v12, %v1795_v11  ;;  %v1544_v25 = vor.u32 %v1984_v14, %v1541_v15 }
  0x3f   : > { %1099 = vmatpush.bf16.msrb.mxu0 %v1820_v35  ;;  %v1765_v20 = vld [vmem:[%s2201_s19 + $0x1d8] sm:$0xf0]  ;;  %v1787_v22 = vld [vmem:[%s2201_s19 + $0x200] sm:$0xf]  ;;  %v2028_v23 = vld [vmem:[%s2201_s19 + $0x174] sm:$0xf]  ;;  %v1852_v29 = vor.u32 %v2063_v18, %v1851_v16 }
  0x40   : > { %1118 = vmatpush.bf16.msrb.mxu1 %v1884_v27  ;;  %v1717_v24 = vld [vmem:[%s2201_s19 + $0x178] sm:$0xf0]  ;;  %v1982_v27 = vld [vmem:[%s2201_s19 + $0x4] sm:$0xf]  ;;  %v1533_v28 = vld [vmem:[%s2201_s19 + $0x8] sm:$0xf0]  ;;  %v1768_v35 = vor.u32 %v2040_v19, %v1765_v20 }
  0x41   : > { %1139 = vmatpush.bf16.msrb.mxu2 %v1932_v26  ;;  %v2047_v26 = vld [vmem:[%s2201_s19 + $0x204] sm:$0xf0]  ;;  %v1491_v30 = vld [vmem:[%s2610_s0 + $0x10] sm:$0xf]  ;;  %v1973_v31 = vld [vmem:[%s2610_s0 + $0x28] sm:$0xf0]  ;;  %v1720_v36 = vor.u32 %v2028_v23, %v1717_v24 }
  0x42   : > { %1156 = vmatpush.bf16.msrb.mxu3 %v1568_v39  ;;  %1033 = vmatmul.bf16.gmra.mxu0 %v2366_v44  ;;  %v2012_v32 = vld [vmem:[%s2201_s19 + $0xf4] sm:$0xf]  ;;  %v1653_v33 = vld [vmem:[%s2201_s19 + $0xf8] sm:$0xf0]  ;;  %v2038_v38 = vld [vmem:[%s2201_s19 + $0x1c4] sm:$0xf]  ;;  %v1788_v40 = vor.u32 %v2047_v26, %v1787_v22 }
  0x43   : > { %1052 = vmatmul.bf16.gmra.mxu1 %v2371_v50  ;;  %1100 = vmatpush.bf16.msrb.mxu0 %v1812_v58  ;;  %v2060_v34 = vld [vmem:[%s2201_s19 + $0x274] sm:$0xf]  ;;  %v1845_v37 = vld [vmem:[%s2201_s19 + $0x278] sm:$0xf0]  ;;  %v1757_v39 = vld [vmem:[%s2201_s19 + $0x1c8] sm:$0xf0]  ;;  %v1656_v47 = vor.u32 %v2012_v32, %v1653_v33 }
  0x44   : > { %1119 = vmatpush.bf16.msrb.mxu1 %v1876_v45  ;;  %1071 = vmatmul.bf16.gmra.mxu2 %v2373_v51  ;;  %v1970_v41 = vld [vmem:[%s2610_s0 + $0x14] sm:$0xf]  ;;  %v1493_v42 = vld [vmem:[%s2610_s0 + $0x2c] sm:$0xf0]  ;;  %v1536_v45 = vor.u32 %v1982_v27, %v1533_v28  ;;  %v2010_v49 = vld [vmem:[%s2201_s19 + $0xe4] sm:$0xf]  ;;  %v1848_v55 = vor.u32 %v2060_v34, %v1845_v37  ;;  %v1760_v61 = vor.u32 %v2038_v38, %v1757_v39 }
  0x45   : > { %1140 = vmatpush.bf16.msrb.mxu2 %v1924_v43  ;;  %1090 = vmatmul.bf16.gmra.mxu3 %v2377_v56  ;;  %v1499_v43 = vld [vmem:[%s2610_s0 + $0x18] sm:$0xf]  ;;  %v1974_v46 = vld [vmem:[%s2610_s0 + $0x30] sm:$0xf0]  ;;  %v1645_v52 = vld [vmem:[%s2201_s19 + $0xe8] sm:$0xf0]  ;;  %v2438_v63 = vor.u32 %v1970_v41, %v1493_v42 }
  0x46   : > { %1157 = vmatpush.bf16.msrb.mxu3 %v1560_v60  ;;  %v2026_v58 = vld [vmem:[%s2201_s19 + $0x164] sm:$0xf]  ;;  %v1709_v59 = vld [vmem:[%s2201_s19 + $0x168] sm:$0xf0]  ;;  %v1749_v2 = vld [vmem:[%s2201_s19 + $0x1b8] sm:$0xf0]  ;;  %v2443_v3 = vor.u32 %v1974_v46, %v1499_v43 }
  0x47   : > { %1101 = vmatpush.bf16.msrb.mxu0 %v1804_v8  ;;  %v2058_v60 = vld [vmem:[%s2201_s19 + $0x264] sm:$0xf]  ;;  %v1837_v0 = vld [vmem:[%s2201_s19 + $0x268] sm:$0xf0]  ;;  %v1712_v5 = vor.u32 %v2026_v58, %v1709_v59  ;;  %v2008_v6 = vld [vmem:[%s2201_s19 + $0xd4] sm:$0xf] }
  0x48   : > { %1120 = vmatpush.bf16.msrb.mxu1 %v1868_v1  ;;  %v2036_v1 = vld [vmem:[%s2201_s19 + $0x1b4] sm:$0xf]  ;;  %v1637_v7 = vld [vmem:[%s2201_s19 + $0xd8] sm:$0xf0]  ;;  %v1840_v8 = vor.u32 %v2058_v60, %v1837_v0  ;;  %v2034_v14 = vld [vmem:[%s2201_s19 + $0x1a4] sm:$0xf] }
  0x49   : > { %1141 = vmatpush.bf16.msrb.mxu2 %v1916_v62  ;;  %v2436_v62 = vor.u32 %v1973_v31, %v1491_v30  ;;  %v2024_v9 = vld [vmem:[%s2201_s19 + $0x154] sm:$0xf]  ;;  %v1752_v12 = vor.u32 %v2036_v1, %v1749_v2  ;;  %v1741_v15 = vld [vmem:[%s2201_s19 + $0x1a8] sm:$0xf0]  ;;  %v1640_v16 = vor.u32 %v2008_v6, %v1637_v7  ;;  %v2006_v18 = vld [vmem:[%s2201_s19 + $0xc4] sm:$0xf] }
  0x4a   : > { %1158 = vmatpush.bf16.msrb.mxu3 %v1552_v10  ;;  %v1701_v10 = vld [vmem:[%s2201_s19 + $0x158] sm:$0xf0]  ;;  %v2056_v11 = vld [vmem:[%s2201_s19 + $0x254] sm:$0xf]  ;;  %v1629_v19 = vld [vmem:[%s2201_s19 + $0xc8] sm:$0xf0] }
  0x4b   : > { %1102 = vmatpush.bf16.msrb.mxu0 %v1796_v21  ;;  %v1313_v20 = vld [vmem:[%s2612_s2] sm:$0xff]  ;;  %v1693_v23 = vld [vmem:[%s2201_s19 + $0x148] sm:$0xf0]  ;;  %v2156_v26 = vmov 0   ;;  %v2032_v27 = vld [vmem:[%s2201_s19 + $0x194] sm:$0xf] }
  0x4c   : > { %1121 = vmatpush.bf16.msrb.mxu1 %v1860_v13  ;;  %v1829_v13 = vld [vmem:[%s2201_s19 + $0x258] sm:$0xf0]  ;;  %v2022_v22 = vld [vmem:[%s2201_s19 + $0x144] sm:$0xf]  ;;  %2130 = vset.pattern.permute.xlu0 %v2156_v26  ;;  %v2004_v31 = vld [vmem:[%s2201_s19 + $0xb4] sm:$0xf] }
  0x4d   : > { %1210 = vmatpush.bf16.msra.mxu2 %v1784_v4  ;;  %v1648_v4 = vor.u32 %v2010_v49, %v1645_v52  ;;  %v1832_v21 = vor.u32 %v2056_v11, %v1829_v13  ;;  %v2054_v24 = vld [vmem:[%s2201_s19 + $0x244] sm:$0xf]  ;;  %v1733_v28 = vld [vmem:[%s2201_s19 + $0x198] sm:$0xf0]  ;;  %2131 = vset.pattern.permute.xlu1 %v2156_v26  ;;  %v1696_v30 = vor.u32 %v2022_v22, %v1693_v23  ;;  %v2020_v33 = vld [vmem:[%s2201_s19 + $0x134] sm:$0xf] }
  0x4e   : > { %1159 = vmatpush.bf16.msrb.mxu3 %v1544_v25  ;;  %v1821_v25 = vld [vmem:[%s2201_s19 + $0x248] sm:$0xf0]  ;;  %1319 = vperm.xlu0 %2130, %v1313_v20   ;;  %v1621_v32 = vld [vmem:[%s2201_s19 + $0xb8] sm:$0xf0]  ;;  %v2052_v39 = vld [vmem:[%s2201_s19 + $0x234] sm:$0xf] }
  0x4f   : > { %1103 = vmatpush.bf16.msrb.mxu0 %v1788_v40  ;;  %v1824_v34 = vor.u32 %v2054_v24, %v1821_v25  ;;  %v1977_v37 = vld [vmem:[%s2610_s0 + $0x4c] sm:$0xf]  ;;  %v1685_v38 = vld [vmem:[%s2201_s19 + $0x138] sm:$0xf0]  ;;  %v1736_v40 = vor.u32 %v2032_v27, %v1733_v28  ;;  %v1315_v41 = vld [vmem:[%s2612_s2 + $0x10] sm:$0xff]  ;;  %v1624_v52 = vor.u32 %v2004_v31, %v1621_v32 }
  0x50   : > { %1122 = vmatpush.bf16.msrb.mxu1 %v1852_v29  ;;  %v1632_v29 = vor.u32 %v2006_v18, %v1629_v19  ;;  %v1813_v42 = vld [vmem:[%s2201_s19 + $0x238] sm:$0xf0]  ;;  %v2030_v43 = vld [vmem:[%s2201_s19 + $0x184] sm:$0xf]  ;;  %1329 = vperm.xlu1 %2131, %v1315_v41   ;;  %v1521_v46 = vld [vmem:[%s2610_s0 + $0x64] sm:$0xf0] }
  0x51   : > { %1211 = vmatpush.bf16.msra.mxu2 %v1776_v17  ;;  %v1704_v17 = vor.u32 %v2024_v9, %v1701_v10  ;;  %v1981_v49 = vld [vmem:[%s2610_s0 + $0x68] sm:$0xf0]  ;;  %v2002_v58 = vld [vmem:[%s2201_s19 + $0xa4] sm:$0xf]  ;;  %v2508_v6 = vor.u32 %v1977_v37, %v1521_v46  ;;  %v1909_v9 = vld [vmem:[%s2201_s19 + $0x2f8] sm:$0xf0] }
  0x52   : > { %1160 = vmatpush.bf16.msrb.mxu3 %v1536_v45  ;;  %1104 = vmatmul.bf16.vlgmr.msrb.gmra.mxu0 %v2436_v62  ;;  %v1725_v45 = vld [vmem:[%s2201_s19 + $0x188] sm:$0xf0]  ;;  %v2018_v0 = vld [vmem:[%s2201_s19 + $0x124] sm:$0xf]  ;;  %v2000_v13 = vld [vmem:[%s2201_s19 + $0x94] sm:$0xf] }
  0x53   : > { %1172 = vmatpush.bf16.msra.mxu0 %v1656_v47  ;;  %1123 = vmatmul.bf16.vlgmr.msrb.gmra.mxu1 %v2438_v63  ;;  %v1527_v47 = vld [vmem:[%s2610_s0 + $0x50] sm:$0xf]  ;;  %v1613_v59 = vld [vmem:[%s2201_s19 + $0xa8] sm:$0xf0]  ;;  %v2050_v2 = vld [vmem:[%s2201_s19 + $0x224] sm:$0xf] }
  0x54   : > { %1191 = vmatpush.bf16.msra.mxu1 %v1720_v36  ;;  %1961 = vmatmul.msk.bf16.vlgmr.msrb.gmra.mxu2 %vm1013_vm0, %v2443_v3  ;;  %v1980_v36 = vld [vmem:[%s2610_s0 + $0x60] sm:$0xf0]  ;;  %v1314_v60 = vld [vmem:[%s2612_s2 + $0x8] sm:$0xff]  ;;  %v2513_v10 = vor.u32 %v1981_v49, %v1527_v47  ;;  %v1616_v11 = vor.u32 %v2002_v58, %v1613_v59  ;;  %v2048_v18 = vld [vmem:[%s2201_s19 + $0x214] sm:$0xf] }
  0x55   : > { %1212 = vmatpush.bf16.msra.mxu2 %v1768_v35  ;;  %1161 = vmatmul.bf16.vlgmr.msrb.gmra.mxu3 %v2298_v48  ;;  %v1744_v48 = vor.u32 %v2034_v14, %v1741_v15  ;;  %v1519_v35 = vld [vmem:[%s2610_s0 + $0x48] sm:$0xf]  ;;  %v1677_v1 = vld [vmem:[%s2201_s19 + $0x128] sm:$0xf0]  ;;  %v1605_v14 = vld [vmem:[%s2201_s19 + $0x98] sm:$0xf0] }
  0x56   : > { %1229 = vmatpush.bf16.msra.mxu3 %v1848_v55  ;;  %v1688_v55 = vor.u32 %v2020_v33, %v1685_v38  ;;  %v1805_v7 = vld [vmem:[%s2201_s19 + $0x228] sm:$0xf0]  ;;  %1324 = vperm.xlu0 %2130, %v1314_v60   ;;  %v1797_v20 = vld [vmem:[%s2201_s19 + $0x218] sm:$0xf0]  ;;  %v1608_v24 = vor.u32 %v2000_v13, %v1605_v14  ;;  %v1998_v25 = vld [vmem:[%s2201_s19 + $0x84] sm:$0xf] }
  0x57   : > { %1173 = vmatpush.bf16.msra.mxu0 %v1648_v4  ;;  %v1728_v4 = vor.u32 %v2030_v43, %v1725_v45  ;;  %v1808_v15 = vor.u32 %v2050_v2, %v1805_v7  ;;  %v1901_v22 = vld [vmem:[%s2201_s19 + $0x2e8] sm:$0xf0]  ;;  %v1316_v23 = vld [vmem:[%s2612_s2 + $0x18] sm:$0xff]  ;;  %v1800_v26 = vor.u32 %v2048_v18, %v1797_v20  ;;  %v2014_v28 = vld [vmem:[%s2201_s19 + $0x104] sm:$0xf] }
  0x58   : > { %1192 = vmatpush.bf16.msra.mxu1 %v1712_v5  ;;  %v2506_v5 = vor.u32 %v1980_v36, %v1519_v35  ;;  %v1597_v27 = vld [vmem:[%s2201_s19 + $0x88] sm:$0xf0]  ;;  %v2088_v32 = vld [vmem:[%s2201_s19 + $0x354] sm:$0xf]  ;;  %1334 = vperm.xlu1 %2131, %v1316_v23   ;;  %v1957_v33 = vld [vmem:[%s2201_s19 + $0x358] sm:$0xf0] }
  0x59   : > { %1213 = vmatpush.bf16.msra.mxu2 %v1760_v61  ;;  %v1816_v61 = vor.u32 %v2052_v39, %v1813_v42  ;;  %v1789_v31 = vld [vmem:[%s2201_s19 + $0x208] sm:$0xf0]  ;;  %v1893_v35 = vld [vmem:[%s2201_s19 + $0x2d8] sm:$0xf0]  ;;  %v1600_v36 = vor.u32 %v1998_v25, %v1597_v27  ;;  %v1960_v39 = vor.u32 %v2088_v32, %v1957_v33  ;;  %v2086_v41 = vld [vmem:[%s2201_s19 + $0x344] sm:$0xf] }
  0x5a   : > { %1230 = vmatpush.bf16.msra.mxu3 %v1840_v8  ;;  %v2076_v8 = vld [vmem:[%s2201_s19 + $0x2f4] sm:$0xf]  ;;  %v1949_v42 = vld [vmem:[%s2201_s19 + $0x348] sm:$0xf0]  ;;  %v2070_v43 = vld [vmem:[%s2201_s19 + $0x2c4] sm:$0xf] }
  0x5b   : > { %1174 = vmatpush.bf16.msra.mxu0 %v1640_v16  ;;  %v2016_v16 = vld [vmem:[%s2201_s19 + $0x114] sm:$0xf]  ;;  %v1912_v19 = vor.u32 %v2076_v8, %v1909_v9  ;;  %v1885_v45 = vld [vmem:[%s2201_s19 + $0x2c8] sm:$0xf0]  ;;  %v1952_v46 = vor.u32 %v2086_v41, %v1949_v42  ;;  %v1877_v58 = vld [vmem:[%s2201_s19 + $0x2b8] sm:$0xf0] }
  0x5c   : > { %1193 = vmatpush.bf16.msra.mxu1 %v1704_v17  ;;  %v1669_v17 = vld [vmem:[%s2201_s19 + $0x118] sm:$0xf0]  ;;  %v1888_v47 = vor.u32 %v2070_v43, %v1885_v45  ;;  %v2084_v49 = vld [vmem:[%s2201_s19 + $0x334] sm:$0xf]  ;;  %v2078_v13 = vld [vmem:[%s2201_s19 + $0x304] sm:$0xf] }
  0x5d   : > { %1214 = vmatpush.bf16.msra.mxu2 %v1752_v12  ;;  %v1680_v12 = vor.u32 %v2018_v0, %v1677_v1  ;;  %v1933_v0 = vld [vmem:[%s2201_s19 + $0x328] sm:$0xf0]  ;;  %v2066_v1 = vld [vmem:[%s2201_s19 + $0x2a4] sm:$0xf]  ;;  %v1861_v2 = vld [vmem:[%s2201_s19 + $0x298] sm:$0xf0] }
  0x5e   : > { %1231 = vmatpush.bf16.msra.mxu3 %v1832_v21  ;;  %v2074_v21 = vld [vmem:[%s2201_s19 + $0x2e4] sm:$0xf]  ;;  %v1925_v7 = vld [vmem:[%s2201_s19 + $0x318] sm:$0xf0]  ;;  %v1917_v14 = vld [vmem:[%s2201_s19 + $0x308] sm:$0xf0] }
  0x5f   : > { %1175 = vmatpush.bf16.msra.mxu0 %v1632_v29  ;;  %v1661_v29 = vld [vmem:[%s2201_s19 + $0x108] sm:$0xf0] }
  0x60   : > { %1194 = vmatpush.bf16.msra.mxu1 %v1696_v30  ;;  %v2046_v30 = vld [vmem:[%s2201_s19 + $0x204] sm:$0xf]  ;;  %v1664_v37 = vor.u32 %v2014_v28, %v1661_v29 }
  0x61   : > { %1215 = vmatpush.bf16.msra.mxu2 %v1744_v48  ;;  %v1672_v48 = vor.u32 %v2016_v16, %v1669_v17  ;;  %v1792_v38 = vor.u32 %v2046_v30, %v1789_v31  ;;  %v1920_v16 = vor.u32 %v2078_v13, %v1917_v14 }
  0x62   : > { %1232 = vmatpush.bf16.msra.mxu3 %v1824_v34  ;;  %1109 = vmatmul.bf16.gmra.mxu0 %v2506_v5  ;;  %v2072_v34 = vld [vmem:[%s2201_s19 + $0x2d4] sm:$0xf] }
  0x63   : > { %1176 = vmatpush.bf16.msra.mxu0 %v1624_v52  ;;  %1128 = vmatmul.bf16.gmra.mxu1 %v2508_v6  ;;  %v1941_v52 = vld [vmem:[%s2201_s19 + $0x338] sm:$0xf0] }
  0x64   : > { %1195 = vmatpush.bf16.msra.mxu1 %v1688_v55  ;;  %1962 = vmatmul.msk.bf16.gmra.mxu2 %vm1013_vm0, %v2513_v10  ;;  %v2068_v55 = vld [vmem:[%s2201_s19 + $0x2b4] sm:$0xf]  ;;  %v1944_v59 = vor.u32 %v2084_v49, %v1941_v52 }
  0x65   : > { %1216 = vmatpush.bf16.msra.mxu2 %v1736_v40  ;;  %1166 = vmatmul.bf16.gmra.mxu3 %v2366_v44  ;;  %v1904_v44 = vor.u32 %v2074_v21, %v1901_v22  ;;  %v1896_v40 = vor.u32 %v2072_v34, %v1893_v35  ;;  %v1880_v60 = vor.u32 %v2068_v55, %v1877_v58 }
  0x66   : > { %1233 = vmatpush.bf16.msra.mxu3 %v1816_v61  ;;  %v2082_v61 = vld [vmem:[%s2201_s19 + $0x324] sm:$0xf] }
  0x67   : > { %1177 = vmatpush.bf16.msra.mxu0 %v1616_v11  ;;  %v2062_v11 = vld [vmem:[%s2201_s19 + $0x284] sm:$0xf] }
  0x68   : > { %1196 = vmatpush.bf16.msra.mxu1 %v1680_v12  ;;  %v1853_v12 = vld [vmem:[%s2201_s19 + $0x288] sm:$0xf0] }
  0x69   : > { %1217 = vmatpush.bf16.msra.mxu2 %v1728_v4  ;;  %v2080_v4 = vld [vmem:[%s2201_s19 + $0x314] sm:$0xf] }
  0x6a   : > { %1234 = vmatpush.bf16.msra.mxu3 %v1808_v15  ;;  %v1928_v9 = vor.u32 %v2080_v4, %v1925_v7  ;;  %v1856_v15 = vor.u32 %v2062_v11, %v1853_v12 }
  0x6b   : > { %1178 = vmatpush.bf16.msra.mxu0 %v1608_v24 }
  0x6c   : > { %1197 = vmatpush.bf16.msra.mxu1 %v1672_v48 }
  0x6d   : > { %2090 = vmatpush.bf16.msrb.mxu2 %v1912_v19 }
  0x6e   : > { %1235 = vmatpush.bf16.msra.mxu3 %v1800_v26 }
  0x6f   : > { %1179 = vmatpush.bf16.msra.mxu0 %v1600_v36 }
  0x70   : > { %1198 = vmatpush.bf16.msra.mxu1 %v1664_v37 }
  0x71   : > { %2091 = vmatpush.bf16.msrb.mxu2 %v1904_v44 }
  0x72   : > { %1236 = vmatpush.bf16.msra.mxu3 %v1792_v38  ;;  %1180 = vmatmul.bf16.vlgmr.msra.gmra.mxu0 %v2303_v53  ;;  %v1869_v53 = vld [vmem:[%s2201_s19 + $0x2a8] sm:$0xf0] }
  0x73   : > { %1248 = vmatpush.bf16.msrb.mxu0 %v1912_v19  ;;  %1199 = vmatmul.bf16.vlgmr.msra.gmra.mxu1 %v2305_v54  ;;  %v1936_v54 = vor.u32 %v2082_v61, %v1933_v0 }
  0x74   : > { %1269 = vmatpush.bf16.msrb.mxu1 %v1960_v39  ;;  %1218 = vmatmul.bf16.vlgmr.msra.gmra.mxu2 %v2309_v57  ;;  %v1872_v57 = vor.u32 %v2066_v1, %v1869_v53 }
  0x75   : > { %2092 = vmatpush.bf16.msrb.mxu2 %v1896_v40  ;;  %1237 = vmatmul.bf16.vlgmr.msra.gmra.mxu3 %v2436_v62  ;;  %v2064_v62 = vld [vmem:[%s2201_s19 + $0x294] sm:$0xf]  ;;  %s1967_s19 = sshll.u32 %s2619_s12, 6 }
  0x76   : > { %2098 = vmatpush.bf16.msrb.mxu3 %v1960_v39  ;;  %v1864_v8 = vor.u32 %v2064_v62, %v1861_v2  ;;  %s2581_s20 = scalar_lea.vmem %s2613_s3, %s1967_s19 }
  0x77   : > { %1249 = vmatpush.bf16.msrb.mxu0 %v1904_v44 }
  0x78   : > { %1270 = vmatpush.bf16.msrb.mxu1 %v1952_v46 }
  0x79   : > { %2093 = vmatpush.bf16.msrb.mxu2 %v1888_v47 }
  0x7a   : > { %2099 = vmatpush.bf16.msrb.mxu3 %v1952_v46 }
  0x7b   : > { %1250 = vmatpush.bf16.msrb.mxu0 %v1896_v40 }
  0x7c   : > { %1271 = vmatpush.bf16.msrb.mxu1 %v1944_v59 }
  0x7d   : > { %2094 = vmatpush.bf16.msrb.mxu2 %v1880_v60 }
  0x7e   : > { %2100 = vmatpush.bf16.msrb.mxu3 %v1944_v59 }
  0x7f   : > { %1251 = vmatpush.bf16.msrb.mxu0 %v1888_v47 }
  0x80   : > { %1272 = vmatpush.bf16.msrb.mxu1 %v1936_v54 }
  0x81   : > { %2095 = vmatpush.bf16.msrb.mxu2 %v1872_v57 }
  0x82   : > { %2101 = vmatpush.bf16.msrb.mxu3 %v1936_v54  ;;  %1185 = vmatmul.bf16.gmra.mxu0 %v2371_v50 }
  0x83   : > { %1252 = vmatpush.bf16.msrb.mxu0 %v1880_v60  ;;  %1204 = vmatmul.bf16.gmra.mxu1 %v2373_v51 }
  0x84   : > { %1273 = vmatpush.bf16.msrb.mxu1 %v1928_v9  ;;  %1223 = vmatmul.bf16.gmra.mxu2 %v2377_v56 }
  0x85   : > { %2096 = vmatpush.bf16.msrb.mxu2 %v1864_v8  ;;  %1242 = vmatmul.bf16.gmra.mxu3 %v2506_v5 }
  0x86   : > { %2102 = vmatpush.bf16.msrb.mxu3 %v1928_v9 }
  0x87   : > { %1253 = vmatpush.bf16.msrb.mxu0 %v1872_v57 }
  0x88   : > { %1274 = vmatpush.bf16.msrb.mxu1 %v1920_v16 }
  0x89   : > { %2097 = vmatpush.bf16.msrb.mxu2 %v1856_v15 }
  0x8a   : > { %2103 = vmatpush.bf16.msrb.mxu3 %v1920_v16 }
  0x8b   : > { %1254 = vmatpush.bf16.msrb.mxu0 %v1864_v8 }
  0x8f   : > { %1255 = vmatpush.bf16.msrb.mxu0 %v1856_v15 }
  0x92   : > { %1256 = vmatmul.bf16.vlgmr.msrb.gmra.mxu0 %v2438_v63 }
  0x93   : > { %1963 = vmatmul.msk.bf16.vlgmr.msrb.gmra.mxu1 %vm1013_vm0, %v2443_v3 }
  0x94   : > { %1261 = vmatmul.bf16.vlgmr.msrb.gmra.mxu2 %v2508_v6 }
  0x95   : > { %1964 = vmatmul.msk.bf16.vlgmr.msrb.gmra.mxu3 %vm1013_vm0, %v2513_v10 }
  0xaf   : > { %v1029_v50 = vpop.f32.mrf.mxu0 }
  0xb0   : > { %v1048_v51 = vpop.f32.mrf.mxu1 }
  0xb1   : > { %v1049_v3 = vadd.f32 %v1048_v51, %v1029_v50 }
  0xb7   : > { %v1067_v56 = vpop.f32.mrf.mxu2  ;;  %v1031_v5 = vpop.f32.mrf.mxu0 }
  0xb8   : > { %v1086_v17 = vpop.f32.mrf.mxu3  ;;  %v1050_v18 = vpop.f32.mrf.mxu1  ;;  %v1068_v6 = vadd.f32 %v1067_v56, %v1049_v3 }
  0xb9   : > { %v1051_v29 = vadd.f32 %v1050_v18, %v1031_v5 }
  0xba   : > { %v1087_v10 = vadd.f32 %v1086_v17, %v1068_v6 }
  0xbf   : > { %v1069_v19 = vpop.f32.mrf.mxu2  ;;  %v1034_v21 = vpop.f32.mrf.mxu0 }
  0xc0   : > { %v1088_v20 = vpop.f32.mrf.mxu3  ;;  %v1053_v22 = vpop.f32.mrf.mxu1  ;;  %v1070_v30 = vadd.f32 %v1069_v19, %v1051_v29 }
  0xc1   : > { %v2575_v31 = vpop.permute.xlu0 %1319  ;;  %v1054_v36 = vadd.f32 %v1053_v22, %v1034_v21 }
  0xc2   : > { %v1089_v35 = vadd.f32 %v1088_v20, %v1070_v30  ;;  %v2589_v1 = vpop.permute.xlu1 %1329 }
  0xc7   : > { %v1072_v23 = vpop.f32.mrf.mxu2  ;;  %v1036_v24 = vpop.f32.mrf.mxu0 }
  0xc8   : > { %v1091_v63 = vpop.f32.mrf.mxu3  ;;  %v1055_v48 = vpop.f32.mrf.mxu1  ;;  %v1073_v42 = vadd.f32 %v1072_v23, %v1054_v36 }
  0xc9   : > { %v2585_v45 = vpop.permute.xlu0 %1324  ;;  %v1056_v59 = vadd.f32 %v1055_v48, %v1036_v24 }
  0xca   : > { %v1092_v49 = vadd.f32 %v1091_v63, %v1073_v42  ;;  %v1335_v12 = vpop.permute.xlu1 %1334 }
  0xcf   : > { %v1074_v25 = vpop.f32.mrf.mxu2  ;;  %v1105_v27 = vpop.f32.mrf.mxu0 }
  0xd0   : > { %v1093_v26 = vpop.f32.mrf.mxu3  ;;  %v1124_v28 = vpop.f32.mrf.mxu1  ;;  %v1106_v44 = vadd.f32 %v1105_v27, %v1087_v10  ;;  %v1075_v0 = vadd.f32 %v1074_v25, %v1056_v59 }
  0xd2   : > { %v1125_v32 = vadd.f32 %v1124_v28, %v1106_v44  ;;  %v1094_v62 = vadd.f32 %v1093_v26, %v1075_v0 }
  0xd7   : > { %v1143_v33 = vpop.f32.mrf.mxu2  ;;  %v1107_v38 = vpop.f32.mrf.mxu0 }
  0xd8   : > { %v1162_v34 = vpop.f32.mrf.mxu3  ;;  %v1144_v37 = vadd.f32 %v1143_v33, %v1125_v32  ;;  %v1126_v39 = vpop.f32.mrf.mxu1  ;;  %v1108_v41 = vadd.f32 %v1107_v38, %v1089_v35 }
  0xda   : > { %v1337_v40 = vadd.f32 %v2575_v31, %v1144_v37  ;;  %v1127_v43 = vadd.f32 %v1126_v39, %v1108_v41 }
  0xdc   : > { %1345 = vst [vmem:[%s2581_s20] sm:$0xff] %v1337_v40 }
  0xdf   : > { %v1145_v46 = vpop.f32.mrf.mxu2  ;;  %v1110_v55 = vpop.f32.mrf.mxu0 }
  0xe0   : > { %v1164_v47 = vpop.f32.mrf.mxu3  ;;  %v1146_v52 = vadd.f32 %v1145_v46, %v1127_v43  ;;  %v1129_v58 = vpop.f32.mrf.mxu1  ;;  %v1111_v61 = vadd.f32 %v1110_v55, %v1092_v49 }
  0xe2   : > { %v1339_v60 = vadd.f32 %v2585_v45, %v1146_v52  ;;  %v1130_v53 = vadd.f32 %v1129_v58, %v1111_v61 }
  0xe4   : > { %1347 = vst [vmem:[%s2581_s20 + $0x10] sm:$0xff] %v1339_v60 }
  0xe7   : > { %v1148_v54 = vpop.f32.mrf.mxu2  ;;  %v1112_v4 = vpop.f32.mrf.mxu0 }
  0xe8   : > { %v1167_v57 = vpop.f32.mrf.mxu3  ;;  %v1149_v2 = vadd.f32 %v1148_v54, %v1130_v53  ;;  %v1131_v7 = vpop.f32.mrf.mxu1  ;;  %v1113_v9 = vadd.f32 %v1112_v4, %v1094_v62 }
  0xea   : > { %v1341_v8 = vadd.f32 %v2589_v1, %v1149_v2  ;;  %v1132_v11 = vadd.f32 %v1131_v7, %v1113_v9 }
  0xec   : > { %1349 = vst [vmem:[%s2581_s20 + $0x20] sm:$0xff] %v1341_v8 }
  0xef   : > { %v1150_v13 = vpop.f32.mrf.mxu2  ;;  %v1181_v16 = vpop.f32.mrf.mxu0 }
  0xf0   : > { %v1169_v14 = vpop.f32.mrf.mxu3  ;;  %v1151_v15 = vadd.f32 %v1150_v13, %v1132_v11  ;;  %v1200_v50 = vpop.f32.mrf.mxu1  ;;  %v1182_v23 = vadd.f32 %v1181_v16, %v1162_v34 }
  0xf2   : > { %v1343_v51 = vadd.f32 %v1335_v12, %v1151_v15  ;;  %v1201_v6 = vadd.f32 %v1200_v50, %v1182_v23 }
  0xf4   : > { %1351 = vst [vmem:[%s2581_s20 + $0x30] sm:$0xff] %v1343_v51 }
  0xf7   : > { %v1219_v56 = vpop.f32.mrf.mxu2  ;;  %v1183_v5 = vpop.f32.mrf.mxu0 }
  0xf8   : > { %v1238_v17 = vpop.f32.mrf.mxu3  ;;  %v1202_v18 = vpop.f32.mrf.mxu1  ;;  %v1220_v25 = vadd.f32 %v1219_v56, %v1201_v6  ;;  %v1184_v10 = vadd.f32 %v1183_v5, %v1164_v47 }
  0xfa   : > { %v1239_v27 = vadd.f32 %v1238_v17, %v1220_v25  ;;  %v1203_v33 = vadd.f32 %v1202_v18, %v1184_v10 }
  0xff   : > { %v1221_v19 = vpop.f32.mrf.mxu2  ;;  %v1186_v21 = vpop.f32.mrf.mxu0 }
 0x100   : > { %v1240_v20 = vpop.f32.mrf.mxu3  ;;  %v1205_v22 = vpop.f32.mrf.mxu1  ;;  %v1187_v26 = vadd.f32 %v1186_v21, %v1167_v57  ;;  %v1222_v37 = vadd.f32 %v1221_v19, %v1203_v33 }
 0x102   : > { %v1206_v44 = vadd.f32 %v1205_v22, %v1187_v26  ;;  %v1241_v41 = vadd.f32 %v1240_v20, %v1222_v37 }
 0x107   : > { %v1224_v63 = vpop.f32.mrf.mxu2  ;;  %v1188_v3 = vpop.f32.mrf.mxu0 }
 0x108   : > { %v1243_v24 = vpop.f32.mrf.mxu3  ;;  %v1207_v48 = vpop.f32.mrf.mxu1  ;;  %v1225_v36 = vadd.f32 %v1224_v63, %v1206_v44  ;;  %v1189_v38 = vadd.f32 %v1188_v3, %v1169_v14 }
 0x10a   : > { %v1244_v40 = vadd.f32 %v1243_v24, %v1225_v36  ;;  %v1208_v46 = vadd.f32 %v1207_v48, %v1189_v38 }
 0x10f   : > { %v1226_v28 = vpop.f32.mrf.mxu2  ;;  %v1257_v30 = vpop.f32.mrf.mxu0 }
 0x110   : > { %v1245_v29 = vpop.f32.mrf.mxu3  ;;  %v1276_v32 = vpop.f32.mrf.mxu1  ;;  %v1258_v35 = vadd.f32 %v1257_v30, %v1239_v27  ;;  %v1227_v55 = vadd.f32 %v1226_v28, %v1208_v46 }
 0x112   : > { %v1277_v34 = vadd.f32 %v1276_v32, %v1258_v35  ;;  %v1246_v0 = vadd.f32 %v1245_v29, %v1227_v55 }
 0x114   : > { %v1338_v39 = vadd.f32 %v2575_v31, %v1277_v34 }
 0x116   : > { %1346 = vst [vmem:[%s2581_s20 + $0x8] sm:$0xff] %v1338_v39 }
 0x117   : > { %v1262_v42 = vpop.f32.mrf.mxu2  ;;  %v1259_v49 = vpop.f32.mrf.mxu0 }
 0x118   : > { %v1281_v43 = vpop.f32.mrf.mxu3  ;;  %v1263_v47 = vadd.f32 %v1262_v42, %v1244_v40  ;;  %v1260_v52 = vadd.f32 %v1259_v49, %v1241_v41  ;;  %v1278_v59 = vpop.f32.mrf.mxu1 }
 0x11a   : > { %v1282_v58 = vadd.f32 %v1281_v43, %v1263_v47  ;;  %v1279_v60 = vadd.f32 %v1278_v59, %v1260_v52 }
 0x11c   : > { %v1342_v61 = vadd.f32 %v2589_v1, %v1282_v58  ;;  %v1340_v31 = vadd.f32 %v2585_v45, %v1279_v60 }
 0x11e   : > { %1350 = vst [vmem:[%s2581_s20 + $0x28] sm:$0xff] %v1342_v61 }
 0x11f   : > { %1348 = vst [vmem:[%s2581_s20 + $0x18] sm:$0xff] %v1340_v31  ;;  %v1264_v53 = vpop.f32.mrf.mxu2 }
 0x120   : > { %v1265_v54 = vadd.f32 %v1264_v53, %v1246_v0  ;;  %v1283_v57 = vpop.f32.mrf.mxu3 }
 0x122   : > { %v1284_v62 = vadd.f32 %v1283_v57, %v1265_v54 }
 0x124   : > { %v1344_v2 = vadd.f32 %v1335_v12, %v1284_v62 }
 0x126   : > { %1352 = vst [vmem:[%s2581_s20 + $0x38] sm:$0xff] %v1344_v2 }
 0x127 PF: > { %s13_s14 = sadd.s32 1, %s2154_s14   ;;  %s2614_s12 = smov %s2150_s13 }
 0x128   : > { %p10_p5 = scmp.ge.s32.totalorder %s13_s14, 4   ;;  %s2615_s13 = smov %s2617_s15 }
 0x12a   :  { %12 = sbr.rel (!%p10_p5) target bundleno = 2 (0x2), region = 73 }

// kernel: _lambda_.23
= control target key start
LH: loop header
LB: loop body
LE: loop exit
PB: predicated region body
PF: predicated region fallthrough
CT: control target
= control target key end

     0   :  { %s1509_s12 = smov 0   ;;  %s1511_s13 = smov 0   ;;  %s1716_s0 = inlined_call_operand.vmem [shape: bf16[32,864], index: 0, kind: input, shape index: {}]   ;;  %s1717_s1 = inlined_call_operand.vmem [shape: bf16[2,864,32], index: 1, kind: input, shape index: {}]   ;;  %s1718_s2 = inlined_call_operand.vmem [shape: f32[32,1], index: 2, kind: input, shape index: {}]   ;;  %s1719_s3 = inlined_call_operand.vmem [shape: f32[2,32,32], index: 3, kind: output, shape index: {}]  }
   0x1   :  { %s1513_s14 = smov 0  }
   0x2 LB: > { %s32_s15 = sadd.s32 1, %s1481_s13  ;;  %p1077_p0 = scmp.ge.s32.totalorder %s1485_s14, 1  ;;  %s1485_s14 = sphi %s1513_s14, %s13_s14   ;;  %s1481_s13 = sphi %s1511_s13, %s1721_s13   ;;  %s1477_s12 = sphi %s1509_s12, %s1720_s12  }
   0x3   : > { %p34_p1 = scmp.ge.s32.totalorder %s32_s15, 2  ;;  %p181_p2 = scmp.lt.s32.totalorder %s1485_s14, 3 }
   0x5   : > { %s1723_s15 = smov (%p34_p1, %s32_s15), 0  ;;  %p182_p3 = pnand %p1077_p0, %p181_p2 }
   0x6   : > { %p227_p4 = scmp.lt.s32.totalorder (!%p182_p3), %s1477_s12, 1 }
   0x7   : > { %185 = sbr.rel (%p182_p3) target bundleno = 253 (0xfd), region = 32 }
   0xc   : > { %s1725_s12 = smov (!%p227_p4, %s1477_s12), 1  ;;  %v1083_v28 = vld [vmem:[%s1716_s0] sm:$0xf]  ;;  %v1361_v29 = vld [vmem:[%s1716_s0 + $0x18] sm:$0xf0]  ;;  %vm779_vm0 = vcmask 785408  }
   0xd   : > { %s1434_s16 = smul.u32 432, %s1725_s12  ;;  %v1358_v30 = vld [vmem:[%s1716_s0 + $0x4] sm:$0xf]  ;;  %v1085_v35 = vld [vmem:[%s1716_s0 + $0x1c] sm:$0xf0]  ;;  %v1084_v42 = vor.u32 %v1361_v29, %v1083_v28  ;;  %vm252_vm1 = vcmask 261120  }
   0xe   : > { %v1091_v36 = vld [vmem:[%s1716_s0 + $0x8] sm:$0xf]  ;;  %v1362_v37 = vld [vmem:[%s1716_s0 + $0x20] sm:$0xf0]  ;;  %v1359_v38 = vld [vmem:[%s1716_s0 + $0xc] sm:$0xf]  ;;  %v1088_v43 = vor.u32 %v1358_v30, %v1085_v35 }
   0xf   : > { %s1533_s19 = scalar_lea.vmem %s1717_s1, %s1434_s16  ;;  %v1093_v39 = vld [vmem:[%s1716_s0 + $0x24] sm:$0xf0]  ;;  %v1092_v44 = vor.u32 %v1362_v37, %v1091_v36  ;;  %v1111_v56 = vld [vmem:[%s1716_s0 + $0x38] sm:$0xf]  ;;  %v1368_v57 = vld [vmem:[%s1716_s0 + $0x50] sm:$0xf0] }
  0x10   : > { %v1379_v0 = vld [vmem:[%s1533_s19 + $0x38] sm:$0xff]  ;;  %v1378_v4 = vld [vmem:[%s1533_s19 + $0x30] sm:$0xff]  ;;  %v1377_v8 = vld [vmem:[%s1533_s19 + $0x28] sm:$0xff]  ;;  %v1096_v45 = vor.u32 %v1359_v38, %v1093_v39  ;;  %v1488_v39 = vmov 0.0   ;;  %s1357_s16 = sshll.u32 %s1725_s12, 5 }
  0x11   : > { %v1387_v1 = vld [vmem:[%s1533_s19 + $0x78] sm:$0xff]  ;;  %786 = vmatpush.bf16.msra.mxu0 %v1379_v0  ;;  %v1386_v5 = vld [vmem:[%s1533_s19 + $0x70] sm:$0xff]  ;;  %v1385_v9 = vld [vmem:[%s1533_s19 + $0x68] sm:$0xff]  ;;  %253 = vst.msk [vmem:[#allocation2] sm:$0xff] %vm252_vm1, %v1488_v39  ;;  %s1694_s20 = scalar_lea.vmem %s1719_s3, %s1357_s16 }
  0x12   : > { %v1395_v2 = vld [vmem:[%s1533_s19 + $0xb8] sm:$0xff]  ;;  %805 = vmatpush.bf16.msra.mxu1 %v1387_v1  ;;  %v1394_v6 = vld [vmem:[%s1533_s19 + $0xb0] sm:$0xff]  ;;  %v1393_v10 = vld [vmem:[%s1533_s19 + $0xa8] sm:$0xff]  ;;  %254 = vst.msk [vmem:[#allocation2 + $0x8] sm:$0xff] %vm252_vm1, %v1488_v39 }
  0x13   : > { %v1403_v3 = vld [vmem:[%s1533_s19 + $0xf8] sm:$0xff]  ;;  %824 = vmatpush.bf16.msra.mxu2 %v1395_v2  ;;  %v1402_v7 = vld [vmem:[%s1533_s19 + $0xf0] sm:$0xff]  ;;  %v1401_v11 = vld [vmem:[%s1533_s19 + $0xe8] sm:$0xff]  ;;  %v1112_v2 = vor.u32 %v1368_v57, %v1111_v56  ;;  %255 = vst.msk [vmem:[#allocation2 + $0x10] sm:$0xff] %vm252_vm1, %v1488_v39 }
  0x14   : > { %843 = vmatpush.bf16.msra.mxu3 %v1403_v3  ;;  %v1376_v12 = vld [vmem:[%s1533_s19 + $0x20] sm:$0xff]  ;;  %v1375_v16 = vld [vmem:[%s1533_s19 + $0x18] sm:$0xff]  ;;  %v1374_v20 = vld [vmem:[%s1533_s19 + $0x10] sm:$0xff]  ;;  %256 = vst.msk [vmem:[#allocation2 + $0x18] sm:$0xff] %vm252_vm1, %v1488_v39 }
  0x15   : > { %787 = vmatpush.bf16.msra.mxu0 %v1378_v4  ;;  %v1384_v13 = vld [vmem:[%s1533_s19 + $0x60] sm:$0xff]  ;;  %v1383_v17 = vld [vmem:[%s1533_s19 + $0x58] sm:$0xff]  ;;  %v1382_v21 = vld [vmem:[%s1533_s19 + $0x50] sm:$0xff] }
  0x16   : > { %806 = vmatpush.bf16.msra.mxu1 %v1386_v5  ;;  %v1392_v14 = vld [vmem:[%s1533_s19 + $0xa0] sm:$0xff]  ;;  %v1391_v18 = vld [vmem:[%s1533_s19 + $0x98] sm:$0xff]  ;;  %v1390_v22 = vld [vmem:[%s1533_s19 + $0x90] sm:$0xff] }
  0x17   : > { %825 = vmatpush.bf16.msra.mxu2 %v1394_v6  ;;  %v1400_v15 = vld [vmem:[%s1533_s19 + $0xe0] sm:$0xff]  ;;  %v1399_v19 = vld [vmem:[%s1533_s19 + $0xd8] sm:$0xff]  ;;  %v1398_v23 = vld [vmem:[%s1533_s19 + $0xd0] sm:$0xff] }
  0x18   : > { %844 = vmatpush.bf16.msra.mxu3 %v1402_v7  ;;  %v1373_v24 = vld [vmem:[%s1533_s19 + $0x8] sm:$0xff]  ;;  %v1372_v31 = vld [vmem:[%s1533_s19] sm:$0xff]  ;;  %v1411_v41 = vld [vmem:[%s1533_s19 + $0x138] sm:$0xff] }
  0x19   : > { %788 = vmatpush.bf16.msra.mxu0 %v1377_v8  ;;  %v1381_v25 = vld [vmem:[%s1533_s19 + $0x48] sm:$0xff]  ;;  %v1380_v32 = vld [vmem:[%s1533_s19 + $0x40] sm:$0xff]  ;;  %v1419_v46 = vld [vmem:[%s1533_s19 + $0x178] sm:$0xff] }
  0x1a   : > { %807 = vmatpush.bf16.msra.mxu1 %v1385_v9  ;;  %v1389_v26 = vld [vmem:[%s1533_s19 + $0x88] sm:$0xff]  ;;  %v1388_v33 = vld [vmem:[%s1533_s19 + $0x80] sm:$0xff]  ;;  %v1410_v47 = vld [vmem:[%s1533_s19 + $0x130] sm:$0xff] }
  0x1b   : > { %826 = vmatpush.bf16.msra.mxu2 %v1393_v10  ;;  %v1397_v27 = vld [vmem:[%s1533_s19 + $0xc8] sm:$0xff]  ;;  %v1396_v34 = vld [vmem:[%s1533_s19 + $0xc0] sm:$0xff]  ;;  %v1418_v49 = vld [vmem:[%s1533_s19 + $0x170] sm:$0xff] }
  0x1c   : > { %845 = vmatpush.bf16.msra.mxu3 %v1401_v11  ;;  %v1425_v40 = vld [vmem:[%s1533_s19 + $0x1a8] sm:$0xff]  ;;  %v1424_v48 = vld [vmem:[%s1533_s19 + $0x1a0] sm:$0xff]  ;;  %v1423_v51 = vld [vmem:[%s1533_s19 + $0x198] sm:$0xff] }
  0x1d   : > { %789 = vmatpush.bf16.msra.mxu0 %v1376_v12  ;;  %v1409_v50 = vld [vmem:[%s1533_s19 + $0x128] sm:$0xff]  ;;  %v1408_v53 = vld [vmem:[%s1533_s19 + $0x120] sm:$0xff]  ;;  %v1422_v54 = vld [vmem:[%s1533_s19 + $0x190] sm:$0xff] }
  0x1e   : > { %808 = vmatpush.bf16.msra.mxu1 %v1384_v13  ;;  %v1417_v52 = vld [vmem:[%s1533_s19 + $0x168] sm:$0xff]  ;;  %v1416_v55 = vld [vmem:[%s1533_s19 + $0x160] sm:$0xff]  ;;  %v1365_v58 = vld [vmem:[%s1716_s0 + $0x3c] sm:$0xf]  ;;  %v1487_v13 = vmov 0  }
  0x1f   : > { %827 = vmatpush.bf16.msra.mxu2 %v1392_v14  ;;  %v1113_v59 = vld [vmem:[%s1716_s0 + $0x54] sm:$0xf0]  ;;  %v1119_v60 = vld [vmem:[%s1716_s0 + $0x40] sm:$0xf]  ;;  %v1369_v61 = vld [vmem:[%s1716_s0 + $0x58] sm:$0xf0]  ;;  %1461 = vset.pattern.permute.xlu0 %v1487_v13 }
  0x20   : > { %846 = vmatpush.bf16.msra.mxu3 %v1400_v15  ;;  %v1366_v62 = vld [vmem:[%s1716_s0 + $0x44] sm:$0xf]  ;;  %v1121_v63 = vld [vmem:[%s1716_s0 + $0x5c] sm:$0xf0]  ;;  %v1407_v0 = vld [vmem:[%s1533_s19 + $0x118] sm:$0xff]  ;;  %v1116_v3 = vor.u32 %v1365_v58, %v1113_v59  ;;  %v1120_v4 = vor.u32 %v1369_v61, %v1119_v60  ;;  %1462 = vset.pattern.permute.xlu1 %v1487_v13 }
  0x21   : > { %790 = vmatpush.bf16.msra.mxu0 %v1375_v16  ;;  %v1421_v1 = vld [vmem:[%s1533_s19 + $0x188] sm:$0xff]  ;;  %v1124_v5 = vor.u32 %v1366_v62, %v1121_v63  ;;  %v1415_v6 = vld [vmem:[%s1533_s19 + $0x158] sm:$0xff]  ;;  %v1406_v7 = vld [vmem:[%s1533_s19 + $0x110] sm:$0xff] }
  0x22   : > { %809 = vmatpush.bf16.msra.mxu1 %v1383_v17  ;;  %v1420_v8 = vld [vmem:[%s1533_s19 + $0x180] sm:$0xff]  ;;  %v1414_v9 = vld [vmem:[%s1533_s19 + $0x150] sm:$0xff]  ;;  %v1405_v12 = vld [vmem:[%s1533_s19 + $0x108] sm:$0xff] }
  0x23   : > { %828 = vmatpush.bf16.msra.mxu2 %v1391_v18  ;;  %v935_v10 = vld [vmem:[%s1718_s2] sm:$0xff]  ;;  %v937_v11 = vld [vmem:[%s1718_s2 + $0x10] sm:$0xff]  ;;  %v1413_v14 = vld [vmem:[%s1533_s19 + $0x148] sm:$0xff] }
  0x24   : > { %847 = vmatpush.bf16.msra.mxu3 %v1399_v19  ;;  %941 = vperm.xlu0 %1461, %v935_v10   ;;  %v1404_v15 = vld [vmem:[%s1533_s19 + $0x100] sm:$0xff]  ;;  %v1099_v17 = vld [vmem:[%s1716_s0 + $0x10] sm:$0xf]  ;;  %v1363_v18 = vld [vmem:[%s1716_s0 + $0x28] sm:$0xf0] }
  0x25   : > { %791 = vmatpush.bf16.msra.mxu0 %v1374_v20  ;;  %951 = vperm.xlu1 %1462, %v937_v11   ;;  %v1412_v16 = vld [vmem:[%s1533_s19 + $0x140] sm:$0xff]  ;;  %v1127_v19 = vld [vmem:[%s1716_s0 + $0x48] sm:$0xf] }
  0x26   : > { %810 = vmatpush.bf16.msra.mxu1 %v1382_v21  ;;  %v1370_v20 = vld [vmem:[%s1716_s0 + $0x60] sm:$0xf0]  ;;  %v1360_v21 = vld [vmem:[%s1716_s0 + $0x14] sm:$0xf] }
  0x27   : > { %829 = vmatpush.bf16.msra.mxu2 %v1390_v22  ;;  %v1101_v22 = vld [vmem:[%s1716_s0 + $0x2c] sm:$0xf0]  ;;  %v1128_v28 = vor.u32 %v1370_v20, %v1127_v19  ;;  %v257_v63 = vld [vmem:[#allocation2] sm:$0xff] }
  0x28   : > { %848 = vmatpush.bf16.msra.mxu3 %v1398_v23  ;;  %v936_v23 = vld [vmem:[%s1718_s2 + $0x8] sm:$0xff]  ;;  %v1104_v29 = vor.u32 %v1360_v21, %v1101_v22 }
  0x29   : > { %792 = vmatpush.bf16.msra.mxu0 %v1373_v24  ;;  %v938_v24 = vld [vmem:[%s1718_s2 + $0x18] sm:$0xff] }
  0x2a   : > { %811 = vmatpush.bf16.msra.mxu1 %v1381_v25  ;;  %v1107_v25 = vld [vmem:[%s1716_s0 + $0x18] sm:$0xf] }
  0x2b   : > { %830 = vmatpush.bf16.msra.mxu2 %v1389_v26  ;;  %v1364_v26 = vld [vmem:[%s1716_s0 + $0x30] sm:$0xf0] }
  0x2c   : > { %849 = vmatpush.bf16.msra.mxu3 %v1397_v27  ;;  %v1100_v27 = vor.u32 %v1363_v18, %v1099_v17  ;;  %946 = vperm.xlu0 %1461, %v936_v23   ;;  %v1108_v30 = vor.u32 %v1364_v26, %v1107_v25 }
  0x2d   : > { %793 = vmatpush.bf16.msra.mxu0 %v1372_v31  ;;  %956 = vperm.xlu1 %1462, %v938_v24   ;;  %v1367_v31 = vld [vmem:[%s1716_s0 + $0x4c] sm:$0xf]  ;;  %v259_v24 = vld [vmem:[#allocation2 + $0x10] sm:$0xff] }
  0x2e   : > { %812 = vmatpush.bf16.msra.mxu1 %v1380_v32  ;;  %v1129_v32 = vld [vmem:[%s1716_s0 + $0x64] sm:$0xf0] }
  0x2f   : > { %831 = vmatpush.bf16.msra.mxu2 %v1388_v33  ;;  %v1135_v33 = vld [vmem:[%s1716_s0 + $0x50] sm:$0xf]  ;;  %v1132_v35 = vor.u32 %v1367_v31, %v1129_v32 }
  0x30   : > { %850 = vmatpush.bf16.msra.mxu3 %v1396_v34  ;;  %794 = vmatmul.bf16.vlgmr.msra.gmra.mxu0 %v1084_v42  ;;  %v1371_v34 = vld [vmem:[%s1716_s0 + $0x68] sm:$0xf0] }
  0x31   : > { %862 = vmatpush.bf16.msrb.mxu0 %v1411_v41  ;;  %813 = vmatmul.bf16.vlgmr.msra.gmra.mxu1 %v1088_v43  ;;  %v1136_v36 = vor.u32 %v1371_v34, %v1135_v33 }
  0x32   : > { %832 = vmatmul.bf16.vlgmr.msra.gmra.mxu2 %v1092_v44  ;;  %881 = vmatpush.bf16.msrb.mxu1 %v1419_v46 }
  0x33   : > { %902 = vmatpush.bf16.msrb.mxu2 %v1425_v40  ;;  %851 = vmatmul.bf16.vlgmr.msra.gmra.mxu3 %v1096_v45 }
  0x34   : > { %1426 = vmatpush.bf16.msrb.mxu3 %v1411_v41 }
  0x35   : > { %863 = vmatpush.bf16.msrb.mxu0 %v1410_v47 }
  0x36   : > { %882 = vmatpush.bf16.msrb.mxu1 %v1418_v49 }
  0x37   : > { %903 = vmatpush.bf16.msrb.mxu2 %v1424_v48 }
  0x38   : > { %1427 = vmatpush.bf16.msrb.mxu3 %v1410_v47 }
  0x39   : > { %864 = vmatpush.bf16.msrb.mxu0 %v1409_v50 }
  0x3a   : > { %883 = vmatpush.bf16.msrb.mxu1 %v1417_v52 }
  0x3b   : > { %904 = vmatpush.bf16.msrb.mxu2 %v1423_v51 }
  0x3c   : > { %1428 = vmatpush.bf16.msrb.mxu3 %v1409_v50 }
  0x3d   : > { %865 = vmatpush.bf16.msrb.mxu0 %v1408_v53 }
  0x3e   : > { %884 = vmatpush.bf16.msrb.mxu1 %v1416_v55 }
  0x3f   : > { %905 = vmatpush.bf16.msrb.mxu2 %v1422_v54 }
  0x40   : > { %1429 = vmatpush.bf16.msrb.mxu3 %v1408_v53  ;;  %799 = vmatmul.bf16.gmra.mxu0 %v1112_v2 }
  0x41   : > { %866 = vmatpush.bf16.msrb.mxu0 %v1407_v0  ;;  %818 = vmatmul.bf16.gmra.mxu1 %v1116_v3 }
  0x42   : > { %837 = vmatmul.bf16.gmra.mxu2 %v1120_v4  ;;  %885 = vmatpush.bf16.msrb.mxu1 %v1415_v6 }
  0x43   : > { %906 = vmatpush.bf16.msrb.mxu2 %v1421_v1  ;;  %856 = vmatmul.bf16.gmra.mxu3 %v1124_v5 }
  0x44   : > { %1430 = vmatpush.bf16.msrb.mxu3 %v1407_v0 }
  0x45   : > { %867 = vmatpush.bf16.msrb.mxu0 %v1406_v7 }
  0x46   : > { %886 = vmatpush.bf16.msrb.mxu1 %v1414_v9 }
  0x47   : > { %907 = vmatpush.bf16.msrb.mxu2 %v1420_v8 }
  0x48   : > { %1431 = vmatpush.bf16.msrb.mxu3 %v1406_v7 }
  0x49   : > { %868 = vmatpush.bf16.msrb.mxu0 %v1405_v12 }
  0x4a   : > { %887 = vmatpush.bf16.msrb.mxu1 %v1413_v14 }
  0x4c   : > { %1432 = vmatpush.bf16.msrb.mxu3 %v1405_v12  ;;  %v258_v12 = vld [vmem:[#allocation2 + $0x8] sm:$0xff] }
  0x4d   : > { %869 = vmatpush.bf16.msrb.mxu0 %v1404_v15 }
  0x4e   : > { %888 = vmatpush.bf16.msrb.mxu1 %v1412_v16 }
  0x50   : > { %1433 = vmatpush.bf16.msrb.mxu3 %v1404_v15  ;;  %870 = vmatmul.bf16.vlgmr.msrb.gmra.mxu0 %v1100_v27 }
  0x51   : > { %889 = vmatmul.bf16.vlgmr.msrb.gmra.mxu1 %v1104_v29 }
  0x52   : > { %1353 = vmatmul.msk.bf16.vlgmr.msrb.gmra.mxu2 %vm779_vm0, %v1108_v30 }
  0x53   : > { %875 = vmatmul.bf16.vlgmr.msrb.gmra.mxu3 %v1128_v28 }
  0x61   : > { %894 = vmatmul.bf16.gmra.mxu1 %v1132_v35 }
  0x62   : > { %1354 = vmatmul.msk.bf16.gmra.mxu2 %vm779_vm0, %v1136_v36  ;;  %v260_v36 = vld [vmem:[#allocation2 + $0x18] sm:$0xff] }
  0x96   : > { %v942_v10 = vpop.permute.xlu0 %941 }
  0x97   : > { %v952_v39 = vpop.permute.xlu1 %951 }
  0x9e   : > { %v947_v28 = vpop.permute.xlu0 %946 }
  0xad   : > { %v795_v37 = vpop.f32.mrf.mxu0 }
  0xae   : > { %v814_v38 = vpop.f32.mrf.mxu1 }
  0xaf   : > { %v815_v51 = vadd.f32 %v814_v38, %v795_v37 }
  0xb5   : > { %v833_v40 = vpop.f32.mrf.mxu2  ;;  %v797_v42 = vpop.f32.mrf.mxu0 }
  0xb6   : > { %v852_v41 = vpop.f32.mrf.mxu3  ;;  %v816_v43 = vpop.f32.mrf.mxu1  ;;  %v834_v53 = vadd.f32 %v833_v40, %v815_v51 }
  0xb7   : > { %v817_v58 = vadd.f32 %v816_v43, %v797_v42  ;;  %v957_v43 = vpop.permute.xlu1 %956 }
  0xb8   : > { %v853_v56 = vadd.f32 %v852_v41, %v834_v53 }
  0xbd   : > { %v835_v44 = vpop.f32.mrf.mxu2  ;;  %v800_v45 = vpop.f32.mrf.mxu0 }
  0xbe   : > { %v819_v46 = vpop.f32.mrf.mxu1  ;;  %v854_v47 = vpop.f32.mrf.mxu3  ;;  %v836_v60 = vadd.f32 %v835_v44, %v817_v58 }
  0xbf   : > { %v820_v5 = vadd.f32 %v819_v46, %v800_v45 }
  0xc0   : > { %v855_v2 = vadd.f32 %v854_v47, %v836_v60 }
  0xc5   : > { %v838_v48 = vpop.f32.mrf.mxu2  ;;  %v802_v49 = vpop.f32.mrf.mxu0 }
  0xc6   : > { %v821_v50 = vpop.f32.mrf.mxu1  ;;  %v857_v52 = vpop.f32.mrf.mxu3  ;;  %v839_v8 = vadd.f32 %v838_v48, %v820_v5 }
  0xc7   : > { %v822_v19 = vadd.f32 %v821_v50, %v802_v49 }
  0xc8   : > { %v858_v16 = vadd.f32 %v857_v52, %v839_v8 }
  0xcd   : > { %v840_v54 = vpop.f32.mrf.mxu2  ;;  %v871_v55 = vpop.f32.mrf.mxu0 }
  0xce   : > { %v890_v57 = vpop.f32.mrf.mxu1  ;;  %v872_v59 = vadd.f32 %v871_v55, %v853_v56  ;;  %v859_v61 = vpop.f32.mrf.mxu3  ;;  %v841_v22 = vadd.f32 %v840_v54, %v822_v19 }
  0xd0   : > { %v891_v62 = vadd.f32 %v890_v57, %v872_v59  ;;  %v860_v29 = vadd.f32 %v859_v61, %v841_v22 }
  0xd5   : > { %v909_v0 = vpop.f32.mrf.mxu2  ;;  %v873_v1 = vpop.f32.mrf.mxu0 }
  0xd6   : > { %v910_v3 = vadd.f32 %v909_v0, %v891_v62  ;;  %v892_v4 = vpop.f32.mrf.mxu1  ;;  %v874_v7 = vadd.f32 %v873_v1, %v855_v2  ;;  %v876_v11 = vpop.f32.mrf.mxu3 }
  0xd7   : > { %v877_v20 = vadd.f32 %v876_v11, %v858_v16 }
  0xd8   : > { %v919_v6 = vadd.f32 %v910_v3, %v257_v63  ;;  %v893_v9 = vadd.f32 %v892_v4, %v874_v7 }
  0xda   : > { %924 = vst.msk [vmem:[#allocation2] sm:$0xff] %vm252_vm1, %v919_v6 }
  0xdd   : > { %v911_v13 = vpop.f32.mrf.mxu2 }
  0xde   : > { %v912_v14 = vadd.f32 %v911_v13, %v893_v9  ;;  %v895_v15 = vpop.f32.mrf.mxu1  ;;  %v878_v27 = vpop.f32.mrf.mxu3 }
  0xdf   : > { %v896_v23 = vadd.f32 %v895_v15, %v877_v20  ;;  %v879_v33 = vadd.f32 %v878_v27, %v860_v29 }
  0xe0   : > { %v920_v17 = vadd.f32 %v912_v14, %v258_v12 }
  0xe1   : > { %v931_v18 = vld [vmem:[#allocation2] sm:$0xff] }
  0xe2   : > { %925 = vst.msk [vmem:[#allocation2 + $0x8] sm:$0xff] %vm252_vm1, %v920_v17  ;;  %v959_v21 = vadd.f32 %v942_v10, %v931_v18 }
  0xe4   : > { %963 = vst.msk [vmem:[%s1694_s20] sm:$0xff] %vm252_vm1, %v959_v21 }
  0xe5   : > { %v914_v25 = vpop.f32.mrf.mxu2 }
  0xe6   : > { %v915_v26 = vadd.f32 %v914_v25, %v896_v23  ;;  %v897_v31 = vpop.f32.mrf.mxu1 }
  0xe7   : > { %v898_v35 = vadd.f32 %v897_v31, %v879_v33 }
  0xe8   : > { %v921_v30 = vadd.f32 %v915_v26, %v259_v24 }
  0xe9   : > { %v932_v32 = vld [vmem:[#allocation2 + $0x8] sm:$0xff] }
  0xea   : > { %926 = vst.msk [vmem:[#allocation2 + $0x10] sm:$0xff] %vm252_vm1, %v921_v30  ;;  %v960_v34 = vadd.f32 %v947_v28, %v932_v32 }
  0xec   : > { %964 = vst.msk [vmem:[%s1694_s20 + $0x8] sm:$0xff] %vm252_vm1, %v960_v34 }
  0xed   : > { %v916_v37 = vpop.f32.mrf.mxu2 }
  0xee   : > { %v917_v38 = vadd.f32 %v916_v37, %v898_v35 }
  0xf0   : > { %v922_v40 = vadd.f32 %v917_v38, %v260_v36 }
  0xf1   : > { %v933_v41 = vld [vmem:[#allocation2 + $0x10] sm:$0xff] }
  0xf2   : > { %v961_v42 = vadd.f32 %v952_v39, %v933_v41  ;;  %927 = vst.msk [vmem:[#allocation2 + $0x18] sm:$0xff] %vm252_vm1, %v922_v40 }
  0xf4   : > { %965 = vst.msk [vmem:[%s1694_s20 + $0x10] sm:$0xff] %vm252_vm1, %v961_v42 }
  0xf9   : > { %v934_v44 = vld [vmem:[#allocation2 + $0x18] sm:$0xff] }
  0xfa   : > { %v962_v45 = vadd.f32 %v957_v43, %v934_v44 }
  0xfc   : > { %966 = vst.msk [vmem:[%s1694_s20 + $0x18] sm:$0xff] %vm252_vm1, %v962_v45 }
  0xfd PF: > { %s13_s14 = sadd.s32 1, %s1485_s14   ;;  %s1720_s12 = smov %s1481_s13 }
  0xfe   : > { %p10_p5 = scmp.ge.s32.totalorder %s13_s14, 4   ;;  %s1721_s13 = smov %s1723_s15 }
 0x100   :  { %12 = sbr.rel (!%p10_p5) target bundleno = 2 (0x2), region = 73 }

// kernel: _lambda_.24
= control target key start
LH: loop header
LB: loop body
LE: loop exit
PB: predicated region body
PF: predicated region fallthrough
CT: control target
= control target key end

     0   :  { %s355_s12 = smov 0   ;;  %s403_s0 = inlined_call_operand.vmem [shape: f32[2,16,64], index: 0, kind: input, shape index: {}]   ;;  %s404_s1 = inlined_call_operand.vmem [shape: f32[16,64], index: 1, kind: input, shape index: {}]   ;;  %s405_s2 = inlined_call_operand.vmem [shape: f32[16,64], index: 2, kind: input, shape index: {}]   ;;  %s406_s3 = inlined_call_operand.vmem [shape: f32[2,16,64], index: 3, kind: output, shape index: {}]  }
   0x1 LB: > { %s298_s13 = sadd.s32 4294967295, %s332_s12   ;;  %p302_p0 = scmp.ge.s32.totalorder %s332_s12, 1  ;;  %s332_s12 = sphi %s355_s12, %s13_s12  }
   0x2   : > { %p137_p1 = scmp.lt.s32.totalorder %s332_s12, 3 }
   0x4   : > { %p138_p2 = pnand %p302_p0, %p137_p1 }
   0x5   : > { %p161_p3 = scmp.lt.s32.totalorder (!%p138_p2), %s298_s13, 1 }
   0x6   : > { %141 = sbr.rel (%p138_p2) target bundleno = 177 (0xb1), region = 32 }
   0xb   : > { %s408_s13 = smov (!%p161_p3, %s298_s13), 1  ;;  %vm177_vm0 = vcmask 523264   ;;  %v334_v8 = vmov 64.0   ;;  %v173_v40 = vld [vmem:[%s404_s1] sm:$0xff]  ;;  %v174_v52 = vld [vmem:[%s404_s1 + $0x8] sm:$0xff] }
   0xc   : > { %s309_s14 = sshll.u32 %s408_s13, 4  ;;  %320 = vrcp.f32 %v334_v8  ;;  %v175_v44 = vld [vmem:[%s405_s2] sm:$0xff]  ;;  %v176_v55 = vld [vmem:[%s405_s2 + $0x8] sm:$0xff] }
   0xd   : > { %s165_s17 = scalar_lea.vmem %s403_s0, %s309_s14  ;;  %s170_s24 = scalar_lea.vmem %s406_s3, %s309_s14 }
   0xe   : > { %v171_v0 = vld [vmem:[%s165_s17] sm:$0xff]  ;;  %v372_v3 = vld [vmem:[%s165_s17 + $0x8] sm:$0xff] }
   0xf   : > { %v178_v1 = vsel %vm177_vm0, %v171_v0, 0.0  ;;  %v193_v2 = vmul.f32 %v171_v0, %v171_v0  ;;  %v194_v5 = vmul.f32 %v372_v3, %v372_v3  ;;  %v181_v6 = vsel %vm177_vm0, %v372_v3, 0.0 }
  0x10   : > { %179 = vadd.xlane.f32.xlu0 %v178_v1 }
  0x11   : > { %v195_v4 = vsel %vm177_vm0, %v193_v2, 0.0  ;;  %v198_v7 = vsel %vm177_vm0, %v194_v5, 0.0 }
  0x12   : > { %196 = vadd.xlane.f32.xlu1 %v195_v4  ;;  %v321_v9 = vpop.eup %320 }
  0x13   : > { %v185_v10 = vmul.f32 64.0, %v321_v9  ;;  %vm189_vm1 = vweird.f32 %v321_v9 }
  0x15   : > { %v186_v11 = vsub.f32 1.0, %v185_v10 }
  0x17   : > { %v187_v12 = vmul.f32 %v321_v9, %v186_v11 }
  0x18   : > { %182 = vadd.xlane.f32.xlu0 %v181_v6 }
  0x19   : > { %v188_v13 = vadd.f32 %v321_v9, %v187_v12 }
  0x1a   : > { %199 = vadd.xlane.f32.xlu1 %v198_v7 }
  0x1b   : > { %v190_v14 = vsel %vm189_vm1, %v321_v9, %v188_v13 }
  0x83   : > { %v180_v15 = vpop.xlane.xlu0 %179 }
  0x84   : > { %v191_v16 = vmul.f32 %v190_v14, %v180_v15 }
  0x85   : > { %v197_v17 = vpop.xlane.xlu1 %196 }
  0x86   : > { %v203_v18 = vmul.f32 %v191_v16, %v191_v16  ;;  %v201_v19 = vmul.f32 %v197_v17, %v190_v14  ;;  %v231_v38 = vsub.f32 %v171_v0, %v191_v16 }
  0x88   : > { %v205_v20 = vsub.f32 %v201_v19, %v203_v18 }
  0x8a   : > { %v207_v21 = vmax.f32 %v205_v20, 0.0 }
  0x8b   : > { %v183_v22 = vpop.xlane.xlu0 %182 }
  0x8c   : > { %v209_v23 = vadd.f32 1e-05, %v207_v21  ;;  %v192_v24 = vmul.f32 %v190_v14, %v183_v22 }
  0x8d   : > { %v200_v25 = vpop.xlane.xlu1 %199 }
  0x8e   : > { %322 = vrsqrt.f32 %v209_v23  ;;  %v204_v26 = vmul.f32 %v192_v24, %v192_v24  ;;  %v202_v27 = vmul.f32 %v200_v25, %v190_v14  ;;  %vm217_vm3 = vweird.f32 %v209_v23 }
  0x8f   : > { %v232_v51 = vsub.f32 %v372_v3, %v192_v24 }
  0x90   : > { %v206_v28 = vsub.f32 %v202_v27, %v204_v26 }
  0x92   : > { %v208_v29 = vmax.f32 %v206_v28, 0.0 }
  0x94   : > { %v323_v30 = vpop.eup %322  ;;  %v210_v32 = vadd.f32 1e-05, %v208_v29 }
  0x95   : > { %v212_v31 = vmul.f32 %v323_v30, %v209_v23  ;;  %vm218_vm2 = vweird.f32 %v323_v30 }
  0x96   : > { %324 = vrsqrt.f32 %v210_v32  ;;  %vm219_vm4 = vmor %vm217_vm3, %vm218_vm2  ;;  %vm227_vm6 = vweird.f32 %v210_v32 }
  0x97   : > { %v213_v33 = vmul.f32 %v323_v30, %v212_v31 }
  0x99   : > { %v214_v34 = vmul.f32 0.5, %v213_v33 }
  0x9b   : > { %v215_v35 = vsub.f32 1.5, %v214_v34 }
  0x9c   : > { %v325_v36 = vpop.eup %324 }
  0x9d   : > { %v216_v37 = vmul.f32 %v323_v30, %v215_v35  ;;  %v222_v39 = vmul.f32 %v325_v36, %v210_v32  ;;  %vm228_vm5 = vweird.f32 %v325_v36 }
  0x9e   : > { %vm229_vm7 = vmor %vm227_vm6, %vm228_vm5 }
  0x9f   : > { %v220_v41 = vsel %vm219_vm4, %v323_v30, %v216_v37  ;;  %v223_v43 = vmul.f32 %v325_v36, %v222_v39 }
  0xa0   : > { %v233_v42 = vmul.f32 %v231_v38, %v220_v41 }
  0xa1   : > { %v224_v46 = vmul.f32 0.5, %v223_v43 }
  0xa2   : > { %v235_v45 = vmul.f32 %v233_v42, %v173_v40 }
  0xa3   : > { %v225_v48 = vsub.f32 1.5, %v224_v46 }
  0xa4   : > { %v237_v47 = vadd.f32 %v235_v45, %v175_v44 }
  0xa5   : > { %v226_v50 = vmul.f32 %v325_v36, %v225_v48 }
  0xa6   : > { %v239_v49 = vmax.f32 %v237_v47, 0.0 }
  0xa7   : > { %v230_v53 = vsel %vm229_vm7, %v325_v36, %v226_v50 }
  0xa8   : > { %241 = vst.msk [vmem:[%s170_s24] sm:$0xff] %vm177_vm0, %v239_v49  ;;  %v234_v54 = vmul.f32 %v232_v51, %v230_v53 }
  0xaa   : > { %v236_v56 = vmul.f32 %v234_v54, %v174_v52 }
  0xac   : > { %v238_v57 = vadd.f32 %v236_v56, %v176_v55 }
  0xae   : > { %v240_v58 = vmax.f32 %v238_v57, 0.0 }
  0xb0   : > { %242 = vst.msk [vmem:[%s170_s24 + $0x8] sm:$0xff] %vm177_vm0, %v240_v58 }
  0xb1 PF: > { %s13_s12 = sadd.s32 1, %s332_s12  }
  0xb2   : > { %p10_p4 = scmp.ge.s32.totalorder %s13_s12, 4  }
  0xb4   :  { %12 = sbr.rel (!%p10_p4) target bundleno = 1 (0x1), region = 62 }

// kernel: _lambda_.26
= control target key start
LH: loop header
LB: loop body
LE: loop exit
PB: predicated region body
PF: predicated region fallthrough
CT: control target
= control target key end

     0   :  { %s576_s12 = smov 0   ;;  %s578_s13 = smov 0   ;;  %s645_s0 = inlined_call_operand.vmem [shape: bf16[32,32], index: 0, kind: input, shape index: {}]   ;;  %s646_s1 = inlined_call_operand.vmem [shape: bf16[2,32,32], index: 1, kind: input, shape index: {}]   ;;  %s647_s2 = inlined_call_operand.vmem [shape: f32[32,1], index: 2, kind: input, shape index: {}]   ;;  %s648_s3 = inlined_call_operand.vmem [shape: f32[2,32,32], index: 3, kind: output, shape index: {}]  }
   0x1   :  { %s580_s14 = smov 0  }
   0x2 LB: > { %s32_s15 = sadd.s32 1, %s548_s13  ;;  %p469_p0 = scmp.ge.s32.totalorder %s552_s14, 1  ;;  %s552_s14 = sphi %s580_s14, %s13_s14   ;;  %s548_s13 = sphi %s578_s13, %s650_s13   ;;  %s544_s12 = sphi %s576_s12, %s649_s12  }
   0x3   : > { %p34_p1 = scmp.ge.s32.totalorder %s32_s15, 2  ;;  %p179_p2 = scmp.lt.s32.totalorder %s552_s14, 3 }
   0x5   : > { %s652_s15 = smov (%p34_p1, %s32_s15), 0  ;;  %p180_p3 = pnand %p469_p0, %p179_p2 }
   0x6   : > { %p222_p4 = scmp.lt.s32.totalorder (!%p180_p3), %s544_s12, 1 }
   0x7   : > { %183 = sbr.rel (%p180_p3) target bundleno = 171 (0xab), region = 32 }
   0xc   : > { %v329_v0 = vld [vmem:[%s647_s2 + $0x10] sm:$0xff]  ;;  %vm247_vm0 = vcmask 261120   ;;  %v554_v1 = vmov 0   ;;  %v327_v2 = vld [vmem:[%s647_s2] sm:$0xff]  ;;  %s654_s12 = smov (!%p222_p4, %s544_s12), 1  ;;  %v555_v3 = vmov 0.0  }
   0xd   : > { %529 = vset.pattern.permute.xlu1 %v554_v1  ;;  %528 = vset.pattern.permute.xlu0 %v554_v1  ;;  %248 = vst.msk [vmem:[#allocation2] sm:$0xff] %vm247_vm0, %v555_v3  ;;  %s494_s20 = sshll.u32 %s654_s12, 4  ;;  %v330_v5 = vld [vmem:[%s647_s2 + $0x18] sm:$0xff]  ;;  %v328_v6 = vld [vmem:[%s647_s2 + $0x8] sm:$0xff]  ;;  %v496_v8 = vld [vmem:[%s645_s0] sm:$0xff]  ;;  %s495_s5 = sshll.u32 %s654_s12, 5 }
   0xe   : > { %343 = vperm.xlu1 %529, %v329_v0   ;;  %333 = vperm.xlu0 %528, %v327_v2   ;;  %249 = vst.msk [vmem:[#allocation2 + $0x8] sm:$0xff] %vm247_vm0, %v555_v3  ;;  %s232_s23 = scalar_lea.vmem %s646_s1, %s494_s20  ;;  %v497_v9 = vld [vmem:[%s645_s0 + $0x8] sm:$0xff]  ;;  %s241_s8 = scalar_lea.vmem %s648_s3, %s495_s5 }
   0xf   : > { %250 = vst.msk [vmem:[#allocation2 + $0x10] sm:$0xff] %vm247_vm0, %v555_v3  ;;  %v499_v4 = vld [vmem:[%s232_s23 + $0x8] sm:$0xff]  ;;  %v498_v7 = vld [vmem:[%s232_s23] sm:$0xff] }
  0x10   : > { %251 = vst.msk [vmem:[#allocation2 + $0x18] sm:$0xff] %vm247_vm0, %v555_v3  ;;  %299 = vmatpush.bf16.msra.mxu0 %v499_v4  ;;  %500 = vmatpush.bf16.msra.mxu1 %v499_v4 }
  0x14   : > { %300 = vmatpush.bf16.msra.mxu0 %v498_v7  ;;  %501 = vmatpush.bf16.msra.mxu1 %v498_v7  ;;  %v252_v10 = vld [vmem:[#allocation2] sm:$0xff] }
  0x15   : > { %v253_v16 = vld [vmem:[#allocation2 + $0x8] sm:$0xff] }
  0x16   : > { %348 = vperm.xlu1 %529, %v330_v5   ;;  %338 = vperm.xlu0 %528, %v328_v6   ;;  %v254_v11 = vld [vmem:[#allocation2 + $0x10] sm:$0xff] }
  0x17   : > { %490 = vmatmul.msk.bf16.vlgmr.msra.gmra.mxu0 %vm247_vm0, %v496_v8  ;;  %491 = vmatmul.msk.bf16.vlgmr.msra.gmra.mxu1 %vm247_vm0, %v497_v9  ;;  %v255_v17 = vld [vmem:[#allocation2 + $0x18] sm:$0xff] }
  0x80   : > { %v334_v18 = vpop.permute.xlu0 %333  ;;  %v344_v21 = vpop.permute.xlu1 %343 }
  0x88   : > { %v339_v28 = vpop.permute.xlu0 %338  ;;  %v349_v30 = vpop.permute.xlu1 %348 }
  0x94   : > { %v302_v12 = vpop.f32.mrf.mxu0  ;;  %v307_v13 = vpop.f32.mrf.mxu1 }
  0x95   : > { %v312_v14 = vadd.f32 %v302_v12, %v252_v10  ;;  %v314_v15 = vadd.f32 %v307_v13, %v254_v11 }
  0x97   : > { %316 = vst.msk [vmem:[#allocation2] sm:$0xff] %vm247_vm0, %v312_v14 }
  0x98   : > { %318 = vst.msk [vmem:[#allocation2 + $0x10] sm:$0xff] %vm247_vm0, %v314_v15 }
  0x9c   : > { %v304_v19 = vpop.f32.mrf.mxu0  ;;  %v309_v20 = vpop.f32.mrf.mxu1 }
  0x9d   : > { %v313_v22 = vadd.f32 %v304_v19, %v253_v16  ;;  %v315_v23 = vadd.f32 %v309_v20, %v255_v17 }
  0x9e   : > { %v323_v24 = vld [vmem:[#allocation2] sm:$0xff] }
  0x9f   : > { %v325_v25 = vld [vmem:[#allocation2 + $0x10] sm:$0xff]  ;;  %v351_v26 = vadd.f32 %v334_v18, %v323_v24  ;;  %317 = vst.msk [vmem:[#allocation2 + $0x8] sm:$0xff] %vm247_vm0, %v313_v22 }
  0xa0   : > { %v353_v27 = vadd.f32 %v344_v21, %v325_v25  ;;  %319 = vst.msk [vmem:[#allocation2 + $0x18] sm:$0xff] %vm247_vm0, %v315_v23 }
  0xa1   : > { %355 = vst.msk [vmem:[%s241_s8] sm:$0xff] %vm247_vm0, %v351_v26 }
  0xa2   : > { %357 = vst.msk [vmem:[%s241_s8 + $0x10] sm:$0xff] %vm247_vm0, %v353_v27 }
  0xa6   : > { %v324_v29 = vld [vmem:[#allocation2 + $0x8] sm:$0xff] }
  0xa7   : > { %v326_v31 = vld [vmem:[#allocation2 + $0x18] sm:$0xff]  ;;  %v352_v32 = vadd.f32 %v339_v28, %v324_v29 }
  0xa8   : > { %v354_v33 = vadd.f32 %v349_v30, %v326_v31 }
  0xa9   : > { %356 = vst.msk [vmem:[%s241_s8 + $0x8] sm:$0xff] %vm247_vm0, %v352_v32 }
  0xaa   : > { %358 = vst.msk [vmem:[%s241_s8 + $0x18] sm:$0xff] %vm247_vm0, %v354_v33 }
  0xab PF: > { %s13_s14 = sadd.s32 1, %s552_s14   ;;  %s649_s12 = smov %s548_s13 }
  0xac   : > { %p10_p5 = scmp.ge.s32.totalorder %s13_s14, 4   ;;  %s650_s13 = smov %s652_s15 }
  0xae   :  { %12 = sbr.rel (!%p10_p5) target bundleno = 2 (0x2), region = 73 }

// kernel: _lambda_.27
= control target key start
LH: loop header
LB: loop body
LE: loop exit
PB: predicated region body
PF: predicated region fallthrough
CT: control target
= control target key end

     0   :  { %s552_s21 = smov 0   ;;  %s650_s0 = inlined_call_operand.vmem [shape: f32[2,16,64], index: 0, kind: input, shape index: {}]   ;;  %s651_s1 = inlined_call_operand.vmem [shape: f32[2,16,64], index: 1, kind: input, shape index: {}]   ;;  %s652_s2 = inlined_call_operand.vmem [shape: f32[16,64], index: 2, kind: input, shape index: {}]   ;;  %s653_s3 = inlined_call_operand.vmem [shape: f32[16,64], index: 3, kind: input, shape index: {}]   ;;  %s654_s4 = inlined_call_operand.vmem [shape: f32[16,64], index: 4, kind: input, shape index: {}]   ;;  %s655_s5 = inlined_call_operand.vmem [shape: f32[16,64], index: 5, kind: input, shape index: {}]   ;;  %s656_s6 = inlined_call_operand.vmem [shape: f32[2,16,64], index: 6, kind: output, shape index: {}]  }
   0x1 LB: > { %s473_s22 = sadd.s32 4294967295, %s514_s21   ;;  %p477_p0 = scmp.ge.s32.totalorder %s514_s21, 1  ;;  %s514_s21 = sphi %s552_s21, %s16_s21  }
   0x2   : > { %p222_p1 = scmp.lt.s32.totalorder %s514_s21, 3 }
   0x4   : > { %p223_p2 = pnand %p477_p0, %p222_p1 }
   0x5   : > { %p257_p3 = scmp.lt.s32.totalorder (!%p223_p2), %s473_s22, 1 }
   0x6   : > { %226 = sbr.rel (%p223_p2) target bundleno = 186 (0xba), region = 44 }
   0xb   : > { %s658_s22 = smov (!%p257_p3, %s473_s22), 1  ;;  %vm278_vm0 = vcmask 523264   ;;  %v516_v16 = vmov 64.0  }
   0xc   : > { %s560_s23 = sshll.u32 %s658_s22, 4  ;;  %498 = vrcp.f32 %v516_v16 }
   0xd   : > { %s266_s26 = scalar_lea.vmem %s651_s1, %s560_s23  ;;  %s261_s29 = scalar_lea.vmem %s650_s0, %s560_s23 }
   0xe   : > { %v566_v0 = vld [vmem:[%s266_s26] sm:$0xff]  ;;  %v580_v5 = vld [vmem:[%s261_s29 + $0x8] sm:$0xff] }
   0xf   : > { %v346_v1 = vsel %vm278_vm0, %v566_v0, 0.0  ;;  %v574_v2 = vld [vmem:[%s261_s29] sm:$0xff]  ;;  %v583_v7 = vld [vmem:[%s266_s26 + $0x8] sm:$0xff]  ;;  %v295_v8 = vmul.f32 %v580_v5, %v580_v5  ;;  %v282_v10 = vsel %vm278_vm0, %v580_v5, 0.0  ;;  %v354_v13 = vmul.f32 %v566_v0, %v566_v0  ;;  %s271_s26 = scalar_lea.vmem %s656_s6, %s560_s23 }
  0x10   : > { %347 = vadd.xlane.f32.xlu1 %v346_v1  ;;  %v279_v3 = vsel %vm278_vm0, %v574_v2, 0.0  ;;  %v294_v4 = vmul.f32 %v574_v2, %v574_v2  ;;  %v349_v9 = vsel %vm278_vm0, %v583_v7, 0.0  ;;  %v355_v12 = vmul.f32 %v583_v7, %v583_v7 }
  0x11   : > { %280 = vadd.xlane.f32.xlu0 %v279_v3  ;;  %v299_v11 = vsel %vm278_vm0, %v295_v8, 0.0  ;;  %v356_v15 = vsel %vm278_vm0, %v354_v13, 0.0 }
  0x12   : > { %v296_v6 = vsel %vm278_vm0, %v294_v4, 0.0  ;;  %v359_v14 = vsel %vm278_vm0, %v355_v12, 0.0  ;;  %v499_v17 = vpop.eup %498 }
  0x13   : > { %297 = vadd.xlane.f32.xlu2 %v296_v6  ;;  %v286_v18 = vmul.f32 64.0, %v499_v17  ;;  %vm290_vm1 = vweird.f32 %v499_v17 }
  0x15   : > { %v287_v19 = vsub.f32 1.0, %v286_v18 }
  0x17   : > { %v288_v20 = vmul.f32 %v499_v17, %v287_v19 }
  0x18   : > { %350 = vadd.xlane.f32.xlu1 %v349_v9 }
  0x19   : > { %283 = vadd.xlane.f32.xlu0 %v282_v10  ;;  %v289_v21 = vadd.f32 %v499_v17, %v288_v20 }
  0x1b   : > { %300 = vadd.xlane.f32.xlu2 %v299_v11  ;;  %v291_v22 = vsel %vm290_vm1, %v499_v17, %v289_v21 }
  0x20   : > { %360 = vadd.xlane.f32.xlu1 %v359_v14 }
  0x21   : > { %357 = vadd.xlane.f32.xlu0 %v356_v15 }
  0x83   : > { %v348_v23 = vpop.xlane.xlu1 %347 }
  0x84   : > { %v281_v24 = vpop.xlane.xlu0 %280  ;;  %v604_v39 = vmul.f32 %v348_v23, %v291_v22  ;;  %v275_v23 = vld [vmem:[%s652_s2 + $0x8] sm:$0xff] }
  0x85   : > { %v598_v25 = vmul.f32 %v291_v22, %v281_v24 }
  0x86   : > { %v298_v26 = vpop.xlane.xlu2 %297  ;;  %v364_v47 = vmul.f32 %v604_v39, %v604_v39 }
  0x87   : > { %v304_v27 = vmul.f32 %v598_v25, %v598_v25  ;;  %v302_v28 = vmul.f32 %v298_v26, %v291_v22  ;;  %v332_v17 = vsub.f32 %v574_v2, %v598_v25  ;;  %v392_v26 = vsub.f32 %v566_v0, %v604_v39  ;;  %v345_v0 = vld [vmem:[%s655_s5 + $0x8] sm:$0xff] }
  0x89   : > { %v306_v29 = vsub.f32 %v302_v28, %v304_v27  ;;  %v343_v27 = vld [vmem:[%s654_s4 + $0x8] sm:$0xff] }
  0x8b   : > { %v308_v30 = vmax.f32 %v306_v29, 0.0  ;;  %v351_v31 = vpop.xlane.xlu1 %350 }
  0x8c   : > { %v284_v32 = vpop.xlane.xlu0 %283  ;;  %v602_v37 = vmul.f32 %v351_v31, %v291_v22  ;;  %v342_v31 = vld [vmem:[%s654_s4] sm:$0xff] }
  0x8d   : > { %v310_v33 = vadd.f32 1e-05, %v308_v30  ;;  %v293_v34 = vmul.f32 %v291_v22, %v284_v32 }
  0x8e   : > { %v301_v35 = vpop.xlane.xlu2 %300  ;;  %v365_v42 = vmul.f32 %v602_v37, %v602_v37  ;;  %v393_v2 = vsub.f32 %v583_v7, %v602_v37  ;;  %v344_v37 = vld [vmem:[%s655_s5] sm:$0xff] }
  0x8f   : > { %500 = vrsqrt.f32 %v310_v33  ;;  %v305_v36 = vmul.f32 %v293_v34, %v293_v34  ;;  %v303_v38 = vmul.f32 %v301_v35, %v291_v22  ;;  %vm318_vm4 = vweird.f32 %v310_v33  ;;  %v276_v35 = vld [vmem:[%s653_s3] sm:$0xff] }
  0x90   : > { %v333_v15 = vsub.f32 %v580_v5, %v293_v34  ;;  %v274_v5 = vld [vmem:[%s652_s2] sm:$0xff] }
  0x91   : > { %v307_v40 = vsub.f32 %v303_v38, %v305_v36 }
  0x93   : > { %v361_v41 = vpop.xlane.xlu1 %360  ;;  %v309_v43 = vmax.f32 %v307_v40, 0.0 }
  0x94   : > { %v363_v44 = vmul.f32 %v361_v41, %v291_v22  ;;  %v358_v45 = vpop.xlane.xlu0 %357 }
  0x95   : > { %v501_v46 = vpop.eup %500  ;;  %v362_v48 = vmul.f32 %v358_v45, %v291_v22  ;;  %v311_v50 = vadd.f32 1e-05, %v309_v43 }
  0x96   : > { %v313_v49 = vmul.f32 %v501_v46, %v310_v33  ;;  %v367_v51 = vsub.f32 %v363_v44, %v365_v42  ;;  %vm319_vm2 = vweird.f32 %v501_v46  ;;  %v277_v33 = vld [vmem:[%s653_s3 + $0x8] sm:$0xff] }
  0x97   : > { %v366_v52 = vsub.f32 %v362_v48, %v364_v47  ;;  %502 = vrsqrt.f32 %v311_v50  ;;  %vm320_vm5 = vmor %vm318_vm4, %vm319_vm2  ;;  %vm328_vm6 = vweird.f32 %v311_v50 }
  0x98   : > { %v314_v53 = vmul.f32 %v501_v46, %v313_v49  ;;  %v369_v54 = vmax.f32 %v367_v51, 0.0 }
  0x99   : > { %v368_v55 = vmax.f32 %v366_v52, 0.0 }
  0x9a   : > { %v371_v56 = vadd.f32 1e-05, %v369_v54  ;;  %v315_v58 = vmul.f32 0.5, %v314_v53 }
  0x9b   : > { %v370_v57 = vadd.f32 1e-05, %v368_v55 }
  0x9c   : > { %504 = vrsqrt.f32 %v371_v56  ;;  %v316_v61 = vsub.f32 1.5, %v315_v58  ;;  %vm388_vm10 = vweird.f32 %v371_v56 }
  0x9d   : > { %506 = vrsqrt.f32 %v370_v57  ;;  %v503_v59 = vpop.eup %502  ;;  %vm378_vm12 = vweird.f32 %v370_v57 }
  0x9e   : > { %v323_v60 = vmul.f32 %v503_v59, %v311_v50  ;;  %v317_v6 = vmul.f32 %v501_v46, %v316_v61  ;;  %vm329_vm3 = vweird.f32 %v503_v59 }
  0x9f   : > { %vm330_vm7 = vmor %vm328_vm6, %vm329_vm3 }
  0xa0   : > { %v324_v62 = vmul.f32 %v503_v59, %v323_v60  ;;  %v321_v14 = vsel %vm320_vm5, %v501_v46, %v317_v6 }
  0xa1   : > { %v334_v22 = vmul.f32 %v332_v17, %v321_v14 }
  0xa2   : > { %v505_v63 = vpop.eup %504  ;;  %v325_v3 = vmul.f32 0.5, %v324_v62 }
  0xa3   : > { %v507_v1 = vpop.eup %506  ;;  %v383_v4 = vmul.f32 %v505_v63, %v371_v56  ;;  %vm389_vm8 = vweird.f32 %v505_v63  ;;  %v336_v32 = vmul.f32 %v334_v22, %v274_v5 }
  0xa4   : > { %v373_v8 = vmul.f32 %v507_v1, %v370_v57  ;;  %v326_v9 = vsub.f32 1.5, %v325_v3  ;;  %vm379_vm9 = vweird.f32 %v507_v1  ;;  %vm390_vm11 = vmor %vm388_vm10, %vm389_vm8 }
  0xa5   : > { %v384_v10 = vmul.f32 %v505_v63, %v383_v4  ;;  %vm380_vm13 = vmor %vm378_vm12, %vm379_vm9  ;;  %v338_v41 = vadd.f32 %v336_v32, %v276_v35 }
  0xa6   : > { %v374_v11 = vmul.f32 %v507_v1, %v373_v8  ;;  %v327_v12 = vmul.f32 %v503_v59, %v326_v9 }
  0xa7   : > { %v385_v13 = vmul.f32 0.5, %v384_v10 }
  0xa8   : > { %v375_v16 = vmul.f32 0.5, %v374_v11  ;;  %v331_v18 = vsel %vm330_vm7, %v503_v59, %v327_v12 }
  0xa9   : > { %v386_v19 = vsub.f32 1.5, %v385_v13  ;;  %v335_v20 = vmul.f32 %v333_v15, %v331_v18 }
  0xaa   : > { %v376_v21 = vsub.f32 1.5, %v375_v16 }
  0xab   : > { %v387_v24 = vmul.f32 %v505_v63, %v386_v19  ;;  %v337_v29 = vmul.f32 %v335_v20, %v275_v23 }
  0xac   : > { %v377_v25 = vmul.f32 %v507_v1, %v376_v21 }
  0xad   : > { %v391_v28 = vsel %vm390_vm11, %v505_v63, %v387_v24  ;;  %v339_v39 = vadd.f32 %v337_v29, %v277_v33 }
  0xae   : > { %v395_v30 = vmul.f32 %v393_v2, %v391_v28  ;;  %v381_v7 = vsel %vm380_vm13, %v507_v1, %v377_v25 }
  0xaf   : > { %v394_v34 = vmul.f32 %v392_v26, %v381_v7 }
  0xb0   : > { %v397_v36 = vmul.f32 %v395_v30, %v343_v27 }
  0xb1   : > { %v396_v38 = vmul.f32 %v394_v34, %v342_v31 }
  0xb2   : > { %v399_v40 = vadd.f32 %v397_v36, %v345_v0 }
  0xb3   : > { %v398_v42 = vadd.f32 %v396_v38, %v344_v37 }
  0xb4   : > { %v401_v43 = vadd.f32 %v399_v40, %v339_v39 }
  0xb5   : > { %v400_v44 = vadd.f32 %v398_v42, %v338_v41 }
  0xb6   : > { %v403_v45 = vmax.f32 %v401_v43, 0.0 }
  0xb7   : > { %v402_v46 = vmax.f32 %v400_v44, 0.0 }
  0xb8   : > { %405 = vst.msk [vmem:[%s271_s26 + $0x8] sm:$0xff] %vm278_vm0, %v403_v45 }
  0xb9   : > { %404 = vst.msk [vmem:[%s271_s26] sm:$0xff] %vm278_vm0, %v402_v46 }
  0xba PF: > { %s16_s21 = sadd.s32 1, %s514_s21  }
  0xbb   : > { %p13_p4 = scmp.ge.s32.totalorder %s16_s21, 4  }
  0xbd   :  { %15 = sbr.rel (!%p13_p4) target bundleno = 1 (0x1), region = 77 }

// kernel: _lambda_.29
= control target key start
LH: loop header
LB: loop body
LE: loop exit
PB: predicated region body
PF: predicated region fallthrough
CT: control target
= control target key end

     0   :  { %s355_s12 = smov 0   ;;  %s403_s0 = inlined_call_operand.vmem [shape: f32[2,16,8], index: 0, kind: input, shape index: {}]   ;;  %s404_s1 = inlined_call_operand.vmem [shape: f32[16,8], index: 1, kind: input, shape index: {}]   ;;  %s405_s2 = inlined_call_operand.vmem [shape: f32[16,8], index: 2, kind: input, shape index: {}]   ;;  %s406_s3 = inlined_call_operand.vmem [shape: f32[2,16,8], index: 3, kind: output, shape index: {}]  }
   0x1 LB: > { %s298_s13 = sadd.s32 4294967295, %s332_s12   ;;  %p302_p0 = scmp.ge.s32.totalorder %s332_s12, 1  ;;  %s332_s12 = sphi %s355_s12, %s13_s12  }
   0x2   : > { %p137_p1 = scmp.lt.s32.totalorder %s332_s12, 3 }
   0x4   : > { %p138_p2 = pnand %p302_p0, %p137_p1 }
   0x5   : > { %p161_p3 = scmp.lt.s32.totalorder (!%p138_p2), %s298_s13, 1 }
   0x6   : > { %141 = sbr.rel (%p138_p2) target bundleno = 177 (0xb1), region = 32 }
   0xb   : > { %s408_s13 = smov (!%p161_p3, %s298_s13), 1  ;;  %vm177_vm0 = vcmask 64512   ;;  %v334_v8 = vmov 8.0   ;;  %v173_v40 = vld [vmem:[%s404_s1] sm:$0xff]  ;;  %v174_v52 = vld [vmem:[%s404_s1 + $0x8] sm:$0xff] }
   0xc   : > { %s309_s14 = sshll.u32 %s408_s13, 4  ;;  %320 = vrcp.f32 %v334_v8  ;;  %v175_v44 = vld [vmem:[%s405_s2] sm:$0xff]  ;;  %v176_v55 = vld [vmem:[%s405_s2 + $0x8] sm:$0xff] }
   0xd   : > { %s165_s17 = scalar_lea.vmem %s403_s0, %s309_s14  ;;  %s170_s24 = scalar_lea.vmem %s406_s3, %s309_s14 }
   0xe   : > { %v171_v0 = vld [vmem:[%s165_s17] sm:$0xff]  ;;  %v372_v3 = vld [vmem:[%s165_s17 + $0x8] sm:$0xff] }
   0xf   : > { %v178_v1 = vsel %vm177_vm0, %v171_v0, 0.0  ;;  %v193_v2 = vmul.f32 %v171_v0, %v171_v0  ;;  %v194_v5 = vmul.f32 %v372_v3, %v372_v3  ;;  %v181_v6 = vsel %vm177_vm0, %v372_v3, 0.0 }
  0x10   : > { %179 = vadd.xlane.f32.xlu0 %v178_v1 }
  0x11   : > { %v195_v4 = vsel %vm177_vm0, %v193_v2, 0.0  ;;  %v198_v7 = vsel %vm177_vm0, %v194_v5, 0.0 }
  0x12   : > { %196 = vadd.xlane.f32.xlu1 %v195_v4  ;;  %v321_v9 = vpop.eup %320 }
  0x13   : > { %v185_v10 = vmul.f32 8.0, %v321_v9  ;;  %vm189_vm1 = vweird.f32 %v321_v9 }
  0x15   : > { %v186_v11 = vsub.f32 1.0, %v185_v10 }
  0x17   : > { %v187_v12 = vmul.f32 %v321_v9, %v186_v11 }
  0x18   : > { %182 = vadd.xlane.f32.xlu0 %v181_v6 }
  0x19   : > { %v188_v13 = vadd.f32 %v321_v9, %v187_v12 }
  0x1a   : > { %199 = vadd.xlane.f32.xlu1 %v198_v7 }
  0x1b   : > { %v190_v14 = vsel %vm189_vm1, %v321_v9, %v188_v13 }
  0x83   : > { %v180_v15 = vpop.xlane.xlu0 %179 }
  0x84   : > { %v191_v16 = vmul.f32 %v190_v14, %v180_v15 }
  0x85   : > { %v197_v17 = vpop.xlane.xlu1 %196 }
  0x86   : > { %v203_v18 = vmul.f32 %v191_v16, %v191_v16  ;;  %v201_v19 = vmul.f32 %v197_v17, %v190_v14  ;;  %v231_v38 = vsub.f32 %v171_v0, %v191_v16 }
  0x88   : > { %v205_v20 = vsub.f32 %v201_v19, %v203_v18 }
  0x8a   : > { %v207_v21 = vmax.f32 %v205_v20, 0.0 }
  0x8b   : > { %v183_v22 = vpop.xlane.xlu0 %182 }
  0x8c   : > { %v209_v23 = vadd.f32 1e-05, %v207_v21  ;;  %v192_v24 = vmul.f32 %v190_v14, %v183_v22 }
  0x8d   : > { %v200_v25 = vpop.xlane.xlu1 %199 }
  0x8e   : > { %322 = vrsqrt.f32 %v209_v23  ;;  %v204_v26 = vmul.f32 %v192_v24, %v192_v24  ;;  %v202_v27 = vmul.f32 %v200_v25, %v190_v14  ;;  %vm217_vm3 = vweird.f32 %v209_v23 }
  0x8f   : > { %v232_v51 = vsub.f32 %v372_v3, %v192_v24 }
  0x90   : > { %v206_v28 = vsub.f32 %v202_v27, %v204_v26 }
  0x92   : > { %v208_v29 = vmax.f32 %v206_v28, 0.0 }
  0x94   : > { %v323_v30 = vpop.eup %322  ;;  %v210_v32 = vadd.f32 1e-05, %v208_v29 }
  0x95   : > { %v212_v31 = vmul.f32 %v323_v30, %v209_v23  ;;  %vm218_vm2 = vweird.f32 %v323_v30 }
  0x96   : > { %324 = vrsqrt.f32 %v210_v32  ;;  %vm219_vm4 = vmor %vm217_vm3, %vm218_vm2  ;;  %vm227_vm6 = vweird.f32 %v210_v32 }
  0x97   : > { %v213_v33 = vmul.f32 %v323_v30, %v212_v31 }
  0x99   : > { %v214_v34 = vmul.f32 0.5, %v213_v33 }
  0x9b   : > { %v215_v35 = vsub.f32 1.5, %v214_v34 }
  0x9c   : > { %v325_v36 = vpop.eup %324 }
  0x9d   : > { %v216_v37 = vmul.f32 %v323_v30, %v215_v35  ;;  %v222_v39 = vmul.f32 %v325_v36, %v210_v32  ;;  %vm228_vm5 = vweird.f32 %v325_v36 }
  0x9e   : > { %vm229_vm7 = vmor %vm227_vm6, %vm228_vm5 }
  0x9f   : > { %v220_v41 = vsel %vm219_vm4, %v323_v30, %v216_v37  ;;  %v223_v43 = vmul.f32 %v325_v36, %v222_v39 }
  0xa0   : > { %v233_v42 = vmul.f32 %v231_v38, %v220_v41 }
  0xa1   : > { %v224_v46 = vmul.f32 0.5, %v223_v43 }
  0xa2   : > { %v235_v45 = vmul.f32 %v233_v42, %v173_v40 }
  0xa3   : > { %v225_v48 = vsub.f32 1.5, %v224_v46 }
  0xa4   : > { %v237_v47 = vadd.f32 %v235_v45, %v175_v44 }
  0xa5   : > { %v226_v50 = vmul.f32 %v325_v36, %v225_v48 }
  0xa6   : > { %v239_v49 = vmax.f32 %v237_v47, 0.0 }
  0xa7   : > { %v230_v53 = vsel %vm229_vm7, %v325_v36, %v226_v50 }
  0xa8   : > { %241 = vst.msk [vmem:[%s170_s24] sm:$0xff] %vm177_vm0, %v239_v49  ;;  %v234_v54 = vmul.f32 %v232_v51, %v230_v53 }
  0xaa   : > { %v236_v56 = vmul.f32 %v234_v54, %v174_v52 }
  0xac   : > { %v238_v57 = vadd.f32 %v236_v56, %v176_v55 }
  0xae   : > { %v240_v58 = vmax.f32 %v238_v57, 0.0 }
  0xb0   : > { %242 = vst.msk [vmem:[%s170_s24 + $0x8] sm:$0xff] %vm177_vm0, %v240_v58 }
  0xb1 PF: > { %s13_s12 = sadd.s32 1, %s332_s12  }
  0xb2   : > { %p10_p4 = scmp.ge.s32.totalorder %s13_s12, 4  }
  0xb4   :  { %12 = sbr.rel (!%p10_p4) target bundleno = 1 (0x1), region = 62 }

// kernel: _lambda_.28
= control target key start
LH: loop header
LB: loop body
LE: loop exit
PB: predicated region body
PF: predicated region fallthrough
CT: control target
= control target key end

     0   :  { %s1509_s12 = smov 0   ;;  %s1511_s13 = smov 0   ;;  %s1716_s0 = inlined_call_operand.vmem [shape: bf16[32,864], index: 0, kind: input, shape index: {}]   ;;  %s1717_s1 = inlined_call_operand.vmem [shape: bf16[2,864,4], index: 1, kind: input, shape index: {}]   ;;  %s1718_s2 = inlined_call_operand.vmem [shape: f32[32,1], index: 2, kind: input, shape index: {}]   ;;  %s1719_s3 = inlined_call_operand.vmem [shape: f32[2,32,4], index: 3, kind: output, shape index: {}]  }
   0x1   :  { %s1513_s14 = smov 0  }
   0x2 LB: > { %s32_s15 = sadd.s32 1, %s1481_s13  ;;  %p1077_p0 = scmp.ge.s32.totalorder %s1485_s14, 1  ;;  %s1485_s14 = sphi %s1513_s14, %s13_s14   ;;  %s1481_s13 = sphi %s1511_s13, %s1721_s13   ;;  %s1477_s12 = sphi %s1509_s12, %s1720_s12  }
   0x3   : > { %p34_p1 = scmp.ge.s32.totalorder %s32_s15, 2  ;;  %p181_p2 = scmp.lt.s32.totalorder %s1485_s14, 3 }
   0x5   : > { %s1723_s15 = smov (%p34_p1, %s32_s15), 0  ;;  %p182_p3 = pnand %p1077_p0, %p181_p2 }
   0x6   : > { %p227_p4 = scmp.lt.s32.totalorder (!%p182_p3), %s1477_s12, 1 }
   0x7   : > { %185 = sbr.rel (%p182_p3) target bundleno = 253 (0xfd), region = 32 }
   0xc   : > { %s1725_s12 = smov (!%p227_p4, %s1477_s12), 1  ;;  %v1083_v28 = vld [vmem:[%s1716_s0] sm:$0xf]  ;;  %v1361_v29 = vld [vmem:[%s1716_s0 + $0x18] sm:$0xf0]  ;;  %vm779_vm0 = vcmask 785408  }
   0xd   : > { %s1434_s16 = smul.u32 432, %s1725_s12  ;;  %v1358_v30 = vld [vmem:[%s1716_s0 + $0x4] sm:$0xf]  ;;  %v1085_v35 = vld [vmem:[%s1716_s0 + $0x1c] sm:$0xf0]  ;;  %v1084_v42 = vor.u32 %v1361_v29, %v1083_v28  ;;  %vm252_vm1 = vcmask 31744  }
   0xe   : > { %v1091_v36 = vld [vmem:[%s1716_s0 + $0x8] sm:$0xf]  ;;  %v1362_v37 = vld [vmem:[%s1716_s0 + $0x20] sm:$0xf0]  ;;  %v1359_v38 = vld [vmem:[%s1716_s0 + $0xc] sm:$0xf]  ;;  %v1088_v43 = vor.u32 %v1358_v30, %v1085_v35 }
   0xf   : > { %s1533_s19 = scalar_lea.vmem %s1717_s1, %s1434_s16  ;;  %v1093_v39 = vld [vmem:[%s1716_s0 + $0x24] sm:$0xf0]  ;;  %v1092_v44 = vor.u32 %v1362_v37, %v1091_v36  ;;  %v1111_v56 = vld [vmem:[%s1716_s0 + $0x38] sm:$0xf]  ;;  %v1368_v57 = vld [vmem:[%s1716_s0 + $0x50] sm:$0xf0] }
  0x10   : > { %v1379_v0 = vld [vmem:[%s1533_s19 + $0x38] sm:$0xff]  ;;  %v1378_v4 = vld [vmem:[%s1533_s19 + $0x30] sm:$0xff]  ;;  %v1377_v8 = vld [vmem:[%s1533_s19 + $0x28] sm:$0xff]  ;;  %v1096_v45 = vor.u32 %v1359_v38, %v1093_v39  ;;  %v1488_v39 = vmov 0.0   ;;  %s1357_s16 = sshll.u32 %s1725_s12, 5 }
  0x11   : > { %v1387_v1 = vld [vmem:[%s1533_s19 + $0x78] sm:$0xff]  ;;  %786 = vmatpush.bf16.msra.mxu0 %v1379_v0  ;;  %v1386_v5 = vld [vmem:[%s1533_s19 + $0x70] sm:$0xff]  ;;  %v1385_v9 = vld [vmem:[%s1533_s19 + $0x68] sm:$0xff]  ;;  %253 = vst.msk [vmem:[#allocation2] sm:$0xff] %vm252_vm1, %v1488_v39  ;;  %s1694_s20 = scalar_lea.vmem %s1719_s3, %s1357_s16 }
  0x12   : > { %v1395_v2 = vld [vmem:[%s1533_s19 + $0xb8] sm:$0xff]  ;;  %805 = vmatpush.bf16.msra.mxu1 %v1387_v1  ;;  %v1394_v6 = vld [vmem:[%s1533_s19 + $0xb0] sm:$0xff]  ;;  %v1393_v10 = vld [vmem:[%s1533_s19 + $0xa8] sm:$0xff]  ;;  %254 = vst.msk [vmem:[#allocation2 + $0x8] sm:$0xff] %vm252_vm1, %v1488_v39 }
  0x13   : > { %v1403_v3 = vld [vmem:[%s1533_s19 + $0xf8] sm:$0xff]  ;;  %824 = vmatpush.bf16.msra.mxu2 %v1395_v2  ;;  %v1402_v7 = vld [vmem:[%s1533_s19 + $0xf0] sm:$0xff]  ;;  %v1401_v11 = vld [vmem:[%s1533_s19 + $0xe8] sm:$0xff]  ;;  %v1112_v2 = vor.u32 %v1368_v57, %v1111_v56  ;;  %255 = vst.msk [vmem:[#allocation2 + $0x10] sm:$0xff] %vm252_vm1, %v1488_v39 }
  0x14   : > { %843 = vmatpush.bf16.msra.mxu3 %v1403_v3  ;;  %v1376_v12 = vld [vmem:[%s1533_s19 + $0x20] sm:$0xff]  ;;  %v1375_v16 = vld [vmem:[%s1533_s19 + $0x18] sm:$0xff]  ;;  %v1374_v20 = vld [vmem:[%s1533_s19 + $0x10] sm:$0xff]  ;;  %256 = vst.msk [vmem:[#allocation2 + $0x18] sm:$0xff] %vm252_vm1, %v1488_v39 }
  0x15   : > { %787 = vmatpush.bf16.msra.mxu0 %v1378_v4  ;;  %v1384_v13 = vld [vmem:[%s1533_s19 + $0x60] sm:$0xff]  ;;  %v1383_v17 = vld [vmem:[%s1533_s19 + $0x58] sm:$0xff]  ;;  %v1382_v21 = vld [vmem:[%s1533_s19 + $0x50] sm:$0xff] }
  0x16   : > { %806 = vmatpush.bf16.msra.mxu1 %v1386_v5  ;;  %v1392_v14 = vld [vmem:[%s1533_s19 + $0xa0] sm:$0xff]  ;;  %v1391_v18 = vld [vmem:[%s1533_s19 + $0x98] sm:$0xff]  ;;  %v1390_v22 = vld [vmem:[%s1533_s19 + $0x90] sm:$0xff] }
  0x17   : > { %825 = vmatpush.bf16.msra.mxu2 %v1394_v6  ;;  %v1400_v15 = vld [vmem:[%s1533_s19 + $0xe0] sm:$0xff]  ;;  %v1399_v19 = vld [vmem:[%s1533_s19 + $0xd8] sm:$0xff]  ;;  %v1398_v23 = vld [vmem:[%s1533_s19 + $0xd0] sm:$0xff] }
  0x18   : > { %844 = vmatpush.bf16.msra.mxu3 %v1402_v7  ;;  %v1373_v24 = vld [vmem:[%s1533_s19 + $0x8] sm:$0xff]  ;;  %v1372_v31 = vld [vmem:[%s1533_s19] sm:$0xff]  ;;  %v1411_v41 = vld [vmem:[%s1533_s19 + $0x138] sm:$0xff] }
  0x19   : > { %788 = vmatpush.bf16.msra.mxu0 %v1377_v8  ;;  %v1381_v25 = vld [vmem:[%s1533_s19 + $0x48] sm:$0xff]  ;;  %v1380_v32 = vld [vmem:[%s1533_s19 + $0x40] sm:$0xff]  ;;  %v1419_v46 = vld [vmem:[%s1533_s19 + $0x178] sm:$0xff] }
  0x1a   : > { %807 = vmatpush.bf16.msra.mxu1 %v1385_v9  ;;  %v1389_v26 = vld [vmem:[%s1533_s19 + $0x88] sm:$0xff]  ;;  %v1388_v33 = vld [vmem:[%s1533_s19 + $0x80] sm:$0xff]  ;;  %v1410_v47 = vld [vmem:[%s1533_s19 + $0x130] sm:$0xff] }
  0x1b   : > { %826 = vmatpush.bf16.msra.mxu2 %v1393_v10  ;;  %v1397_v27 = vld [vmem:[%s1533_s19 + $0xc8] sm:$0xff]  ;;  %v1396_v34 = vld [vmem:[%s1533_s19 + $0xc0] sm:$0xff]  ;;  %v1418_v49 = vld [vmem:[%s1533_s19 + $0x170] sm:$0xff] }
  0x1c   : > { %845 = vmatpush.bf16.msra.mxu3 %v1401_v11  ;;  %v1425_v40 = vld [vmem:[%s1533_s19 + $0x1a8] sm:$0xff]  ;;  %v1424_v48 = vld [vmem:[%s1533_s19 + $0x1a0] sm:$0xff]  ;;  %v1423_v51 = vld [vmem:[%s1533_s19 + $0x198] sm:$0xff] }
  0x1d   : > { %789 = vmatpush.bf16.msra.mxu0 %v1376_v12  ;;  %v1409_v50 = vld [vmem:[%s1533_s19 + $0x128] sm:$0xff]  ;;  %v1408_v53 = vld [vmem:[%s1533_s19 + $0x120] sm:$0xff]  ;;  %v1422_v54 = vld [vmem:[%s1533_s19 + $0x190] sm:$0xff] }
  0x1e   : > { %808 = vmatpush.bf16.msra.mxu1 %v1384_v13  ;;  %v1417_v52 = vld [vmem:[%s1533_s19 + $0x168] sm:$0xff]  ;;  %v1416_v55 = vld [vmem:[%s1533_s19 + $0x160] sm:$0xff]  ;;  %v1365_v58 = vld [vmem:[%s1716_s0 + $0x3c] sm:$0xf]  ;;  %v1487_v13 = vmov 0  }
  0x1f   : > { %827 = vmatpush.bf16.msra.mxu2 %v1392_v14  ;;  %v1113_v59 = vld [vmem:[%s1716_s0 + $0x54] sm:$0xf0]  ;;  %v1119_v60 = vld [vmem:[%s1716_s0 + $0x40] sm:$0xf]  ;;  %v1369_v61 = vld [vmem:[%s1716_s0 + $0x58] sm:$0xf0]  ;;  %1461 = vset.pattern.permute.xlu0 %v1487_v13 }
  0x20   : > { %846 = vmatpush.bf16.msra.mxu3 %v1400_v15  ;;  %v1366_v62 = vld [vmem:[%s1716_s0 + $0x44] sm:$0xf]  ;;  %v1121_v63 = vld [vmem:[%s1716_s0 + $0x5c] sm:$0xf0]  ;;  %v1407_v0 = vld [vmem:[%s1533_s19 + $0x118] sm:$0xff]  ;;  %v1116_v3 = vor.u32 %v1365_v58, %v1113_v59  ;;  %v1120_v4 = vor.u32 %v1369_v61, %v1119_v60  ;;  %1462 = vset.pattern.permute.xlu1 %v1487_v13 }
  0x21   : > { %790 = vmatpush.bf16.msra.mxu0 %v1375_v16  ;;  %v1421_v1 = vld [vmem:[%s1533_s19 + $0x188] sm:$0xff]  ;;  %v1124_v5 = vor.u32 %v1366_v62, %v1121_v63  ;;  %v1415_v6 = vld [vmem:[%s1533_s19 + $0x158] sm:$0xff]  ;;  %v1406_v7 = vld [vmem:[%s1533_s19 + $0x110] sm:$0xff] }
  0x22   : > { %809 = vmatpush.bf16.msra.mxu1 %v1383_v17  ;;  %v1420_v8 = vld [vmem:[%s1533_s19 + $0x180] sm:$0xff]  ;;  %v1414_v9 = vld [vmem:[%s1533_s19 + $0x150] sm:$0xff]  ;;  %v1405_v12 = vld [vmem:[%s1533_s19 + $0x108] sm:$0xff] }
  0x23   : > { %828 = vmatpush.bf16.msra.mxu2 %v1391_v18  ;;  %v935_v10 = vld [vmem:[%s1718_s2] sm:$0xff]  ;;  %v937_v11 = vld [vmem:[%s1718_s2 + $0x10] sm:$0xff]  ;;  %v1413_v14 = vld [vmem:[%s1533_s19 + $0x148] sm:$0xff] }
  0x24   : > { %847 = vmatpush.bf16.msra.mxu3 %v1399_v19  ;;  %941 = vperm.xlu0 %1461, %v935_v10   ;;  %v1404_v15 = vld [vmem:[%s1533_s19 + $0x100] sm:$0xff]  ;;  %v1099_v17 = vld [vmem:[%s1716_s0 + $0x10] sm:$0xf]  ;;  %v1363_v18 = vld [vmem:[%s1716_s0 + $0x28] sm:$0xf0] }
  0x25   : > { %791 = vmatpush.bf16.msra.mxu0 %v1374_v20  ;;  %951 = vperm.xlu1 %1462, %v937_v11   ;;  %v1412_v16 = vld [vmem:[%s1533_s19 + $0x140] sm:$0xff]  ;;  %v1127_v19 = vld [vmem:[%s1716_s0 + $0x48] sm:$0xf] }
  0x26   : > { %810 = vmatpush.bf16.msra.mxu1 %v1382_v21  ;;  %v1370_v20 = vld [vmem:[%s1716_s0 + $0x60] sm:$0xf0]  ;;  %v1360_v21 = vld [vmem:[%s1716_s0 + $0x14] sm:$0xf] }
  0x27   : > { %829 = vmatpush.bf16.msra.mxu2 %v1390_v22  ;;  %v1101_v22 = vld [vmem:[%s1716_s0 + $0x2c] sm:$0xf0]  ;;  %v1128_v28 = vor.u32 %v1370_v20, %v1127_v19  ;;  %v257_v63 = vld [vmem:[#allocation2] sm:$0xff] }
  0x28   : > { %848 = vmatpush.bf16.msra.mxu3 %v1398_v23  ;;  %v936_v23 = vld [vmem:[%s1718_s2 + $0x8] sm:$0xff]  ;;  %v1104_v29 = vor.u32 %v1360_v21, %v1101_v22 }
  0x29   : > { %792 = vmatpush.bf16.msra.mxu0 %v1373_v24  ;;  %v938_v24 = vld [vmem:[%s1718_s2 + $0x18] sm:$0xff] }
  0x2a   : > { %811 = vmatpush.bf16.msra.mxu1 %v1381_v25  ;;  %v1107_v25 = vld [vmem:[%s1716_s0 + $0x18] sm:$0xf] }
  0x2b   : > { %830 = vmatpush.bf16.msra.mxu2 %v1389_v26  ;;  %v1364_v26 = vld [vmem:[%s1716_s0 + $0x30] sm:$0xf0] }
  0x2c   : > { %849 = vmatpush.bf16.msra.mxu3 %v1397_v27  ;;  %v1100_v27 = vor.u32 %v1363_v18, %v1099_v17  ;;  %946 = vperm.xlu0 %1461, %v936_v23   ;;  %v1108_v30 = vor.u32 %v1364_v26, %v1107_v25 }
  0x2d   : > { %793 = vmatpush.bf16.msra.mxu0 %v1372_v31  ;;  %956 = vperm.xlu1 %1462, %v938_v24   ;;  %v1367_v31 = vld [vmem:[%s1716_s0 + $0x4c] sm:$0xf]  ;;  %v259_v24 = vld [vmem:[#allocation2 + $0x10] sm:$0xff] }
  0x2e   : > { %812 = vmatpush.bf16.msra.mxu1 %v1380_v32  ;;  %v1129_v32 = vld [vmem:[%s1716_s0 + $0x64] sm:$0xf0] }
  0x2f   : > { %831 = vmatpush.bf16.msra.mxu2 %v1388_v33  ;;  %v1135_v33 = vld [vmem:[%s1716_s0 + $0x50] sm:$0xf]  ;;  %v1132_v35 = vor.u32 %v1367_v31, %v1129_v32 }
  0x30   : > { %850 = vmatpush.bf16.msra.mxu3 %v1396_v34  ;;  %794 = vmatmul.bf16.vlgmr.msra.gmra.mxu0 %v1084_v42  ;;  %v1371_v34 = vld [vmem:[%s1716_s0 + $0x68] sm:$0xf0] }
  0x31   : > { %862 = vmatpush.bf16.msrb.mxu0 %v1411_v41  ;;  %813 = vmatmul.bf16.vlgmr.msra.gmra.mxu1 %v1088_v43  ;;  %v1136_v36 = vor.u32 %v1371_v34, %v1135_v33 }
  0x32   : > { %832 = vmatmul.bf16.vlgmr.msra.gmra.mxu2 %v1092_v44  ;;  %881 = vmatpush.bf16.msrb.mxu1 %v1419_v46 }
  0x33   : > { %902 = vmatpush.bf16.msrb.mxu2 %v1425_v40  ;;  %851 = vmatmul.bf16.vlgmr.msra.gmra.mxu3 %v1096_v45 }
  0x34   : > { %1426 = vmatpush.bf16.msrb.mxu3 %v1411_v41 }
  0x35   : > { %863 = vmatpush.bf16.msrb.mxu0 %v1410_v47 }
  0x36   : > { %882 = vmatpush.bf16.msrb.mxu1 %v1418_v49 }
  0x37   : > { %903 = vmatpush.bf16.msrb.mxu2 %v1424_v48 }
  0x38   : > { %1427 = vmatpush.bf16.msrb.mxu3 %v1410_v47 }
  0x39   : > { %864 = vmatpush.bf16.msrb.mxu0 %v1409_v50 }
  0x3a   : > { %883 = vmatpush.bf16.msrb.mxu1 %v1417_v52 }
  0x3b   : > { %904 = vmatpush.bf16.msrb.mxu2 %v1423_v51 }
  0x3c   : > { %1428 = vmatpush.bf16.msrb.mxu3 %v1409_v50 }
  0x3d   : > { %865 = vmatpush.bf16.msrb.mxu0 %v1408_v53 }
  0x3e   : > { %884 = vmatpush.bf16.msrb.mxu1 %v1416_v55 }
  0x3f   : > { %905 = vmatpush.bf16.msrb.mxu2 %v1422_v54 }
  0x40   : > { %1429 = vmatpush.bf16.msrb.mxu3 %v1408_v53  ;;  %799 = vmatmul.bf16.gmra.mxu0 %v1112_v2 }
  0x41   : > { %866 = vmatpush.bf16.msrb.mxu0 %v1407_v0  ;;  %818 = vmatmul.bf16.gmra.mxu1 %v1116_v3 }
  0x42   : > { %837 = vmatmul.bf16.gmra.mxu2 %v1120_v4  ;;  %885 = vmatpush.bf16.msrb.mxu1 %v1415_v6 }
  0x43   : > { %906 = vmatpush.bf16.msrb.mxu2 %v1421_v1  ;;  %856 = vmatmul.bf16.gmra.mxu3 %v1124_v5 }
  0x44   : > { %1430 = vmatpush.bf16.msrb.mxu3 %v1407_v0 }
  0x45   : > { %867 = vmatpush.bf16.msrb.mxu0 %v1406_v7 }
  0x46   : > { %886 = vmatpush.bf16.msrb.mxu1 %v1414_v9 }
  0x47   : > { %907 = vmatpush.bf16.msrb.mxu2 %v1420_v8 }
  0x48   : > { %1431 = vmatpush.bf16.msrb.mxu3 %v1406_v7 }
  0x49   : > { %868 = vmatpush.bf16.msrb.mxu0 %v1405_v12 }
  0x4a   : > { %887 = vmatpush.bf16.msrb.mxu1 %v1413_v14 }
  0x4c   : > { %1432 = vmatpush.bf16.msrb.mxu3 %v1405_v12  ;;  %v258_v12 = vld [vmem:[#allocation2 + $0x8] sm:$0xff] }
  0x4d   : > { %869 = vmatpush.bf16.msrb.mxu0 %v1404_v15 }
  0x4e   : > { %888 = vmatpush.bf16.msrb.mxu1 %v1412_v16 }
  0x50   : > { %1433 = vmatpush.bf16.msrb.mxu3 %v1404_v15  ;;  %870 = vmatmul.bf16.vlgmr.msrb.gmra.mxu0 %v1100_v27 }
  0x51   : > { %889 = vmatmul.bf16.vlgmr.msrb.gmra.mxu1 %v1104_v29 }
  0x52   : > { %1353 = vmatmul.msk.bf16.vlgmr.msrb.gmra.mxu2 %vm779_vm0, %v1108_v30 }
  0x53   : > { %875 = vmatmul.bf16.vlgmr.msrb.gmra.mxu3 %v1128_v28 }
  0x61   : > { %894 = vmatmul.bf16.gmra.mxu1 %v1132_v35 }
  0x62   : > { %1354 = vmatmul.msk.bf16.gmra.mxu2 %vm779_vm0, %v1136_v36  ;;  %v260_v36 = vld [vmem:[#allocation2 + $0x18] sm:$0xff] }
  0x96   : > { %v942_v10 = vpop.permute.xlu0 %941 }
  0x97   : > { %v952_v39 = vpop.permute.xlu1 %951 }
  0x9e   : > { %v947_v28 = vpop.permute.xlu0 %946 }
  0xad   : > { %v795_v37 = vpop.f32.mrf.mxu0 }
  0xae   : > { %v814_v38 = vpop.f32.mrf.mxu1 }
  0xaf   : > { %v815_v51 = vadd.f32 %v814_v38, %v795_v37 }
  0xb5   : > { %v833_v40 = vpop.f32.mrf.mxu2  ;;  %v797_v42 = vpop.f32.mrf.mxu0 }
  0xb6   : > { %v852_v41 = vpop.f32.mrf.mxu3  ;;  %v816_v43 = vpop.f32.mrf.mxu1  ;;  %v834_v53 = vadd.f32 %v833_v40, %v815_v51 }
  0xb7   : > { %v817_v58 = vadd.f32 %v816_v43, %v797_v42  ;;  %v957_v43 = vpop.permute.xlu1 %956 }
  0xb8   : > { %v853_v56 = vadd.f32 %v852_v41, %v834_v53 }
  0xbd   : > { %v835_v44 = vpop.f32.mrf.mxu2  ;;  %v800_v45 = vpop.f32.mrf.mxu0 }
  0xbe   : > { %v819_v46 = vpop.f32.mrf.mxu1  ;;  %v854_v47 = vpop.f32.mrf.mxu3  ;;  %v836_v60 = vadd.f32 %v835_v44, %v817_v58 }
  0xbf   : > { %v820_v5 = vadd.f32 %v819_v46, %v800_v45 }
  0xc0   : > { %v855_v2 = vadd.f32 %v854_v47, %v836_v60 }
  0xc5   : > { %v838_v48 = vpop.f32.mrf.mxu2  ;;  %v802_v49 = vpop.f32.mrf.mxu0 }
  0xc6   : > { %v821_v50 = vpop.f32.mrf.mxu1  ;;  %v857_v52 = vpop.f32.mrf.mxu3  ;;  %v839_v8 = vadd.f32 %v838_v48, %v820_v5 }
  0xc7   : > { %v822_v19 = vadd.f32 %v821_v50, %v802_v49 }
  0xc8   : > { %v858_v16 = vadd.f32 %v857_v52, %v839_v8 }
  0xcd   : > { %v840_v54 = vpop.f32.mrf.mxu2  ;;  %v871_v55 = vpop.f32.mrf.mxu0 }
  0xce   : > { %v890_v57 = vpop.f32.mrf.mxu1  ;;  %v872_v59 = vadd.f32 %v871_v55, %v853_v56  ;;  %v859_v61 = vpop.f32.mrf.mxu3  ;;  %v841_v22 = vadd.f32 %v840_v54, %v822_v19 }
  0xd0   : > { %v891_v62 = vadd.f32 %v890_v57, %v872_v59  ;;  %v860_v29 = vadd.f32 %v859_v61, %v841_v22 }
  0xd5   : > { %v909_v0 = vpop.f32.mrf.mxu2  ;;  %v873_v1 = vpop.f32.mrf.mxu0 }
  0xd6   : > { %v910_v3 = vadd.f32 %v909_v0, %v891_v62  ;;  %v892_v4 = vpop.f32.mrf.mxu1  ;;  %v874_v7 = vadd.f32 %v873_v1, %v855_v2  ;;  %v876_v11 = vpop.f32.mrf.mxu3 }
  0xd7   : > { %v877_v20 = vadd.f32 %v876_v11, %v858_v16 }
  0xd8   : > { %v919_v6 = vadd.f32 %v910_v3, %v257_v63  ;;  %v893_v9 = vadd.f32 %v892_v4, %v874_v7 }
  0xda   : > { %924 = vst.msk [vmem:[#allocation2] sm:$0xff] %vm252_vm1, %v919_v6 }
  0xdd   : > { %v911_v13 = vpop.f32.mrf.mxu2 }
  0xde   : > { %v912_v14 = vadd.f32 %v911_v13, %v893_v9  ;;  %v895_v15 = vpop.f32.mrf.mxu1  ;;  %v878_v27 = vpop.f32.mrf.mxu3 }
  0xdf   : > { %v896_v23 = vadd.f32 %v895_v15, %v877_v20  ;;  %v879_v33 = vadd.f32 %v878_v27, %v860_v29 }
  0xe0   : > { %v920_v17 = vadd.f32 %v912_v14, %v258_v12 }
  0xe1   : > { %v931_v18 = vld [vmem:[#allocation2] sm:$0xff] }
  0xe2   : > { %925 = vst.msk [vmem:[#allocation2 + $0x8] sm:$0xff] %vm252_vm1, %v920_v17  ;;  %v959_v21 = vadd.f32 %v942_v10, %v931_v18 }
  0xe4   : > { %963 = vst.msk [vmem:[%s1694_s20] sm:$0xff] %vm252_vm1, %v959_v21 }
  0xe5   : > { %v914_v25 = vpop.f32.mrf.mxu2 }
  0xe6   : > { %v915_v26 = vadd.f32 %v914_v25, %v896_v23  ;;  %v897_v31 = vpop.f32.mrf.mxu1 }
  0xe7   : > { %v898_v35 = vadd.f32 %v897_v31, %v879_v33 }
  0xe8   : > { %v921_v30 = vadd.f32 %v915_v26, %v259_v24 }
  0xe9   : > { %v932_v32 = vld [vmem:[#allocation2 + $0x8] sm:$0xff] }
  0xea   : > { %926 = vst.msk [vmem:[#allocation2 + $0x10] sm:$0xff] %vm252_vm1, %v921_v30  ;;  %v960_v34 = vadd.f32 %v947_v28, %v932_v32 }
  0xec   : > { %964 = vst.msk [vmem:[%s1694_s20 + $0x8] sm:$0xff] %vm252_vm1, %v960_v34 }
  0xed   : > { %v916_v37 = vpop.f32.mrf.mxu2 }
  0xee   : > { %v917_v38 = vadd.f32 %v916_v37, %v898_v35 }
  0xf0   : > { %v922_v40 = vadd.f32 %v917_v38, %v260_v36 }
  0xf1   : > { %v933_v41 = vld [vmem:[#allocation2 + $0x10] sm:$0xff] }
  0xf2   : > { %v961_v42 = vadd.f32 %v952_v39, %v933_v41  ;;  %927 = vst.msk [vmem:[#allocation2 + $0x18] sm:$0xff] %vm252_vm1, %v922_v40 }
  0xf4   : > { %965 = vst.msk [vmem:[%s1694_s20 + $0x10] sm:$0xff] %vm252_vm1, %v961_v42 }
  0xf9   : > { %v934_v44 = vld [vmem:[#allocation2 + $0x18] sm:$0xff] }
  0xfa   : > { %v962_v45 = vadd.f32 %v957_v43, %v934_v44 }
  0xfc   : > { %966 = vst.msk [vmem:[%s1694_s20 + $0x18] sm:$0xff] %vm252_vm1, %v962_v45 }
  0xfd PF: > { %s13_s14 = sadd.s32 1, %s1485_s14   ;;  %s1720_s12 = smov %s1481_s13 }
  0xfe   : > { %p10_p5 = scmp.ge.s32.totalorder %s13_s14, 4   ;;  %s1721_s13 = smov %s1723_s15 }
 0x100   :  { %12 = sbr.rel (!%p10_p5) target bundleno = 2 (0x2), region = 73 }

// kernel: _lambda_.32
= control target key start
LH: loop header
LB: loop body
LE: loop exit
PB: predicated region body
PF: predicated region fallthrough
CT: control target
= control target key end

     0   :  { %s552_s21 = smov 0   ;;  %s650_s0 = inlined_call_operand.vmem [shape: f32[2,16,8], index: 0, kind: input, shape index: {}]   ;;  %s651_s1 = inlined_call_operand.vmem [shape: f32[2,16,8], index: 1, kind: input, shape index: {}]   ;;  %s652_s2 = inlined_call_operand.vmem [shape: f32[16,8], index: 2, kind: input, shape index: {}]   ;;  %s653_s3 = inlined_call_operand.vmem [shape: f32[16,8], index: 3, kind: input, shape index: {}]   ;;  %s654_s4 = inlined_call_operand.vmem [shape: f32[16,8], index: 4, kind: input, shape index: {}]   ;;  %s655_s5 = inlined_call_operand.vmem [shape: f32[16,8], index: 5, kind: input, shape index: {}]   ;;  %s656_s6 = inlined_call_operand.vmem [shape: f32[2,16,8], index: 6, kind: output, shape index: {}]  }
   0x1 LB: > { %s473_s22 = sadd.s32 4294967295, %s514_s21   ;;  %p477_p0 = scmp.ge.s32.totalorder %s514_s21, 1  ;;  %s514_s21 = sphi %s552_s21, %s16_s21  }
   0x2   : > { %p222_p1 = scmp.lt.s32.totalorder %s514_s21, 3 }
   0x4   : > { %p223_p2 = pnand %p477_p0, %p222_p1 }
   0x5   : > { %p257_p3 = scmp.lt.s32.totalorder (!%p223_p2), %s473_s22, 1 }
   0x6   : > { %226 = sbr.rel (%p223_p2) target bundleno = 186 (0xba), region = 44 }
   0xb   : > { %s658_s22 = smov (!%p257_p3, %s473_s22), 1  ;;  %vm278_vm0 = vcmask 64512   ;;  %v516_v16 = vmov 8.0  }
   0xc   : > { %s560_s23 = sshll.u32 %s658_s22, 4  ;;  %498 = vrcp.f32 %v516_v16 }
   0xd   : > { %s266_s26 = scalar_lea.vmem %s651_s1, %s560_s23  ;;  %s261_s29 = scalar_lea.vmem %s650_s0, %s560_s23 }
   0xe   : > { %v566_v0 = vld [vmem:[%s266_s26] sm:$0xff]  ;;  %v580_v5 = vld [vmem:[%s261_s29 + $0x8] sm:$0xff] }
   0xf   : > { %v346_v1 = vsel %vm278_vm0, %v566_v0, 0.0  ;;  %v574_v2 = vld [vmem:[%s261_s29] sm:$0xff]  ;;  %v583_v7 = vld [vmem:[%s266_s26 + $0x8] sm:$0xff]  ;;  %v295_v8 = vmul.f32 %v580_v5, %v580_v5  ;;  %v282_v10 = vsel %vm278_vm0, %v580_v5, 0.0  ;;  %v354_v13 = vmul.f32 %v566_v0, %v566_v0  ;;  %s271_s26 = scalar_lea.vmem %s656_s6, %s560_s23 }
  0x10   : > { %347 = vadd.xlane.f32.xlu1 %v346_v1  ;;  %v279_v3 = vsel %vm278_vm0, %v574_v2, 0.0  ;;  %v294_v4 = vmul.f32 %v574_v2, %v574_v2  ;;  %v349_v9 = vsel %vm278_vm0, %v583_v7, 0.0  ;;  %v355_v12 = vmul.f32 %v583_v7, %v583_v7 }
  0x11   : > { %280 = vadd.xlane.f32.xlu0 %v279_v3  ;;  %v299_v11 = vsel %vm278_vm0, %v295_v8, 0.0  ;;  %v356_v15 = vsel %vm278_vm0, %v354_v13, 0.0 }
  0x12   : > { %v296_v6 = vsel %vm278_vm0, %v294_v4, 0.0  ;;  %v359_v14 = vsel %vm278_vm0, %v355_v12, 0.0  ;;  %v499_v17 = vpop.eup %498 }
  0x13   : > { %297 = vadd.xlane.f32.xlu2 %v296_v6  ;;  %v286_v18 = vmul.f32 8.0, %v499_v17  ;;  %vm290_vm1 = vweird.f32 %v499_v17 }
  0x15   : > { %v287_v19 = vsub.f32 1.0, %v286_v18 }
  0x17   : > { %v288_v20 = vmul.f32 %v499_v17, %v287_v19 }
  0x18   : > { %350 = vadd.xlane.f32.xlu1 %v349_v9 }
  0x19   : > { %283 = vadd.xlane.f32.xlu0 %v282_v10  ;;  %v289_v21 = vadd.f32 %v499_v17, %v288_v20 }
  0x1b   : > { %300 = vadd.xlane.f32.xlu2 %v299_v11  ;;  %v291_v22 = vsel %vm290_vm1, %v499_v17, %v289_v21 }
  0x20   : > { %360 = vadd.xlane.f32.xlu1 %v359_v14 }
  0x21   : > { %357 = vadd.xlane.f32.xlu0 %v356_v15 }
  0x83   : > { %v348_v23 = vpop.xlane.xlu1 %347 }
  0x84   : > { %v281_v24 = vpop.xlane.xlu0 %280  ;;  %v604_v39 = vmul.f32 %v348_v23, %v291_v22  ;;  %v275_v23 = vld [vmem:[%s652_s2 + $0x8] sm:$0xff] }
  0x85   : > { %v598_v25 = vmul.f32 %v291_v22, %v281_v24 }
  0x86   : > { %v298_v26 = vpop.xlane.xlu2 %297  ;;  %v364_v47 = vmul.f32 %v604_v39, %v604_v39 }
  0x87   : > { %v304_v27 = vmul.f32 %v598_v25, %v598_v25  ;;  %v302_v28 = vmul.f32 %v298_v26, %v291_v22  ;;  %v332_v17 = vsub.f32 %v574_v2, %v598_v25  ;;  %v392_v26 = vsub.f32 %v566_v0, %v604_v39  ;;  %v345_v0 = vld [vmem:[%s655_s5 + $0x8] sm:$0xff] }
  0x89   : > { %v306_v29 = vsub.f32 %v302_v28, %v304_v27  ;;  %v343_v27 = vld [vmem:[%s654_s4 + $0x8] sm:$0xff] }
  0x8b   : > { %v308_v30 = vmax.f32 %v306_v29, 0.0  ;;  %v351_v31 = vpop.xlane.xlu1 %350 }
  0x8c   : > { %v284_v32 = vpop.xlane.xlu0 %283  ;;  %v602_v37 = vmul.f32 %v351_v31, %v291_v22  ;;  %v342_v31 = vld [vmem:[%s654_s4] sm:$0xff] }
  0x8d   : > { %v310_v33 = vadd.f32 1e-05, %v308_v30  ;;  %v293_v34 = vmul.f32 %v291_v22, %v284_v32 }
  0x8e   : > { %v301_v35 = vpop.xlane.xlu2 %300  ;;  %v365_v42 = vmul.f32 %v602_v37, %v602_v37  ;;  %v393_v2 = vsub.f32 %v583_v7, %v602_v37  ;;  %v344_v37 = vld [vmem:[%s655_s5] sm:$0xff] }
  0x8f   : > { %500 = vrsqrt.f32 %v310_v33  ;;  %v305_v36 = vmul.f32 %v293_v34, %v293_v34  ;;  %v303_v38 = vmul.f32 %v301_v35, %v291_v22  ;;  %vm318_vm4 = vweird.f32 %v310_v33  ;;  %v276_v35 = vld [vmem:[%s653_s3] sm:$0xff] }
  0x90   : > { %v333_v15 = vsub.f32 %v580_v5, %v293_v34  ;;  %v274_v5 = vld [vmem:[%s652_s2] sm:$0xff] }
  0x91   : > { %v307_v40 = vsub.f32 %v303_v38, %v305_v36 }
  0x93   : > { %v361_v41 = vpop.xlane.xlu1 %360  ;;  %v309_v43 = vmax.f32 %v307_v40, 0.0 }
  0x94   : > { %v363_v44 = vmul.f32 %v361_v41, %v291_v22  ;;  %v358_v45 = vpop.xlane.xlu0 %357 }
  0x95   : > { %v501_v46 = vpop.eup %500  ;;  %v362_v48 = vmul.f32 %v358_v45, %v291_v22  ;;  %v311_v50 = vadd.f32 1e-05, %v309_v43 }
  0x96   : > { %v313_v49 = vmul.f32 %v501_v46, %v310_v33  ;;  %v367_v51 = vsub.f32 %v363_v44, %v365_v42  ;;  %vm319_vm2 = vweird.f32 %v501_v46  ;;  %v277_v33 = vld [vmem:[%s653_s3 + $0x8] sm:$0xff] }
  0x97   : > { %v366_v52 = vsub.f32 %v362_v48, %v364_v47  ;;  %502 = vrsqrt.f32 %v311_v50  ;;  %vm320_vm5 = vmor %vm318_vm4, %vm319_vm2  ;;  %vm328_vm6 = vweird.f32 %v311_v50 }
  0x98   : > { %v314_v53 = vmul.f32 %v501_v46, %v313_v49  ;;  %v369_v54 = vmax.f32 %v367_v51, 0.0 }
  0x99   : > { %v368_v55 = vmax.f32 %v366_v52, 0.0 }
  0x9a   : > { %v371_v56 = vadd.f32 1e-05, %v369_v54  ;;  %v315_v58 = vmul.f32 0.5, %v314_v53 }
  0x9b   : > { %v370_v57 = vadd.f32 1e-05, %v368_v55 }
  0x9c   : > { %504 = vrsqrt.f32 %v371_v56  ;;  %v316_v61 = vsub.f32 1.5, %v315_v58  ;;  %vm388_vm10 = vweird.f32 %v371_v56 }
  0x9d   : > { %506 = vrsqrt.f32 %v370_v57  ;;  %v503_v59 = vpop.eup %502  ;;  %vm378_vm12 = vweird.f32 %v370_v57 }
  0x9e   : > { %v323_v60 = vmul.f32 %v503_v59, %v311_v50  ;;  %v317_v6 = vmul.f32 %v501_v46, %v316_v61  ;;  %vm329_vm3 = vweird.f32 %v503_v59 }
  0x9f   : > { %vm330_vm7 = vmor %vm328_vm6, %vm329_vm3 }
  0xa0   : > { %v324_v62 = vmul.f32 %v503_v59, %v323_v60  ;;  %v321_v14 = vsel %vm320_vm5, %v501_v46, %v317_v6 }
  0xa1   : > { %v334_v22 = vmul.f32 %v332_v17, %v321_v14 }
  0xa2   : > { %v505_v63 = vpop.eup %504  ;;  %v325_v3 = vmul.f32 0.5, %v324_v62 }
  0xa3   : > { %v507_v1 = vpop.eup %506  ;;  %v383_v4 = vmul.f32 %v505_v63, %v371_v56  ;;  %vm389_vm8 = vweird.f32 %v505_v63  ;;  %v336_v32 = vmul.f32 %v334_v22, %v274_v5 }
  0xa4   : > { %v373_v8 = vmul.f32 %v507_v1, %v370_v57  ;;  %v326_v9 = vsub.f32 1.5, %v325_v3  ;;  %vm379_vm9 = vweird.f32 %v507_v1  ;;  %vm390_vm11 = vmor %vm388_vm10, %vm389_vm8 }
  0xa5   : > { %v384_v10 = vmul.f32 %v505_v63, %v383_v4  ;;  %vm380_vm13 = vmor %vm378_vm12, %vm379_vm9  ;;  %v338_v41 = vadd.f32 %v336_v32, %v276_v35 }
  0xa6   : > { %v374_v11 = vmul.f32 %v507_v1, %v373_v8  ;;  %v327_v12 = vmul.f32 %v503_v59, %v326_v9 }
  0xa7   : > { %v385_v13 = vmul.f32 0.5, %v384_v10 }
  0xa8   : > { %v375_v16 = vmul.f32 0.5, %v374_v11  ;;  %v331_v18 = vsel %vm330_vm7, %v503_v59, %v327_v12 }
  0xa9   : > { %v386_v19 = vsub.f32 1.5, %v385_v13  ;;  %v335_v20 = vmul.f32 %v333_v15, %v331_v18 }
  0xaa   : > { %v376_v21 = vsub.f32 1.5, %v375_v16 }
  0xab   : > { %v387_v24 = vmul.f32 %v505_v63, %v386_v19  ;;  %v337_v29 = vmul.f32 %v335_v20, %v275_v23 }
  0xac   : > { %v377_v25 = vmul.f32 %v507_v1, %v376_v21 }
  0xad   : > { %v391_v28 = vsel %vm390_vm11, %v505_v63, %v387_v24  ;;  %v339_v39 = vadd.f32 %v337_v29, %v277_v33 }
  0xae   : > { %v395_v30 = vmul.f32 %v393_v2, %v391_v28  ;;  %v381_v7 = vsel %vm380_vm13, %v507_v1, %v377_v25 }
  0xaf   : > { %v394_v34 = vmul.f32 %v392_v26, %v381_v7 }
  0xb0   : > { %v397_v36 = vmul.f32 %v395_v30, %v343_v27 }
  0xb1   : > { %v396_v38 = vmul.f32 %v394_v34, %v342_v31 }
  0xb2   : > { %v399_v40 = vadd.f32 %v397_v36, %v345_v0 }
  0xb3   : > { %v398_v42 = vadd.f32 %v396_v38, %v344_v37 }
  0xb4   : > { %v401_v43 = vadd.f32 %v399_v40, %v339_v39 }
  0xb5   : > { %v400_v44 = vadd.f32 %v398_v42, %v338_v41 }
  0xb6   : > { %v403_v45 = vmax.f32 %v401_v43, 0.0 }
  0xb7   : > { %v402_v46 = vmax.f32 %v400_v44, 0.0 }
  0xb8   : > { %405 = vst.msk [vmem:[%s271_s26 + $0x8] sm:$0xff] %vm278_vm0, %v403_v45 }
  0xb9   : > { %404 = vst.msk [vmem:[%s271_s26] sm:$0xff] %vm278_vm0, %v402_v46 }
  0xba PF: > { %s16_s21 = sadd.s32 1, %s514_s21  }
  0xbb   : > { %p13_p4 = scmp.ge.s32.totalorder %s16_s21, 4  }
  0xbd   :  { %15 = sbr.rel (!%p13_p4) target bundleno = 1 (0x1), region = 77 }

// kernel: _lambda_.31
= control target key start
LH: loop header
LB: loop body
LE: loop exit
PB: predicated region body
PF: predicated region fallthrough
CT: control target
= control target key end

     0   :  { %s577_s12 = smov 0   ;;  %s579_s13 = smov 0   ;;  %s644_s0 = inlined_call_operand.vmem [shape: bf16[32,32], index: 0, kind: input, shape index: {}]   ;;  %s645_s1 = inlined_call_operand.vmem [shape: bf16[2,32,4], index: 1, kind: input, shape index: {}]   ;;  %s646_s2 = inlined_call_operand.vmem [shape: f32[32,1], index: 2, kind: input, shape index: {}]   ;;  %s647_s3 = inlined_call_operand.vmem [shape: f32[2,32,4], index: 3, kind: output, shape index: {}]  }
   0x1   :  { %s581_s14 = smov 0  }
   0x2 LB: > { %s32_s15 = sadd.s32 1, %s549_s13  ;;  %p470_p0 = scmp.ge.s32.totalorder %s553_s14, 1  ;;  %s553_s14 = sphi %s581_s14, %s13_s14   ;;  %s549_s13 = sphi %s579_s13, %s649_s13   ;;  %s545_s12 = sphi %s577_s12, %s648_s12  }
   0x3   : > { %p34_p1 = scmp.ge.s32.totalorder %s32_s15, 2  ;;  %p179_p2 = scmp.lt.s32.totalorder %s553_s14, 3 }
   0x5   : > { %s651_s15 = smov (%p34_p1, %s32_s15), 0  ;;  %p180_p3 = pnand %p470_p0, %p179_p2 }
   0x6   : > { %p222_p4 = scmp.lt.s32.totalorder (!%p180_p3), %s545_s12, 1 }
   0x7   : > { %183 = sbr.rel (%p180_p3) target bundleno = 171 (0xab), region = 32 }
   0xc   : > { %v330_v0 = vld [vmem:[%s646_s2 + $0x10] sm:$0xff]  ;;  %v555_v1 = vmov 0   ;;  %v328_v2 = vld [vmem:[%s646_s2] sm:$0xff]  ;;  %vm247_vm0 = vcmask 31744   ;;  %s653_s12 = smov (!%p222_p4, %s545_s12), 1  ;;  %v556_v3 = vmov 0.0  }
   0xd   : > { %530 = vset.pattern.permute.xlu1 %v555_v1  ;;  %529 = vset.pattern.permute.xlu0 %v555_v1  ;;  %248 = vst.msk [vmem:[#allocation2] sm:$0xff] %vm247_vm0, %v556_v3  ;;  %s495_s20 = sshll.u32 %s653_s12, 4  ;;  %v331_v5 = vld [vmem:[%s646_s2 + $0x18] sm:$0xff]  ;;  %v329_v6 = vld [vmem:[%s646_s2 + $0x8] sm:$0xff]  ;;  %v497_v8 = vld [vmem:[%s644_s0] sm:$0xff]  ;;  %vm286_vm1 = vcmask 261120  }
   0xe   : > { %344 = vperm.xlu1 %530, %v330_v0   ;;  %334 = vperm.xlu0 %529, %v328_v2   ;;  %249 = vst.msk [vmem:[#allocation2 + $0x8] sm:$0xff] %vm247_vm0, %v556_v3  ;;  %s232_s23 = scalar_lea.vmem %s645_s1, %s495_s20  ;;  %v498_v9 = vld [vmem:[%s644_s0 + $0x8] sm:$0xff]  ;;  %s496_s5 = sshll.u32 %s653_s12, 5 }
   0xf   : > { %250 = vst.msk [vmem:[#allocation2 + $0x10] sm:$0xff] %vm247_vm0, %v556_v3  ;;  %v500_v4 = vld [vmem:[%s232_s23 + $0x8] sm:$0xff]  ;;  %v499_v7 = vld [vmem:[%s232_s23] sm:$0xff]  ;;  %s241_s8 = scalar_lea.vmem %s647_s3, %s496_s5 }
  0x10   : > { %251 = vst.msk [vmem:[#allocation2 + $0x18] sm:$0xff] %vm247_vm0, %v556_v3  ;;  %299 = vmatpush.bf16.msra.mxu0 %v500_v4  ;;  %501 = vmatpush.bf16.msra.mxu1 %v500_v4 }
  0x14   : > { %300 = vmatpush.bf16.msra.mxu0 %v499_v7  ;;  %502 = vmatpush.bf16.msra.mxu1 %v499_v7  ;;  %v252_v10 = vld [vmem:[#allocation2] sm:$0xff] }
  0x15   : > { %v253_v16 = vld [vmem:[#allocation2 + $0x8] sm:$0xff] }
  0x16   : > { %349 = vperm.xlu1 %530, %v331_v5   ;;  %339 = vperm.xlu0 %529, %v329_v6   ;;  %v254_v11 = vld [vmem:[#allocation2 + $0x10] sm:$0xff] }
  0x17   : > { %491 = vmatmul.msk.bf16.vlgmr.msra.gmra.mxu0 %vm286_vm1, %v497_v8  ;;  %492 = vmatmul.msk.bf16.vlgmr.msra.gmra.mxu1 %vm286_vm1, %v498_v9  ;;  %v255_v17 = vld [vmem:[#allocation2 + $0x18] sm:$0xff] }
  0x80   : > { %v335_v18 = vpop.permute.xlu0 %334  ;;  %v345_v21 = vpop.permute.xlu1 %344 }
  0x88   : > { %v340_v28 = vpop.permute.xlu0 %339  ;;  %v350_v30 = vpop.permute.xlu1 %349 }
  0x94   : > { %v302_v12 = vpop.f32.mrf.mxu0  ;;  %v307_v13 = vpop.f32.mrf.mxu1 }
  0x95   : > { %v312_v14 = vadd.f32 %v302_v12, %v252_v10  ;;  %v314_v15 = vadd.f32 %v307_v13, %v254_v11 }
  0x97   : > { %317 = vst.msk [vmem:[#allocation2] sm:$0xff] %vm247_vm0, %v312_v14 }
  0x98   : > { %319 = vst.msk [vmem:[#allocation2 + $0x10] sm:$0xff] %vm247_vm0, %v314_v15 }
  0x9c   : > { %v304_v19 = vpop.f32.mrf.mxu0  ;;  %v309_v20 = vpop.f32.mrf.mxu1 }
  0x9d   : > { %v313_v22 = vadd.f32 %v304_v19, %v253_v16  ;;  %v315_v23 = vadd.f32 %v309_v20, %v255_v17 }
  0x9e   : > { %v324_v24 = vld [vmem:[#allocation2] sm:$0xff] }
  0x9f   : > { %v326_v25 = vld [vmem:[#allocation2 + $0x10] sm:$0xff]  ;;  %v352_v26 = vadd.f32 %v335_v18, %v324_v24  ;;  %318 = vst.msk [vmem:[#allocation2 + $0x8] sm:$0xff] %vm247_vm0, %v313_v22 }
  0xa0   : > { %v354_v27 = vadd.f32 %v345_v21, %v326_v25  ;;  %320 = vst.msk [vmem:[#allocation2 + $0x18] sm:$0xff] %vm247_vm0, %v315_v23 }
  0xa1   : > { %356 = vst.msk [vmem:[%s241_s8] sm:$0xff] %vm247_vm0, %v352_v26 }
  0xa2   : > { %358 = vst.msk [vmem:[%s241_s8 + $0x10] sm:$0xff] %vm247_vm0, %v354_v27 }
  0xa6   : > { %v325_v29 = vld [vmem:[#allocation2 + $0x8] sm:$0xff] }
  0xa7   : > { %v327_v31 = vld [vmem:[#allocation2 + $0x18] sm:$0xff]  ;;  %v353_v32 = vadd.f32 %v340_v28, %v325_v29 }
  0xa8   : > { %v355_v33 = vadd.f32 %v350_v30, %v327_v31 }
  0xa9   : > { %357 = vst.msk [vmem:[%s241_s8 + $0x8] sm:$0xff] %vm247_vm0, %v353_v32 }
  0xaa   : > { %359 = vst.msk [vmem:[%s241_s8 + $0x18] sm:$0xff] %vm247_vm0, %v355_v33 }
  0xab PF: > { %s13_s14 = sadd.s32 1, %s553_s14   ;;  %s648_s12 = smov %s549_s13 }
  0xac   : > { %p10_p5 = scmp.ge.s32.totalorder %s13_s14, 4   ;;  %s649_s13 = smov %s651_s15 }
  0xae   :  { %12 = sbr.rel (!%p10_p5) target bundleno = 2 (0x2), region = 73 }

// kernel: _lambda_.33
= control target key start
LH: loop header
LB: loop body
LE: loop exit
PB: predicated region body
PF: predicated region fallthrough
CT: control target
= control target key end

     0   :  { %s930_s21 = smov 0   ;;  %s1042_s0 = inlined_call_operand.vmem [shape: bf16[32,288], index: 0, kind: input, shape index: {}]   ;;  %s1043_s1 = inlined_call_operand.vmem [shape: bf16[2,288,4], index: 1, kind: input, shape index: {}]   ;;  %s1044_s2 = inlined_call_operand.vmem [shape: f32[32,1], index: 2, kind: input, shape index: {}]   ;;  %s1045_s3 = inlined_call_operand.vmem [shape: f32[2,16,4], index: 3, kind: input, shape index: {}]   ;;  %s1046_s4 = inlined_call_operand.vmem [shape: f32[2,16,4], index: 4, kind: output, shape index: {0}]   ;;  %s1047_s5 = inlined_call_operand.vmem [shape: f32[2,16,4], index: 5, kind: output, shape index: {1}]   ;;  %s1048_s6 = inlined_call_operand.vmem [shape: f32[2,16,4], index: 6, kind: output, shape index: {2}]  }
   0x1 LB: > { %s720_s22 = sadd.s32 4294967295, %s892_s21   ;;  %p724_p0 = scmp.ge.s32.totalorder %s892_s21, 1  ;;  %s892_s21 = sphi %s930_s21, %s17_s21  }
   0x2   : > { %p227_p1 = scmp.lt.s32.totalorder %s892_s21, 3 }
   0x4   : > { %p228_p2 = pnand %p724_p0, %p227_p1 }
   0x5   : > { %p272_p3 = scmp.lt.s32.totalorder (!%p228_p2), %s720_s22, 1 }
   0x6   : > { %231 = sbr.rel (%p228_p2) target bundleno = 218 (0xda), region = 36 }
   0xb   : > { %s1050_s22 = smov (!%p272_p3, %s720_s22), 1  ;;  %v894_v5 = vmov 0   ;;  %v744_v7 = vld [vmem:[%s1042_s0 + $0x8] sm:$0xf]  ;;  %v840_v8 = vld [vmem:[%s1042_s0 + $0x10] sm:$0xf0] }
   0xc   : > { %s870_s23 = smul.u32 144, %s1050_s22  ;;  %881 = vset.pattern.permute.xlu1 %v894_v5  ;;  %880 = vset.pattern.permute.xlu0 %v894_v5  ;;  %v745_v11 = vor.u32 %v840_v8, %v744_v7  ;;  %v342_v12 = vld [vmem:[%s1044_s2] sm:$0xff]  ;;  %vm504_vm0 = vcmask 261120   ;;  %v344_v18 = vld [vmem:[%s1044_s2 + $0x10] sm:$0xff]  ;;  %v343_v19 = vld [vmem:[%s1044_s2 + $0x8] sm:$0xff]  ;;  %s1015_s13 = sshll.u32 %s1050_s22, 4 }
   0xd   : > { %348 = vperm.xlu1 %881, %v342_v12   ;;  %358 = vperm.xlu0 %880, %v344_v18   ;;  %v756_v21 = vld [vmem:[%s1042_s0 + $0x20] sm:$0xf]  ;;  %v843_v22 = vld [vmem:[%s1042_s0 + $0x28] sm:$0xf0]  ;;  %v345_v28 = vld [vmem:[%s1044_s2 + $0x18] sm:$0xff]  ;;  %s291_s16 = scalar_lea.vmem %s1047_s5, %s1015_s13  ;;  %vm568_vm1 = vcmask 31744   ;;  %s296_s18 = scalar_lea.vmem %s1048_s6, %s1015_s13 }
   0xe   : > { %s944_s26 = scalar_lea.vmem %s1043_s1, %s870_s23  ;;  %v757_v25 = vor.u32 %v843_v22, %v756_v21  ;;  %v736_v26 = vld [vmem:[%s1042_s0] sm:$0xf]  ;;  %v839_v27 = vld [vmem:[%s1042_s0 + $0x8] sm:$0xf0]  ;;  %v748_v30 = vld [vmem:[%s1042_s0 + $0x18] sm:$0xf]  ;;  %s281_s23 = scalar_lea.vmem %s1045_s3, %s1015_s13 }
   0xf   : > { %v851_v0 = vld [vmem:[%s944_s26 + $0x38] sm:$0xff]  ;;  %v850_v2 = vld [vmem:[%s944_s26 + $0x30] sm:$0xff]  ;;  %v861_v3 = vld [vmem:[%s944_s26 + $0x88] sm:$0xff]  ;;  %v737_v35 = vor.u32 %v839_v27, %v736_v26  ;;  %s286_s27 = scalar_lea.vmem %s1046_s4, %s1015_s13 }
  0x10   : > { %v859_v1 = vld [vmem:[%s944_s26 + $0x78] sm:$0xff]  ;;  %511 = vmatpush.bf16.msra.mxu0 %v851_v0  ;;  %862 = vmatpush.bf16.msra.mxu3 %v851_v0  ;;  %v858_v4 = vld [vmem:[%s944_s26 + $0x70] sm:$0xff]  ;;  %v860_v6 = vld [vmem:[%s944_s26 + $0x80] sm:$0xff] }
  0x11   : > { %530 = vmatpush.bf16.msra.mxu1 %v859_v1  ;;  %555 = vmatpush.bf16.msra.mxu2 %v861_v3  ;;  %v849_v9 = vld [vmem:[%s944_s26 + $0x28] sm:$0xff]  ;;  %v848_v13 = vld [vmem:[%s944_s26 + $0x20] sm:$0xff]  ;;  %v847_v15 = vld [vmem:[%s944_s26 + $0x18] sm:$0xff] }
  0x12   : > { %v857_v10 = vld [vmem:[%s944_s26 + $0x68] sm:$0xff]  ;;  %v856_v14 = vld [vmem:[%s944_s26 + $0x60] sm:$0xff]  ;;  %v855_v16 = vld [vmem:[%s944_s26 + $0x58] sm:$0xff] }
  0x13   : > { %v846_v17 = vld [vmem:[%s944_s26 + $0x10] sm:$0xff]  ;;  %v845_v23 = vld [vmem:[%s944_s26 + $0x8] sm:$0xff]  ;;  %v844_v29 = vld [vmem:[%s944_s26] sm:$0xff] }
  0x14   : > { %512 = vmatpush.bf16.msra.mxu0 %v850_v2  ;;  %863 = vmatpush.bf16.msra.mxu3 %v850_v2  ;;  %v854_v20 = vld [vmem:[%s944_s26 + $0x50] sm:$0xff]  ;;  %v853_v24 = vld [vmem:[%s944_s26 + $0x48] sm:$0xff]  ;;  %v842_v31 = vld [vmem:[%s1042_s0 + $0x20] sm:$0xf0] }
  0x15   : > { %531 = vmatpush.bf16.msra.mxu1 %v858_v4  ;;  %556 = vmatpush.bf16.msra.mxu2 %v860_v6  ;;  %v852_v32 = vld [vmem:[%s944_s26 + $0x40] sm:$0xff]  ;;  %v738_v34 = vld [vmem:[%s1042_s0 + $0xc] sm:$0xf0]  ;;  %v749_v36 = vor.u32 %v842_v31, %v748_v30  ;;  %v841_v38 = vld [vmem:[%s1042_s0 + $0x1c] sm:$0xf] }
  0x16   : > { %353 = vperm.xlu1 %881, %v343_v19   ;;  %v838_v33 = vld [vmem:[%s1042_s0 + $0x4] sm:$0xf]  ;;  %363 = vperm.xlu0 %880, %v345_v28   ;;  %v750_v39 = vld [vmem:[%s1042_s0 + $0x24] sm:$0xf0] }
  0x17   : > { %v741_v37 = vor.u32 %v838_v33, %v738_v34  ;;  %v753_v40 = vor.u32 %v841_v38, %v750_v39  ;;  %v573_v7 = vld [vmem:[%s281_s23] sm:$0xff] }
  0x18   : > { %513 = vmatpush.bf16.msra.mxu0 %v849_v9  ;;  %864 = vmatpush.bf16.msra.mxu3 %v849_v9 }
  0x19   : > { %532 = vmatpush.bf16.msra.mxu1 %v857_v10  ;;  %830 = vmatmul.msk.bf16.vlgmr.msra.gmra.mxu2 %vm504_vm0, %v745_v11 }
  0x1c   : > { %514 = vmatpush.bf16.msra.mxu0 %v848_v13  ;;  %865 = vmatpush.bf16.msra.mxu3 %v848_v13  ;;  %v574_v13 = vld [vmem:[%s281_s23 + $0x8] sm:$0xff] }
  0x1d   : > { %533 = vmatpush.bf16.msra.mxu1 %v856_v14 }
  0x20   : > { %515 = vmatpush.bf16.msra.mxu0 %v847_v15  ;;  %866 = vmatpush.bf16.msra.mxu3 %v847_v15 }
  0x21   : > { %534 = vmatpush.bf16.msra.mxu1 %v855_v16 }
  0x24   : > { %516 = vmatpush.bf16.msra.mxu0 %v846_v17  ;;  %867 = vmatpush.bf16.msra.mxu3 %v846_v17 }
  0x25   : > { %535 = vmatpush.bf16.msra.mxu1 %v854_v20 }
  0x28   : > { %517 = vmatpush.bf16.msra.mxu0 %v845_v23  ;;  %868 = vmatpush.bf16.msra.mxu3 %v845_v23 }
  0x29   : > { %536 = vmatpush.bf16.msra.mxu1 %v853_v24  ;;  %831 = vmatmul.msk.bf16.gmra.mxu2 %vm504_vm0, %v757_v25 }
  0x2c   : > { %518 = vmatpush.bf16.msra.mxu0 %v844_v29  ;;  %869 = vmatpush.bf16.msra.mxu3 %v844_v29 }
  0x2d   : > { %537 = vmatpush.bf16.msra.mxu1 %v852_v32 }
  0x2f   : > { %519 = vmatmul.bf16.vlgmr.msra.gmra.mxu0 %v737_v35  ;;  %524 = vmatmul.bf16.vlgmr.msra.gmra.mxu3 %v749_v36 }
  0x30   : > { %538 = vmatmul.bf16.vlgmr.msra.gmra.mxu1 %v741_v37 }
  0x40   : > { %543 = vmatmul.bf16.gmra.mxu1 %v753_v40 }
  0x7f   : > { %v349_v41 = vpop.permute.xlu1 %348  ;;  %v359_v53 = vpop.permute.xlu0 %358 }
  0x88   : > { %v354_v48 = vpop.permute.xlu1 %353  ;;  %v364_v62 = vpop.permute.xlu0 %363 }
  0x9c   : > { %v558_v42 = vpop.f32.mrf.mxu2 }
  0xa4   : > { %v560_v49 = vpop.f32.mrf.mxu2 }
  0xac   : > { %v520_v43 = vpop.f32.mrf.mxu0  ;;  %v563_v58 = vpop.f32.mrf.mxu2 }
  0xad   : > { %v521_v44 = vadd.f32 %v520_v43, %v349_v41  ;;  %v539_v45 = vpop.f32.mrf.mxu1 }
  0xaf   : > { %v540_v46 = vadd.f32 %v539_v45, %v521_v44 }
  0xb1   : > { %v559_v47 = vadd.f32 %v558_v42, %v540_v46 }
  0xb2   : > { %v525_v54 = vpop.f32.mrf.mxu3 }
  0xb3   : > { %569 = vst.msk [vmem:[%s291_s16] sm:$0xff] %vm568_vm1, %v559_v47  ;;  %v526_v57 = vadd.f32 %v525_v54, %v359_v53 }
  0xb4   : > { %v522_v50 = vpop.f32.mrf.mxu0  ;;  %v565_v5 = vpop.f32.mrf.mxu2 }
  0xb5   : > { %v523_v51 = vadd.f32 %v522_v50, %v354_v48  ;;  %v541_v52 = vpop.f32.mrf.mxu1 }
  0xb7   : > { %v542_v55 = vadd.f32 %v541_v52, %v523_v51 }
  0xb9   : > { %v561_v56 = vadd.f32 %v560_v49, %v542_v55 }
  0xba   : > { %v527_v63 = vpop.f32.mrf.mxu3 }
  0xbb   : > { %570 = vst.msk [vmem:[%s291_s16 + $0x8] sm:$0xff] %vm568_vm1, %v561_v56  ;;  %v528_v1 = vadd.f32 %v527_v63, %v364_v62 }
  0xbd   : > { %v544_v59 = vpop.f32.mrf.mxu1 }
  0xbe   : > { %v545_v60 = vadd.f32 %v544_v59, %v526_v57 }
  0xc0   : > { %v564_v61 = vadd.f32 %v563_v58, %v545_v60 }
  0xc2   : > { %571 = vst.msk [vmem:[%s296_s18] sm:$0xff] %vm568_vm1, %v564_v61  ;;  %v575_v0 = vmul.f32 0.5, %v564_v61 }
  0xc4   : > { %v577_v2 = vmul.f32 1.442695, %v575_v0 }
  0xc5   : > { %v546_v3 = vpop.f32.mrf.mxu1 }
  0xc6   : > { %882 = vpow2.f32 %v577_v2  ;;  %v547_v4 = vadd.f32 %v546_v3, %v528_v1 }
  0xc8   : > { %v566_v6 = vadd.f32 %v565_v5, %v547_v4 }
  0xca   : > { %572 = vst.msk [vmem:[%s296_s18 + $0x8] sm:$0xff] %vm568_vm1, %v566_v6  ;;  %v576_v8 = vmul.f32 0.5, %v566_v6 }
  0xcc   : > { %v883_v9 = vpop.eup %882  ;;  %v579_v10 = vmul.f32 1.442695, %v576_v8 }
  0xcd   : > { %v581_v11 = vmul.f32 %v883_v9, %v573_v7 }
  0xce   : > { %884 = vpow2.f32 %v579_v10 }
  0xcf   : > { %v583_v12 = vadd.f32 %v581_v11, %v559_v47 }
  0xd1   : > { %585 = vst.msk [vmem:[%s286_s27] sm:$0xff] %vm568_vm1, %v583_v12 }
  0xd4   : > { %v885_v14 = vpop.eup %884 }
  0xd5   : > { %v582_v15 = vmul.f32 %v885_v14, %v574_v13 }
  0xd7   : > { %v584_v16 = vadd.f32 %v582_v15, %v561_v56 }
  0xd9   : > { %586 = vst.msk [vmem:[%s286_s27 + $0x8] sm:$0xff] %vm568_vm1, %v584_v16 }
  0xda PF: > { %s17_s21 = sadd.s32 1, %s892_s21  }
  0xdb   : > { %p14_p4 = scmp.ge.s32.totalorder %s17_s21, 4  }
  0xdd   :  { %16 = sbr.rel (!%p14_p4) target bundleno = 1 (0x1), region = 93 }

</bundles_post_ra>
